<compile_context>
chip_gen: v6e
topology: v6e:2x2x1
jax: 0.10.0
libtpu: 0.0.40
codegen_flags: <defaults>
</compile_context>

<pallas_src>
import jax
import jax.numpy as jnp
from jax.experimental import pallas as pl
from jax.experimental.pallas import tpu as pltpu


def _round_up(x, m):
    return (x + m - 1) // m * m


def _reorder_gates(w, axis):
    """PyTorch gate order [i, f, g, o] -> kernel order [i, f, o, g] along axis."""
    i, f, g, o = jnp.split(w, 4, axis=axis)
    return jnp.concatenate([i, f, o, g], axis=axis)


def _pad_gate_blocks(w_t, h, hp):
    """(rows, 4*h) -> (rows, 4*hp): zero-pad each per-gate block from h to hp."""
    rows = w_t.shape[0]
    w4 = w_t.reshape(rows, 4, h)
    w4 = jnp.pad(w4, ((0, 0), (0, 0), (0, hp - h)))
    return w4.reshape(rows, 4 * hp)


def _lstm_stack_kernel(x_ref, wih_ref, whh_ref, b_ref, h0_ref, c0_ref,
                       y_ref, hn_ref, cn_ref, gx_sc):
    """All layers + all timesteps in one kernel invocation.

    x_ref   : (T*Bp, Dp)         layer-0 input, flattened (time-major, batch)
    wih_ref : (L, Dstack, 4*Hp)  W_ih^T per layer (gate order [i,f,o,g], zero-padded)
    whh_ref : (L, Hp, 4*Hp)      W_hh^T per layer
    b_ref   : (L, 1, 4*Hp)       b_ih + b_hh per layer
    h0/c0   : (L, Bp, Hp)
    y_ref   : (T*Bp, Hp)         last layer's hidden sequence (also used as the
                                 inter-layer activation buffer)
    hn/cn   : (L, Bp, Hp)
    gx_sc   : (T*Bp, 4*Hp)       hoisted input projection for the current layer
    """
    num_layers, b_p, h_p = h0_ref.shape
    tb, d_p = x_ref.shape
    seq_len = tb // b_p

    for layer in range(num_layers):
        # Hoisted full-sequence input projection (+ fused bias): one big MXU
        # matmul per layer; only h @ W_hh^T stays on the serial recurrence path.
        if layer == 0:
            layer_in = x_ref[...]                     # (tb, Dp)
            w_in = wih_ref[0, :d_p, :]                # (Dp, 4Hp) static slice
        else:
            layer_in = y_ref[...]                     # previous layer's output
            w_in = wih_ref[layer, :h_p, :]            # (Hp, 4Hp) static slice
        gx_sc[...] = (
            jnp.dot(layer_in, w_in, preferred_element_type=jnp.float32)
            + b_ref[layer]
        )

        # Load the recurrent weight once per layer (loop-invariant).
        w_hh_l = whh_ref[layer]                       # (Hp, 4Hp)

        def step(t, carry, w_hh_l=w_hh_l):
            h_prev, c_prev = carry
            row = pl.multiple_of(t * b_p, b_p)
            gates = gx_sc[pl.ds(row, b_p), :] + jnp.dot(
                h_prev, w_hh_l, preferred_element_type=jnp.float32)
            # Gate order [i, f, o, g]: one contiguous sigmoid slab, one tanh slab.
            sig = jax.nn.sigmoid(gates[:, 0:3 * h_p])
            i_g = sig[:, 0:h_p]
            f_g = sig[:, h_p:2 * h_p]
            o_g = sig[:, 2 * h_p:3 * h_p]
            g_g = jnp.tanh(gates[:, 3 * h_p:])
            c_new = f_g * c_prev + i_g * g_g
            h_new = o_g * jnp.tanh(c_new)
            # y_ref doubles as the inter-layer activation buffer; intermediate
            # layers overwrite it, the last layer's writes ARE the output.
            y_ref[pl.ds(row, b_p), :] = h_new
            return h_new, c_new

        unroll = seq_len if seq_len <= 16 else 8
        h_last, c_last = jax.lax.fori_loop(
            0, seq_len, step, (h0_ref[layer], c0_ref[layer]), unroll=unroll)

        hn_ref[layer] = h_last
        cn_ref[layer] = c_last


def lstm_stack_forward(x_flat, w_ih_t, w_hh_t, bias, h0, c0):
    """x_flat: (T*Bp, Dp); weights stacked over layers; h0/c0: (L, Bp, Hp)."""
    tb, _ = x_flat.shape
    num_layers, b_p, h_p = h0.shape
    vmem = pl.BlockSpec(memory_space=pltpu.MemorySpace.VMEM)
    return pl.pallas_call(
        _lstm_stack_kernel,
        out_shape=(
            jax.ShapeDtypeStruct((tb, h_p), jnp.float32),                # y
            jax.ShapeDtypeStruct((num_layers, b_p, h_p), jnp.float32),   # h_n
            jax.ShapeDtypeStruct((num_layers, b_p, h_p), jnp.float32),   # c_n
        ),
        in_specs=[vmem] * 6,
        out_specs=(vmem, vmem, vmem),
        scratch_shapes=[
            pltpu.VMEM((tb, 4 * h_p), jnp.float32),    # hoisted input projection
        ],
    )(x_flat, w_ih_t, w_hh_t, bias, h0, c0)


class LSTMStackPallas:
    """Pallas equivalent of the PyTorch LSTMStack module."""

    def __init__(self, input_size, hidden_size, num_layers, key):
        self.input_size = input_size
        self.hidden_size = hidden_size
        self.num_layers = num_layers
        self.Hp = _round_up(hidden_size, 128)          # lane-aligned H
        self.Dp = _round_up(input_size, 128)           # lane-aligned layer-0 input
        self.Dstack = max(self.Dp, self.Hp)            # uniform W_ih row count

        bound = 1.0 / (hidden_size ** 0.5)
        self.raw_params = []    # PyTorch-layout params (kept for the reference)
        wih_list, whh_list, bias_list = [], [], []
        h, hp = hidden_size, self.Hp
        for layer in range(num_layers):
            d_in = input_size if layer == 0 else hidden_size
            key, k1, k2, k3, k4 = jax.random.split(key, 5)
            # PyTorch gate order [i, f, g, o]; init uniform(-1/sqrt(H), 1/sqrt(H)).
            w_ih = jax.random.uniform(k1, (4 * hidden_size, d_in),
                                      jnp.float32, -bound, bound)
            w_hh = jax.random.uniform(k2, (4 * hidden_size, hidden_size),
                                      jnp.float32, -bound, bound)
            b_ih = jax.random.uniform(k3, (4 * hidden_size,),
                                      jnp.float32, -bound, bound)
            b_hh = jax.random.uniform(k4, (4 * hidden_size,),
                                      jnp.float32, -bound, bound)
            self.raw_params.append((w_ih, w_hh, b_ih, b_hh))

            # Pack for the kernel: reorder gates to [i,f,o,g], transpose,
            # lane-pad each gate block to Hp, zero-pad input rows to Dstack/Hp.
            w_ih_t = _pad_gate_blocks(_reorder_gates(w_ih, axis=0).T, h, hp)
            w_ih_t = jnp.pad(w_ih_t, ((0, self.Dstack - d_in), (0, 0)))
            w_hh_t = _pad_gate_blocks(_reorder_gates(w_hh, axis=0).T, h, hp)
            w_hh_t = jnp.pad(w_hh_t, ((0, hp - h), (0, 0)))
            b_sum = _pad_gate_blocks(
                _reorder_gates(b_ih + b_hh, axis=0)[None, :], h, hp)
            wih_list.append(w_ih_t)
            whh_list.append(w_hh_t)
            bias_list.append(b_sum)

        self.w_ih_t = jnp.stack(wih_list)     # (L, Dstack, 4*Hp)
        self.w_hh_t = jnp.stack(whh_list)     # (L, Hp, 4*Hp)
        self.bias = jnp.stack(bias_list)      # (L, 1, 4*Hp)

    def __call__(self, attention_model_output, hidden, embedded_vector):
        # torch.cat((attention_model_output, embedded_vector), 0): seq-axis concat.
        cat = jnp.concatenate((attention_model_output, embedded_vector), axis=0)
        h0, c0 = hidden
        t, b, d_in = cat.shape
        h, hp, d_p = self.hidden_size, self.Hp, self.Dp
        b_p = _round_up(b, 8)                 # sublane-aligned batch

        x_p = jnp.pad(cat, ((0, 0), (0, b_p - b), (0, d_p - d_in)))
        x_flat = x_p.reshape(t * b_p, d_p)
        h0_p = jnp.pad(h0, ((0, 0), (0, b_p - b), (0, hp - h)))
        c0_p = jnp.pad(c0, ((0, 0), (0, b_p - b), (0, hp - h)))

        y_flat, hn_p, cn_p = lstm_stack_forward(
            x_flat, self.w_ih_t, self.w_hh_t, self.bias, h0_p, c0_p)

        y = y_flat.reshape(t, b_p, hp)[:, :b, :h]
        return y, (hn_p[:, :b, :h], cn_p[:, :b, :h])


def _lstm_reference(cat, hidden, raw_params):
    """Pure-JAX reference (lax.scan) replicating nn.LSTM on raw PyTorch params."""
    h0, c0 = hidden
    h_dim = h0.shape[-1]
    x = cat
    h_n, c_n = [], []
    for layer, (w_ih, w_hh, b_ih, b_hh) in enumerate(raw_params):
        def step(carry, x_t, w_ih=w_ih, w_hh=w_hh, b=b_ih + b_hh):
            hh, cc = carry
            gates = x_t @ w_ih.T + hh @ w_hh.T + b
            i = jax.nn.sigmoid(gates[:, 0 * h_dim:1 * h_dim])
            f = jax.nn.sigmoid(gates[:, 1 * h_dim:2 * h_dim])
            g = jnp.tanh(gates[:, 2 * h_dim:3 * h_dim])
            o = jax.nn.sigmoid(gates[:, 3 * h_dim:4 * h_dim])
            c_new = f * cc + i * g
            h_new = o * jnp.tanh(c_new)
            return (h_new, c_new), h_new

        (h_l, c_l), y = jax.lax.scan(step, (h0[layer], c0[layer]), x)
        h_n.append(h_l)
        c_n.append(c_l)
        x = y
    return x, (jnp.stack(h_n), jnp.stack(c_n))


if __name__ == "__main__":
    input_size, hidden_size, num_layers = 16, 32, 2
    batch = 2
    seq_attn, seq_emb = 5, 3  # concatenated along axis 0 -> T = 8

    key = jax.random.PRNGKey(0)
    key, k_mod, k_a, k_e, k_h, k_c = jax.random.split(key, 6)

    model = LSTMStackPallas(input_size, hidden_size, num_layers, k_mod)

    attention_model_output = jax.random.normal(
        k_a, (seq_attn, batch, input_size), jnp.float32)
    embedded_vector = jax.random.normal(
        k_e, (seq_emb, batch, input_size), jnp.float32)
    h0 = jax.random.normal(k_h, (num_layers, batch, hidden_size), jnp.float32)
    c0 = jax.random.normal(k_c, (num_layers, batch, hidden_size), jnp.float32)

    out, (h_n, c_n) = model(attention_model_output, (h0, c0), embedded_vector)
    jax.block_until_ready((out, h_n, c_n))

    # Correctness check vs. a pure-JAX reference on the raw (PyTorch-layout)
    # params — also validates the gate reorder and the B/H/D padding.
    cat = jnp.concatenate((attention_model_output, embedded_vector), axis=0)
    ref_y, (ref_h, ref_c) = _lstm_reference(cat, (h0, c0), model.raw_params)

    assert out.shape == (seq_attn + seq_emb, batch, hidden_size)
    assert h_n.shape == (num_layers, batch, hidden_size)
    assert c_n.shape == (num_layers, batch, hidden_size)
    assert jnp.allclose(out, ref_y, atol=1e-4, rtol=1e-4)
    assert jnp.allclose(h_n, ref_h, atol=1e-4, rtol=1e-4)
    assert jnp.allclose(c_n, ref_c, atol=1e-4, rtol=1e-4)

    print("KERNEL_OK")
</pallas_src>

<mosaic_0001>
module attributes {stable_mosaic.version = 11 : i64} {
  func.func @_lstm_stack_kernel(%arg0: memref<64x128xf32, #tpu.memory_space<vmem>>, %arg1: memref<2x128x512xf32, #tpu.memory_space<vmem>>, %arg2: memref<2x128x512xf32, #tpu.memory_space<vmem>>, %arg3: memref<2x1x512xf32, #tpu.memory_space<vmem>>, %arg4: memref<2x8x128xf32, #tpu.memory_space<vmem>>, %arg5: memref<2x8x128xf32, #tpu.memory_space<vmem>>, %arg6: memref<64x128xf32, #tpu.memory_space<vmem>>, %arg7: memref<2x8x128xf32, #tpu.memory_space<vmem>>, %arg8: memref<2x8x128xf32, #tpu.memory_space<vmem>>, %arg9: memref<64x512xf32, #tpu.memory_space<vmem>>) attributes {dimension_semantics = [], scalar_prefetch = 0 : i64, scratch_operands = 1 : i64, tpu.core_type = #tpu.core_type<tc>} {
    %c0 = arith.constant 0 : index
    %c0_0 = arith.constant 0 : index
    %0 = vector.load %arg0[%c0, %c0_0] : memref<64x128xf32, #tpu.memory_space<vmem>>, vector<64x128xf32>
    %c0_1 = arith.constant 0 : index
    %c0_2 = arith.constant 0 : index
    %c0_3 = arith.constant 0 : index
    %1 = vector.load %arg1[%c0_1, %c0_2, %c0_3] : memref<2x128x512xf32, #tpu.memory_space<vmem>>, vector<1x128x512xf32>
    %2 = vector.shape_cast %1 : vector<1x128x512xf32> to vector<128x512xf32>
    %cst = arith.constant dense<0.000000e+00> : vector<64x512xf32>
    %3 = tpu.matmul %0, %2, %cst {dimension_numbers = #tpu.dot_dimension_numbers<[1], [0], [0], [1], [0, 0, 1, 1], [], []>} : vector<64x128xf32>, vector<128x512xf32>, vector<64x512xf32> -> vector<64x512xf32>
    %c0_4 = arith.constant 0 : index
    %c0_5 = arith.constant 0 : index
    %c0_6 = arith.constant 0 : index
    %4 = vector.load %arg3[%c0_4, %c0_5, %c0_6] : memref<2x1x512xf32, #tpu.memory_space<vmem>>, vector<1x1x512xf32>
    %5 = vector.shape_cast %4 : vector<1x1x512xf32> to vector<1x512xf32>
    %6 = vector.broadcast %5 : vector<1x512xf32> to vector<64x512xf32>
    %7 = arith.addf %3, %6 : vector<64x512xf32>
    %c0_7 = arith.constant 0 : index
    %c0_8 = arith.constant 0 : index
    %8 = vector.load %arg9[%c0_7, %c0_8] : memref<64x512xf32, #tpu.memory_space<vmem>>, vector<64x512xf32>
    tpu.vector_store %arg9[%c0_7, %c0_8], %7 {strides = array<i32>} : memref<64x512xf32, #tpu.memory_space<vmem>>, vector<64x512xf32>,
    %c0_9 = arith.constant 0 : index
    %c0_10 = arith.constant 0 : index
    %c0_11 = arith.constant 0 : index
    %9 = vector.load %arg2[%c0_9, %c0_10, %c0_11] : memref<2x128x512xf32, #tpu.memory_space<vmem>>, vector<1x128x512xf32>
    %10 = vector.shape_cast %9 : vector<1x128x512xf32> to vector<128x512xf32>
    %c0_12 = arith.constant 0 : index
    %c0_13 = arith.constant 0 : index
    %c0_14 = arith.constant 0 : index
    %11 = vector.load %arg4[%c0_12, %c0_13, %c0_14] : memref<2x8x128xf32, #tpu.memory_space<vmem>>, vector<1x8x128xf32>
    %12 = vector.shape_cast %11 : vector<1x8x128xf32> to vector<8x128xf32>
    %c0_15 = arith.constant 0 : index
    %c0_16 = arith.constant 0 : index
    %c0_17 = arith.constant 0 : index
    %13 = vector.load %arg5[%c0_15, %c0_16, %c0_17] : memref<2x8x128xf32, #tpu.memory_space<vmem>>, vector<1x8x128xf32>
    %14 = vector.shape_cast %13 : vector<1x8x128xf32> to vector<8x128xf32>
    %c0_i32 = arith.constant 0 : i32
    %c8_i32 = arith.constant 8 : i32
    %15 = arith.muli %c0_i32, %c8_i32 : i32
    %16 = tpu.assume_multiple %15, 8 : i32
    %17 = arith.index_cast %16 : i32 to index
    %c0_18 = arith.constant 0 : index
    %18 = vector.load %arg9[%17, %c0_18] : memref<64x512xf32, #tpu.memory_space<vmem>>, vector<8x512xf32>
    %cst_19 = arith.constant dense<0.000000e+00> : vector<8x512xf32>
    %19 = tpu.matmul %12, %10, %cst_19 {dimension_numbers = #tpu.dot_dimension_numbers<[1], [0], [0], [1], [0, 0, 1, 1], [], []>} : vector<8x128xf32>, vector<128x512xf32>, vector<8x512xf32> -> vector<8x512xf32>
    %20 = arith.addf %18, %19 : vector<8x512xf32>
    %21 = vector.extract_strided_slice %20 {offsets = [0, 0], sizes = [8, 384], strides = [1, 1]} : vector<8x512xf32> to vector<8x384xf32>
    %22 = arith.negf %21 : vector<8x384xf32>
    %23 = math.exp %22 : vector<8x384xf32>
    %cst_20 = arith.constant 1.000000e+00 : f32
    %24 = vector.broadcast %cst_20 : f32 to vector<8x384xf32>
    %25 = arith.addf %24, %23 : vector<8x384xf32>
    %26 = arith.divf %24, %25 : vector<8x384xf32>
    %27 = vector.extract_strided_slice %26 {offsets = [0, 0], sizes = [8, 128], strides = [1, 1]} : vector<8x384xf32> to vector<8x128xf32>
    %28 = vector.extract_strided_slice %26 {offsets = [0, 128], sizes = [8, 128], strides = [1, 1]} : vector<8x384xf32> to vector<8x128xf32>
    %29 = vector.extract_strided_slice %26 {offsets = [0, 256], sizes = [8, 128], strides = [1, 1]} : vector<8x384xf32> to vector<8x128xf32>
    %30 = vector.extract_strided_slice %20 {offsets = [0, 384], sizes = [8, 128], strides = [1, 1]} : vector<8x512xf32> to vector<8x128xf32>
    %31 = math.tanh %30 : vector<8x128xf32>
    %32 = arith.mulf %28, %14 : vector<8x128xf32>
    %33 = arith.mulf %27, %31 : vector<8x128xf32>
    %34 = arith.addf %32, %33 : vector<8x128xf32>
    %35 = math.tanh %34 : vector<8x128xf32>
    %36 = arith.mulf %29, %35 : vector<8x128xf32>
    %37 = arith.index_cast %16 : i32 to index
    %c0_21 = arith.constant 0 : index
    %38 = vector.load %arg6[%37, %c0_21] : memref<64x128xf32, #tpu.memory_space<vmem>>, vector<8x128xf32>
    tpu.vector_store %arg6[%37, %c0_21], %36 {strides = array<i32>} : memref<64x128xf32, #tpu.memory_space<vmem>>, vector<8x128xf32>,
    %c1_i32 = arith.constant 1 : i32
    %c8_i32_22 = arith.constant 8 : i32
    %39 = arith.muli %c1_i32, %c8_i32_22 : i32
    %40 = tpu.assume_multiple %39, 8 : i32
    %41 = arith.index_cast %40 : i32 to index
    %c0_23 = arith.constant 0 : index
    %42 = vector.load %arg9[%41, %c0_23] : memref<64x512xf32, #tpu.memory_space<vmem>>, vector<8x512xf32>
    %cst_24 = arith.constant dense<0.000000e+00> : vector<8x512xf32>
    %43 = tpu.matmul %36, %10, %cst_24 {dimension_numbers = #tpu.dot_dimension_numbers<[1], [0], [0], [1], [0, 0, 1, 1], [], []>} : vector<8x128xf32>, vector<128x512xf32>, vector<8x512xf32> -> vector<8x512xf32>
    %44 = arith.addf %42, %43 : vector<8x512xf32>
    %45 = vector.extract_strided_slice %44 {offsets = [0, 0], sizes = [8, 384], strides = [1, 1]} : vector<8x512xf32> to vector<8x384xf32>
    %46 = arith.negf %45 : vector<8x384xf32>
    %47 = math.exp %46 : vector<8x384xf32>
    %cst_25 = arith.constant 1.000000e+00 : f32
    %48 = vector.broadcast %cst_25 : f32 to vector<8x384xf32>
    %49 = arith.addf %48, %47 : vector<8x384xf32>
    %50 = arith.divf %48, %49 : vector<8x384xf32>
    %51 = vector.extract_strided_slice %50 {offsets = [0, 0], sizes = [8, 128], strides = [1, 1]} : vector<8x384xf32> to vector<8x128xf32>
    %52 = vector.extract_strided_slice %50 {offsets = [0, 128], sizes = [8, 128], strides = [1, 1]} : vector<8x384xf32> to vector<8x128xf32>
    %53 = vector.extract_strided_slice %50 {offsets = [0, 256], sizes = [8, 128], strides = [1, 1]} : vector<8x384xf32> to vector<8x128xf32>
    %54 = vector.extract_strided_slice %44 {offsets = [0, 384], sizes = [8, 128], strides = [1, 1]} : vector<8x512xf32> to vector<8x128xf32>
    %55 = math.tanh %54 : vector<8x128xf32>
    %56 = arith.mulf %52, %34 : vector<8x128xf32>
    %57 = arith.mulf %51, %55 : vector<8x128xf32>
    %58 = arith.addf %56, %57 : vector<8x128xf32>
    %59 = math.tanh %58 : vector<8x128xf32>
    %60 = arith.mulf %53, %59 : vector<8x128xf32>
    %61 = arith.index_cast %40 : i32 to index
    %c0_26 = arith.constant 0 : index
    %62 = vector.load %arg6[%61, %c0_26] : memref<64x128xf32, #tpu.memory_space<vmem>>, vector<8x128xf32>
    tpu.vector_store %arg6[%61, %c0_26], %60 {strides = array<i32>} : memref<64x128xf32, #tpu.memory_space<vmem>>, vector<8x128xf32>,
    %c2_i32 = arith.constant 2 : i32
    %c8_i32_27 = arith.constant 8 : i32
    %63 = arith.muli %c2_i32, %c8_i32_27 : i32
    %64 = tpu.assume_multiple %63, 8 : i32
    %65 = arith.index_cast %64 : i32 to index
    %c0_28 = arith.constant 0 : index
    %66 = vector.load %arg9[%65, %c0_28] : memref<64x512xf32, #tpu.memory_space<vmem>>, vector<8x512xf32>
    %cst_29 = arith.constant dense<0.000000e+00> : vector<8x512xf32>
    %67 = tpu.matmul %60, %10, %cst_29 {dimension_numbers = #tpu.dot_dimension_numbers<[1], [0], [0], [1], [0, 0, 1, 1], [], []>} : vector<8x128xf32>, vector<128x512xf32>, vector<8x512xf32> -> vector<8x512xf32>
    %68 = arith.addf %66, %67 : vector<8x512xf32>
    %69 = vector.extract_strided_slice %68 {offsets = [0, 0], sizes = [8, 384], strides = [1, 1]} : vector<8x512xf32> to vector<8x384xf32>
    %70 = arith.negf %69 : vector<8x384xf32>
    %71 = math.exp %70 : vector<8x384xf32>
    %cst_30 = arith.constant 1.000000e+00 : f32
    %72 = vector.broadcast %cst_30 : f32 to vector<8x384xf32>
    %73 = arith.addf %72, %71 : vector<8x384xf32>
    %74 = arith.divf %72, %73 : vector<8x384xf32>
    %75 = vector.extract_strided_slice %74 {offsets = [0, 0], sizes = [8, 128], strides = [1, 1]} : vector<8x384xf32> to vector<8x128xf32>
    %76 = vector.extract_strided_slice %74 {offsets = [0, 128], sizes = [8, 128], strides = [1, 1]} : vector<8x384xf32> to vector<8x128xf32>
    %77 = vector.extract_strided_slice %74 {offsets = [0, 256], sizes = [8, 128], strides = [1, 1]} : vector<8x384xf32> to vector<8x128xf32>
    %78 = vector.extract_strided_slice %68 {offsets = [0, 384], sizes = [8, 128], strides = [1, 1]} : vector<8x512xf32> to vector<8x128xf32>
    %79 = math.tanh %78 : vector<8x128xf32>
    %80 = arith.mulf %76, %58 : vector<8x128xf32>
    %81 = arith.mulf %75, %79 : vector<8x128xf32>
    %82 = arith.addf %80, %81 : vector<8x128xf32>
    %83 = math.tanh %82 : vector<8x128xf32>
    %84 = arith.mulf %77, %83 : vector<8x128xf32>
    %85 = arith.index_cast %64 : i32 to index
    %c0_31 = arith.constant 0 : index
    %86 = vector.load %arg6[%85, %c0_31] : memref<64x128xf32, #tpu.memory_space<vmem>>, vector<8x128xf32>
    tpu.vector_store %arg6[%85, %c0_31], %84 {strides = array<i32>} : memref<64x128xf32, #tpu.memory_space<vmem>>, vector<8x128xf32>,
    %c3_i32 = arith.constant 3 : i32
    %c8_i32_32 = arith.constant 8 : i32
    %87 = arith.muli %c3_i32, %c8_i32_32 : i32
    %88 = tpu.assume_multiple %87, 8 : i32
    %89 = arith.index_cast %88 : i32 to index
    %c0_33 = arith.constant 0 : index
    %90 = vector.load %arg9[%89, %c0_33] : memref<64x512xf32, #tpu.memory_space<vmem>>, vector<8x512xf32>
    %cst_34 = arith.constant dense<0.000000e+00> : vector<8x512xf32>
    %91 = tpu.matmul %84, %10, %cst_34 {dimension_numbers = #tpu.dot_dimension_numbers<[1], [0], [0], [1], [0, 0, 1, 1], [], []>} : vector<8x128xf32>, vector<128x512xf32>, vector<8x512xf32> -> vector<8x512xf32>
    %92 = arith.addf %90, %91 : vector<8x512xf32>
    %93 = vector.extract_strided_slice %92 {offsets = [0, 0], sizes = [8, 384], strides = [1, 1]} : vector<8x512xf32> to vector<8x384xf32>
    %94 = arith.negf %93 : vector<8x384xf32>
    %95 = math.exp %94 : vector<8x384xf32>
    %cst_35 = arith.constant 1.000000e+00 : f32
    %96 = vector.broadcast %cst_35 : f32 to vector<8x384xf32>
    %97 = arith.addf %96, %95 : vector<8x384xf32>
    %98 = arith.divf %96, %97 : vector<8x384xf32>
    %99 = vector.extract_strided_slice %98 {offsets = [0, 0], sizes = [8, 128], strides = [1, 1]} : vector<8x384xf32> to vector<8x128xf32>
    %100 = vector.extract_strided_slice %98 {offsets = [0, 128], sizes = [8, 128], strides = [1, 1]} : vector<8x384xf32> to vector<8x128xf32>
    %101 = vector.extract_strided_slice %98 {offsets = [0, 256], sizes = [8, 128], strides = [1, 1]} : vector<8x384xf32> to vector<8x128xf32>
    %102 = vector.extract_strided_slice %92 {offsets = [0, 384], sizes = [8, 128], strides = [1, 1]} : vector<8x512xf32> to vector<8x128xf32>
    %103 = math.tanh %102 : vector<8x128xf32>
    %104 = arith.mulf %100, %82 : vector<8x128xf32>
    %105 = arith.mulf %99, %103 : vector<8x128xf32>
    %106 = arith.addf %104, %105 : vector<8x128xf32>
    %107 = math.tanh %106 : vector<8x128xf32>
    %108 = arith.mulf %101, %107 : vector<8x128xf32>
    %109 = arith.index_cast %88 : i32 to index
    %c0_36 = arith.constant 0 : index
    %110 = vector.load %arg6[%109, %c0_36] : memref<64x128xf32, #tpu.memory_space<vmem>>, vector<8x128xf32>
    tpu.vector_store %arg6[%109, %c0_36], %108 {strides = array<i32>} : memref<64x128xf32, #tpu.memory_space<vmem>>, vector<8x128xf32>,
    %c4_i32 = arith.constant 4 : i32
    %c8_i32_37 = arith.constant 8 : i32
    %111 = arith.muli %c4_i32, %c8_i32_37 : i32
    %112 = tpu.assume_multiple %111, 8 : i32
    %113 = arith.index_cast %112 : i32 to index
    %c0_38 = arith.constant 0 : index
    %114 = vector.load %arg9[%113, %c0_38] : memref<64x512xf32, #tpu.memory_space<vmem>>, vector<8x512xf32>
    %cst_39 = arith.constant dense<0.000000e+00> : vector<8x512xf32>
    %115 = tpu.matmul %108, %10, %cst_39 {dimension_numbers = #tpu.dot_dimension_numbers<[1], [0], [0], [1], [0, 0, 1, 1], [], []>} : vector<8x128xf32>, vector<128x512xf32>, vector<8x512xf32> -> vector<8x512xf32>
    %116 = arith.addf %114, %115 : vector<8x512xf32>
    %117 = vector.extract_strided_slice %116 {offsets = [0, 0], sizes = [8, 384], strides = [1, 1]} : vector<8x512xf32> to vector<8x384xf32>
    %118 = arith.negf %117 : vector<8x384xf32>
    %119 = math.exp %118 : vector<8x384xf32>
    %cst_40 = arith.constant 1.000000e+00 : f32
    %120 = vector.broadcast %cst_40 : f32 to vector<8x384xf32>
    %121 = arith.addf %120, %119 : vector<8x384xf32>
    %122 = arith.divf %120, %121 : vector<8x384xf32>
    %123 = vector.extract_strided_slice %122 {offsets = [0, 0], sizes = [8, 128], strides = [1, 1]} : vector<8x384xf32> to vector<8x128xf32>
    %124 = vector.extract_strided_slice %122 {offsets = [0, 128], sizes = [8, 128], strides = [1, 1]} : vector<8x384xf32> to vector<8x128xf32>
    %125 = vector.extract_strided_slice %122 {offsets = [0, 256], sizes = [8, 128], strides = [1, 1]} : vector<8x384xf32> to vector<8x128xf32>
    %126 = vector.extract_strided_slice %116 {offsets = [0, 384], sizes = [8, 128], strides = [1, 1]} : vector<8x512xf32> to vector<8x128xf32>
    %127 = math.tanh %126 : vector<8x128xf32>
    %128 = arith.mulf %124, %106 : vector<8x128xf32>
    %129 = arith.mulf %123, %127 : vector<8x128xf32>
    %130 = arith.addf %128, %129 : vector<8x128xf32>
    %131 = math.tanh %130 : vector<8x128xf32>
    %132 = arith.mulf %125, %131 : vector<8x128xf32>
    %133 = arith.index_cast %112 : i32 to index
    %c0_41 = arith.constant 0 : index
    %134 = vector.load %arg6[%133, %c0_41] : memref<64x128xf32, #tpu.memory_space<vmem>>, vector<8x128xf32>
    tpu.vector_store %arg6[%133, %c0_41], %132 {strides = array<i32>} : memref<64x128xf32, #tpu.memory_space<vmem>>, vector<8x128xf32>,
    %c5_i32 = arith.constant 5 : i32
    %c8_i32_42 = arith.constant 8 : i32
    %135 = arith.muli %c5_i32, %c8_i32_42 : i32
    %136 = tpu.assume_multiple %135, 8 : i32
    %137 = arith.index_cast %136 : i32 to index
    %c0_43 = arith.constant 0 : index
    %138 = vector.load %arg9[%137, %c0_43] : memref<64x512xf32, #tpu.memory_space<vmem>>, vector<8x512xf32>
    %cst_44 = arith.constant dense<0.000000e+00> : vector<8x512xf32>
    %139 = tpu.matmul %132, %10, %cst_44 {dimension_numbers = #tpu.dot_dimension_numbers<[1], [0], [0], [1], [0, 0, 1, 1], [], []>} : vector<8x128xf32>, vector<128x512xf32>, vector<8x512xf32> -> vector<8x512xf32>
    %140 = arith.addf %138, %139 : vector<8x512xf32>
    %141 = vector.extract_strided_slice %140 {offsets = [0, 0], sizes = [8, 384], strides = [1, 1]} : vector<8x512xf32> to vector<8x384xf32>
    %142 = arith.negf %141 : vector<8x384xf32>
    %143 = math.exp %142 : vector<8x384xf32>
    %cst_45 = arith.constant 1.000000e+00 : f32
    %144 = vector.broadcast %cst_45 : f32 to vector<8x384xf32>
    %145 = arith.addf %144, %143 : vector<8x384xf32>
    %146 = arith.divf %144, %145 : vector<8x384xf32>
    %147 = vector.extract_strided_slice %146 {offsets = [0, 0], sizes = [8, 128], strides = [1, 1]} : vector<8x384xf32> to vector<8x128xf32>
    %148 = vector.extract_strided_slice %146 {offsets = [0, 128], sizes = [8, 128], strides = [1, 1]} : vector<8x384xf32> to vector<8x128xf32>
    %149 = vector.extract_strided_slice %146 {offsets = [0, 256], sizes = [8, 128], strides = [1, 1]} : vector<8x384xf32> to vector<8x128xf32>
    %150 = vector.extract_strided_slice %140 {offsets = [0, 384], sizes = [8, 128], strides = [1, 1]} : vector<8x512xf32> to vector<8x128xf32>
    %151 = math.tanh %150 : vector<8x128xf32>
    %152 = arith.mulf %148, %130 : vector<8x128xf32>
    %153 = arith.mulf %147, %151 : vector<8x128xf32>
    %154 = arith.addf %152, %153 : vector<8x128xf32>
    %155 = math.tanh %154 : vector<8x128xf32>
    %156 = arith.mulf %149, %155 : vector<8x128xf32>
    %157 = arith.index_cast %136 : i32 to index
    %c0_46 = arith.constant 0 : index
    %158 = vector.load %arg6[%157, %c0_46] : memref<64x128xf32, #tpu.memory_space<vmem>>, vector<8x128xf32>
    tpu.vector_store %arg6[%157, %c0_46], %156 {strides = array<i32>} : memref<64x128xf32, #tpu.memory_space<vmem>>, vector<8x128xf32>,
    %c6_i32 = arith.constant 6 : i32
    %c8_i32_47 = arith.constant 8 : i32
    %159 = arith.muli %c6_i32, %c8_i32_47 : i32
    %160 = tpu.assume_multiple %159, 8 : i32
    %161 = arith.index_cast %160 : i32 to index
    %c0_48 = arith.constant 0 : index
    %162 = vector.load %arg9[%161, %c0_48] : memref<64x512xf32, #tpu.memory_space<vmem>>, vector<8x512xf32>
    %cst_49 = arith.constant dense<0.000000e+00> : vector<8x512xf32>
    %163 = tpu.matmul %156, %10, %cst_49 {dimension_numbers = #tpu.dot_dimension_numbers<[1], [0], [0], [1], [0, 0, 1, 1], [], []>} : vector<8x128xf32>, vector<128x512xf32>, vector<8x512xf32> -> vector<8x512xf32>
    %164 = arith.addf %162, %163 : vector<8x512xf32>
    %165 = vector.extract_strided_slice %164 {offsets = [0, 0], sizes = [8, 384], strides = [1, 1]} : vector<8x512xf32> to vector<8x384xf32>
    %166 = arith.negf %165 : vector<8x384xf32>
    %167 = math.exp %166 : vector<8x384xf32>
    %cst_50 = arith.constant 1.000000e+00 : f32
    %168 = vector.broadcast %cst_50 : f32 to vector<8x384xf32>
    %169 = arith.addf %168, %167 : vector<8x384xf32>
    %170 = arith.divf %168, %169 : vector<8x384xf32>
    %171 = vector.extract_strided_slice %170 {offsets = [0, 0], sizes = [8, 128], strides = [1, 1]} : vector<8x384xf32> to vector<8x128xf32>
    %172 = vector.extract_strided_slice %170 {offsets = [0, 128], sizes = [8, 128], strides = [1, 1]} : vector<8x384xf32> to vector<8x128xf32>
    %173 = vector.extract_strided_slice %170 {offsets = [0, 256], sizes = [8, 128], strides = [1, 1]} : vector<8x384xf32> to vector<8x128xf32>
    %174 = vector.extract_strided_slice %164 {offsets = [0, 384], sizes = [8, 128], strides = [1, 1]} : vector<8x512xf32> to vector<8x128xf32>
    %175 = math.tanh %174 : vector<8x128xf32>
    %176 = arith.mulf %172, %154 : vector<8x128xf32>
    %177 = arith.mulf %171, %175 : vector<8x128xf32>
    %178 = arith.addf %176, %177 : vector<8x128xf32>
    %179 = math.tanh %178 : vector<8x128xf32>
    %180 = arith.mulf %173, %179 : vector<8x128xf32>
    %181 = arith.index_cast %160 : i32 to index
    %c0_51 = arith.constant 0 : index
    %182 = vector.load %arg6[%181, %c0_51] : memref<64x128xf32, #tpu.memory_space<vmem>>, vector<8x128xf32>
    tpu.vector_store %arg6[%181, %c0_51], %180 {strides = array<i32>} : memref<64x128xf32, #tpu.memory_space<vmem>>, vector<8x128xf32>,
    %c7_i32 = arith.constant 7 : i32
    %c8_i32_52 = arith.constant 8 : i32
    %183 = arith.muli %c7_i32, %c8_i32_52 : i32
    %184 = tpu.assume_multiple %183, 8 : i32
    %185 = arith.index_cast %184 : i32 to index
    %c0_53 = arith.constant 0 : index
    %186 = vector.load %arg9[%185, %c0_53] : memref<64x512xf32, #tpu.memory_space<vmem>>, vector<8x512xf32>
    %cst_54 = arith.constant dense<0.000000e+00> : vector<8x512xf32>
    %187 = tpu.matmul %180, %10, %cst_54 {dimension_numbers = #tpu.dot_dimension_numbers<[1], [0], [0], [1], [0, 0, 1, 1], [], []>} : vector<8x128xf32>, vector<128x512xf32>, vector<8x512xf32> -> vector<8x512xf32>
    %188 = arith.addf %186, %187 : vector<8x512xf32>
    %189 = vector.extract_strided_slice %188 {offsets = [0, 0], sizes = [8, 384], strides = [1, 1]} : vector<8x512xf32> to vector<8x384xf32>
    %190 = arith.negf %189 : vector<8x384xf32>
    %191 = math.exp %190 : vector<8x384xf32>
    %cst_55 = arith.constant 1.000000e+00 : f32
    %192 = vector.broadcast %cst_55 : f32 to vector<8x384xf32>
    %193 = arith.addf %192, %191 : vector<8x384xf32>
    %194 = arith.divf %192, %193 : vector<8x384xf32>
    %195 = vector.extract_strided_slice %194 {offsets = [0, 0], sizes = [8, 128], strides = [1, 1]} : vector<8x384xf32> to vector<8x128xf32>
    %196 = vector.extract_strided_slice %194 {offsets = [0, 128], sizes = [8, 128], strides = [1, 1]} : vector<8x384xf32> to vector<8x128xf32>
    %197 = vector.extract_strided_slice %194 {offsets = [0, 256], sizes = [8, 128], strides = [1, 1]} : vector<8x384xf32> to vector<8x128xf32>
    %198 = vector.extract_strided_slice %188 {offsets = [0, 384], sizes = [8, 128], strides = [1, 1]} : vector<8x512xf32> to vector<8x128xf32>
    %199 = math.tanh %198 : vector<8x128xf32>
    %200 = arith.mulf %196, %178 : vector<8x128xf32>
    %201 = arith.mulf %195, %199 : vector<8x128xf32>
    %202 = arith.addf %200, %201 : vector<8x128xf32>
    %203 = math.tanh %202 : vector<8x128xf32>
    %204 = arith.mulf %197, %203 : vector<8x128xf32>
    %205 = arith.index_cast %184 : i32 to index
    %c0_56 = arith.constant 0 : index
    %206 = vector.load %arg6[%205, %c0_56] : memref<64x128xf32, #tpu.memory_space<vmem>>, vector<8x128xf32>
    tpu.vector_store %arg6[%205, %c0_56], %204 {strides = array<i32>} : memref<64x128xf32, #tpu.memory_space<vmem>>, vector<8x128xf32>,
    %c8_i32_57 = arith.constant 8 : i32
    %c0_58 = arith.constant 0 : index
    %c0_59 = arith.constant 0 : index
    %c0_60 = arith.constant 0 : index
    %207 = vector.load %arg7[%c0_58, %c0_59, %c0_60] : memref<2x8x128xf32, #tpu.memory_space<vmem>>, vector<1x8x128xf32>
    %208 = vector.shape_cast %207 : vector<1x8x128xf32> to vector<8x128xf32>
    %209 = vector.shape_cast %204 : vector<8x128xf32> to vector<1x8x128xf32>
    tpu.vector_store %arg7[%c0_58, %c0_59, %c0_60], %209 {strides = array<i32>} : memref<2x8x128xf32, #tpu.memory_space<vmem>>, vector<1x8x128xf32>,
    %c0_61 = arith.constant 0 : index
    %c0_62 = arith.constant 0 : index
    %c0_63 = arith.constant 0 : index
    %210 = vector.load %arg8[%c0_61, %c0_62, %c0_63] : memref<2x8x128xf32, #tpu.memory_space<vmem>>, vector<1x8x128xf32>
    %211 = vector.shape_cast %210 : vector<1x8x128xf32> to vector<8x128xf32>
    %212 = vector.shape_cast %202 : vector<8x128xf32> to vector<1x8x128xf32>
    tpu.vector_store %arg8[%c0_61, %c0_62, %c0_63], %212 {strides = array<i32>} : memref<2x8x128xf32, #tpu.memory_space<vmem>>, vector<1x8x128xf32>,
    %c0_64 = arith.constant 0 : index
    %c0_65 = arith.constant 0 : index
    %213 = vector.load %arg6[%c0_64, %c0_65] : memref<64x128xf32, #tpu.memory_space<vmem>>, vector<64x128xf32>
    %c1 = arith.constant 1 : index
    %c0_66 = arith.constant 0 : index
    %c0_67 = arith.constant 0 : index
    %214 = vector.load %arg1[%c1, %c0_66, %c0_67] : memref<2x128x512xf32, #tpu.memory_space<vmem>>, vector<1x128x512xf32>
    %215 = vector.shape_cast %214 : vector<1x128x512xf32> to vector<128x512xf32>
    %cst_68 = arith.constant dense<0.000000e+00> : vector<64x512xf32>
    %216 = tpu.matmul %213, %215, %cst_68 {dimension_numbers = #tpu.dot_dimension_numbers<[1], [0], [0], [1], [0, 0, 1, 1], [], []>} : vector<64x128xf32>, vector<128x512xf32>, vector<64x512xf32> -> vector<64x512xf32>
    %c1_69 = arith.constant 1 : index
    %c0_70 = arith.constant 0 : index
    %c0_71 = arith.constant 0 : index
    %217 = vector.load %arg3[%c1_69, %c0_70, %c0_71] : memref<2x1x512xf32, #tpu.memory_space<vmem>>, vector<1x1x512xf32>
    %218 = vector.shape_cast %217 : vector<1x1x512xf32> to vector<1x512xf32>
    %219 = vector.broadcast %218 : vector<1x512xf32> to vector<64x512xf32>
    %220 = arith.addf %216, %219 : vector<64x512xf32>
    %c0_72 = arith.constant 0 : index
    %c0_73 = arith.constant 0 : index
    %221 = vector.load %arg9[%c0_72, %c0_73] : memref<64x512xf32, #tpu.memory_space<vmem>>, vector<64x512xf32>
    tpu.vector_store %arg9[%c0_72, %c0_73], %220 {strides = array<i32>} : memref<64x512xf32, #tpu.memory_space<vmem>>, vector<64x512xf32>,
    %c1_74 = arith.constant 1 : index
    %c0_75 = arith.constant 0 : index
    %c0_76 = arith.constant 0 : index
    %222 = vector.load %arg2[%c1_74, %c0_75, %c0_76] : memref<2x128x512xf32, #tpu.memory_space<vmem>>, vector<1x128x512xf32>
    %223 = vector.shape_cast %222 : vector<1x128x512xf32> to vector<128x512xf32>
    %c1_77 = arith.constant 1 : index
    %c0_78 = arith.constant 0 : index
    %c0_79 = arith.constant 0 : index
    %224 = vector.load %arg4[%c1_77, %c0_78, %c0_79] : memref<2x8x128xf32, #tpu.memory_space<vmem>>, vector<1x8x128xf32>
    %225 = vector.shape_cast %224 : vector<1x8x128xf32> to vector<8x128xf32>
    %c1_80 = arith.constant 1 : index
    %c0_81 = arith.constant 0 : index
    %c0_82 = arith.constant 0 : index
    %226 = vector.load %arg5[%c1_80, %c0_81, %c0_82] : memref<2x8x128xf32, #tpu.memory_space<vmem>>, vector<1x8x128xf32>
    %227 = vector.shape_cast %226 : vector<1x8x128xf32> to vector<8x128xf32>
    %c0_i32_83 = arith.constant 0 : i32
    %c8_i32_84 = arith.constant 8 : i32
    %228 = arith.muli %c0_i32_83, %c8_i32_84 : i32
    %229 = tpu.assume_multiple %228, 8 : i32
    %230 = arith.index_cast %229 : i32 to index
    %c0_85 = arith.constant 0 : index
    %231 = vector.load %arg9[%230, %c0_85] : memref<64x512xf32, #tpu.memory_space<vmem>>, vector<8x512xf32>
    %cst_86 = arith.constant dense<0.000000e+00> : vector<8x512xf32>
    %232 = tpu.matmul %225, %223, %cst_86 {dimension_numbers = #tpu.dot_dimension_numbers<[1], [0], [0], [1], [0, 0, 1, 1], [], []>} : vector<8x128xf32>, vector<128x512xf32>, vector<8x512xf32> -> vector<8x512xf32>
    %233 = arith.addf %231, %232 : vector<8x512xf32>
    %234 = vector.extract_strided_slice %233 {offsets = [0, 0], sizes = [8, 384], strides = [1, 1]} : vector<8x512xf32> to vector<8x384xf32>
    %235 = arith.negf %234 : vector<8x384xf32>
    %236 = math.exp %235 : vector<8x384xf32>
    %cst_87 = arith.constant 1.000000e+00 : f32
    %237 = vector.broadcast %cst_87 : f32 to vector<8x384xf32>
    %238 = arith.addf %237, %236 : vector<8x384xf32>
    %239 = arith.divf %237, %238 : vector<8x384xf32>
    %240 = vector.extract_strided_slice %239 {offsets = [0, 0], sizes = [8, 128], strides = [1, 1]} : vector<8x384xf32> to vector<8x128xf32>
    %241 = vector.extract_strided_slice %239 {offsets = [0, 128], sizes = [8, 128], strides = [1, 1]} : vector<8x384xf32> to vector<8x128xf32>
    %242 = vector.extract_strided_slice %239 {offsets = [0, 256], sizes = [8, 128], strides = [1, 1]} : vector<8x384xf32> to vector<8x128xf32>
    %243 = vector.extract_strided_slice %233 {offsets = [0, 384], sizes = [8, 128], strides = [1, 1]} : vector<8x512xf32> to vector<8x128xf32>
    %244 = math.tanh %243 : vector<8x128xf32>
    %245 = arith.mulf %241, %227 : vector<8x128xf32>
    %246 = arith.mulf %240, %244 : vector<8x128xf32>
    %247 = arith.addf %245, %246 : vector<8x128xf32>
    %248 = math.tanh %247 : vector<8x128xf32>
    %249 = arith.mulf %242, %248 : vector<8x128xf32>
    %250 = arith.index_cast %229 : i32 to index
    %c0_88 = arith.constant 0 : index
    %251 = vector.load %arg6[%250, %c0_88] : memref<64x128xf32, #tpu.memory_space<vmem>>, vector<8x128xf32>
    tpu.vector_store %arg6[%250, %c0_88], %249 {strides = array<i32>} : memref<64x128xf32, #tpu.memory_space<vmem>>, vector<8x128xf32>,
    %c1_i32_89 = arith.constant 1 : i32
    %c8_i32_90 = arith.constant 8 : i32
    %252 = arith.muli %c1_i32_89, %c8_i32_90 : i32
    %253 = tpu.assume_multiple %252, 8 : i32
    %254 = arith.index_cast %253 : i32 to index
    %c0_91 = arith.constant 0 : index
    %255 = vector.load %arg9[%254, %c0_91] : memref<64x512xf32, #tpu.memory_space<vmem>>, vector<8x512xf32>
    %cst_92 = arith.constant dense<0.000000e+00> : vector<8x512xf32>
    %256 = tpu.matmul %249, %223, %cst_92 {dimension_numbers = #tpu.dot_dimension_numbers<[1], [0], [0], [1], [0, 0, 1, 1], [], []>} : vector<8x128xf32>, vector<128x512xf32>, vector<8x512xf32> -> vector<8x512xf32>
    %257 = arith.addf %255, %256 : vector<8x512xf32>
    %258 = vector.extract_strided_slice %257 {offsets = [0, 0], sizes = [8, 384], strides = [1, 1]} : vector<8x512xf32> to vector<8x384xf32>
    %259 = arith.negf %258 : vector<8x384xf32>
    %260 = math.exp %259 : vector<8x384xf32>
    %cst_93 = arith.constant 1.000000e+00 : f32
    %261 = vector.broadcast %cst_93 : f32 to vector<8x384xf32>
    %262 = arith.addf %261, %260 : vector<8x384xf32>
    %263 = arith.divf %261, %262 : vector<8x384xf32>
    %264 = vector.extract_strided_slice %263 {offsets = [0, 0], sizes = [8, 128], strides = [1, 1]} : vector<8x384xf32> to vector<8x128xf32>
    %265 = vector.extract_strided_slice %263 {offsets = [0, 128], sizes = [8, 128], strides = [1, 1]} : vector<8x384xf32> to vector<8x128xf32>
    %266 = vector.extract_strided_slice %263 {offsets = [0, 256], sizes = [8, 128], strides = [1, 1]} : vector<8x384xf32> to vector<8x128xf32>
    %267 = vector.extract_strided_slice %257 {offsets = [0, 384], sizes = [8, 128], strides = [1, 1]} : vector<8x512xf32> to vector<8x128xf32>
    %268 = math.tanh %267 : vector<8x128xf32>
    %269 = arith.mulf %265, %247 : vector<8x128xf32>
    %270 = arith.mulf %264, %268 : vector<8x128xf32>
    %271 = arith.addf %269, %270 : vector<8x128xf32>
    %272 = math.tanh %271 : vector<8x128xf32>
    %273 = arith.mulf %266, %272 : vector<8x128xf32>
    %274 = arith.index_cast %253 : i32 to index
    %c0_94 = arith.constant 0 : index
    %275 = vector.load %arg6[%274, %c0_94] : memref<64x128xf32, #tpu.memory_space<vmem>>, vector<8x128xf32>
    tpu.vector_store %arg6[%274, %c0_94], %273 {strides = array<i32>} : memref<64x128xf32, #tpu.memory_space<vmem>>, vector<8x128xf32>,
    %c2_i32_95 = arith.constant 2 : i32
    %c8_i32_96 = arith.constant 8 : i32
    %276 = arith.muli %c2_i32_95, %c8_i32_96 : i32
    %277 = tpu.assume_multiple %276, 8 : i32
    %278 = arith.index_cast %277 : i32 to index
    %c0_97 = arith.constant 0 : index
    %279 = vector.load %arg9[%278, %c0_97] : memref<64x512xf32, #tpu.memory_space<vmem>>, vector<8x512xf32>
    %cst_98 = arith.constant dense<0.000000e+00> : vector<8x512xf32>
    %280 = tpu.matmul %273, %223, %cst_98 {dimension_numbers = #tpu.dot_dimension_numbers<[1], [0], [0], [1], [0, 0, 1, 1], [], []>} : vector<8x128xf32>, vector<128x512xf32>, vector<8x512xf32> -> vector<8x512xf32>
    %281 = arith.addf %279, %280 : vector<8x512xf32>
    %282 = vector.extract_strided_slice %281 {offsets = [0, 0], sizes = [8, 384], strides = [1, 1]} : vector<8x512xf32> to vector<8x384xf32>
    %283 = arith.negf %282 : vector<8x384xf32>
    %284 = math.exp %283 : vector<8x384xf32>
    %cst_99 = arith.constant 1.000000e+00 : f32
    %285 = vector.broadcast %cst_99 : f32 to vector<8x384xf32>
    %286 = arith.addf %285, %284 : vector<8x384xf32>
    %287 = arith.divf %285, %286 : vector<8x384xf32>
    %288 = vector.extract_strided_slice %287 {offsets = [0, 0], sizes = [8, 128], strides = [1, 1]} : vector<8x384xf32> to vector<8x128xf32>
    %289 = vector.extract_strided_slice %287 {offsets = [0, 128], sizes = [8, 128], strides = [1, 1]} : vector<8x384xf32> to vector<8x128xf32>
    %290 = vector.extract_strided_slice %287 {offsets = [0, 256], sizes = [8, 128], strides = [1, 1]} : vector<8x384xf32> to vector<8x128xf32>
    %291 = vector.extract_strided_slice %281 {offsets = [0, 384], sizes = [8, 128], strides = [1, 1]} : vector<8x512xf32> to vector<8x128xf32>
    %292 = math.tanh %291 : vector<8x128xf32>
    %293 = arith.mulf %289, %271 : vector<8x128xf32>
    %294 = arith.mulf %288, %292 : vector<8x128xf32>
    %295 = arith.addf %293, %294 : vector<8x128xf32>
    %296 = math.tanh %295 : vector<8x128xf32>
    %297 = arith.mulf %290, %296 : vector<8x128xf32>
    %298 = arith.index_cast %277 : i32 to index
    %c0_100 = arith.constant 0 : index
    %299 = vector.load %arg6[%298, %c0_100] : memref<64x128xf32, #tpu.memory_space<vmem>>, vector<8x128xf32>
    tpu.vector_store %arg6[%298, %c0_100], %297 {strides = array<i32>} : memref<64x128xf32, #tpu.memory_space<vmem>>, vector<8x128xf32>,
    %c3_i32_101 = arith.constant 3 : i32
    %c8_i32_102 = arith.constant 8 : i32
    %300 = arith.muli %c3_i32_101, %c8_i32_102 : i32
    %301 = tpu.assume_multiple %300, 8 : i32
    %302 = arith.index_cast %301 : i32 to index
    %c0_103 = arith.constant 0 : index
    %303 = vector.load %arg9[%302, %c0_103] : memref<64x512xf32, #tpu.memory_space<vmem>>, vector<8x512xf32>
    %cst_104 = arith.constant dense<0.000000e+00> : vector<8x512xf32>
    %304 = tpu.matmul %297, %223, %cst_104 {dimension_numbers = #tpu.dot_dimension_numbers<[1], [0], [0], [1], [0, 0, 1, 1], [], []>} : vector<8x128xf32>, vector<128x512xf32>, vector<8x512xf32> -> vector<8x512xf32>
    %305 = arith.addf %303, %304 : vector<8x512xf32>
    %306 = vector.extract_strided_slice %305 {offsets = [0, 0], sizes = [8, 384], strides = [1, 1]} : vector<8x512xf32> to vector<8x384xf32>
    %307 = arith.negf %306 : vector<8x384xf32>
    %308 = math.exp %307 : vector<8x384xf32>
    %cst_105 = arith.constant 1.000000e+00 : f32
    %309 = vector.broadcast %cst_105 : f32 to vector<8x384xf32>
    %310 = arith.addf %309, %308 : vector<8x384xf32>
    %311 = arith.divf %309, %310 : vector<8x384xf32>
    %312 = vector.extract_strided_slice %311 {offsets = [0, 0], sizes = [8, 128], strides = [1, 1]} : vector<8x384xf32> to vector<8x128xf32>
    %313 = vector.extract_strided_slice %311 {offsets = [0, 128], sizes = [8, 128], strides = [1, 1]} : vector<8x384xf32> to vector<8x128xf32>
    %314 = vector.extract_strided_slice %311 {offsets = [0, 256], sizes = [8, 128], strides = [1, 1]} : vector<8x384xf32> to vector<8x128xf32>
    %315 = vector.extract_strided_slice %305 {offsets = [0, 384], sizes = [8, 128], strides = [1, 1]} : vector<8x512xf32> to vector<8x128xf32>
    %316 = math.tanh %315 : vector<8x128xf32>
    %317 = arith.mulf %313, %295 : vector<8x128xf32>
    %318 = arith.mulf %312, %316 : vector<8x128xf32>
    %319 = arith.addf %317, %318 : vector<8x128xf32>
    %320 = math.tanh %319 : vector<8x128xf32>
    %321 = arith.mulf %314, %320 : vector<8x128xf32>
    %322 = arith.index_cast %301 : i32 to index
    %c0_106 = arith.constant 0 : index
    %323 = vector.load %arg6[%322, %c0_106] : memref<64x128xf32, #tpu.memory_space<vmem>>, vector<8x128xf32>
    tpu.vector_store %arg6[%322, %c0_106], %321 {strides = array<i32>} : memref<64x128xf32, #tpu.memory_space<vmem>>, vector<8x128xf32>,
    %c4_i32_107 = arith.constant 4 : i32
    %c8_i32_108 = arith.constant 8 : i32
    %324 = arith.muli %c4_i32_107, %c8_i32_108 : i32
    %325 = tpu.assume_multiple %324, 8 : i32
    %326 = arith.index_cast %325 : i32 to index
    %c0_109 = arith.constant 0 : index
    %327 = vector.load %arg9[%326, %c0_109] : memref<64x512xf32, #tpu.memory_space<vmem>>, vector<8x512xf32>
    %cst_110 = arith.constant dense<0.000000e+00> : vector<8x512xf32>
    %328 = tpu.matmul %321, %223, %cst_110 {dimension_numbers = #tpu.dot_dimension_numbers<[1], [0], [0], [1], [0, 0, 1, 1], [], []>} : vector<8x128xf32>, vector<128x512xf32>, vector<8x512xf32> -> vector<8x512xf32>
    %329 = arith.addf %327, %328 : vector<8x512xf32>
    %330 = vector.extract_strided_slice %329 {offsets = [0, 0], sizes = [8, 384], strides = [1, 1]} : vector<8x512xf32> to vector<8x384xf32>
    %331 = arith.negf %330 : vector<8x384xf32>
    %332 = math.exp %331 : vector<8x384xf32>
    %cst_111 = arith.constant 1.000000e+00 : f32
    %333 = vector.broadcast %cst_111 : f32 to vector<8x384xf32>
    %334 = arith.addf %333, %332 : vector<8x384xf32>
    %335 = arith.divf %333, %334 : vector<8x384xf32>
    %336 = vector.extract_strided_slice %335 {offsets = [0, 0], sizes = [8, 128], strides = [1, 1]} : vector<8x384xf32> to vector<8x128xf32>
    %337 = vector.extract_strided_slice %335 {offsets = [0, 128], sizes = [8, 128], strides = [1, 1]} : vector<8x384xf32> to vector<8x128xf32>
    %338 = vector.extract_strided_slice %335 {offsets = [0, 256], sizes = [8, 128], strides = [1, 1]} : vector<8x384xf32> to vector<8x128xf32>
    %339 = vector.extract_strided_slice %329 {offsets = [0, 384], sizes = [8, 128], strides = [1, 1]} : vector<8x512xf32> to vector<8x128xf32>
    %340 = math.tanh %339 : vector<8x128xf32>
    %341 = arith.mulf %337, %319 : vector<8x128xf32>
    %342 = arith.mulf %336, %340 : vector<8x128xf32>
    %343 = arith.addf %341, %342 : vector<8x128xf32>
    %344 = math.tanh %343 : vector<8x128xf32>
    %345 = arith.mulf %338, %344 : vector<8x128xf32>
    %346 = arith.index_cast %325 : i32 to index
    %c0_112 = arith.constant 0 : index
    %347 = vector.load %arg6[%346, %c0_112] : memref<64x128xf32, #tpu.memory_space<vmem>>, vector<8x128xf32>
    tpu.vector_store %arg6[%346, %c0_112], %345 {strides = array<i32>} : memref<64x128xf32, #tpu.memory_space<vmem>>, vector<8x128xf32>,
    %c5_i32_113 = arith.constant 5 : i32
    %c8_i32_114 = arith.constant 8 : i32
    %348 = arith.muli %c5_i32_113, %c8_i32_114 : i32
    %349 = tpu.assume_multiple %348, 8 : i32
    %350 = arith.index_cast %349 : i32 to index
    %c0_115 = arith.constant 0 : index
    %351 = vector.load %arg9[%350, %c0_115] : memref<64x512xf32, #tpu.memory_space<vmem>>, vector<8x512xf32>
    %cst_116 = arith.constant dense<0.000000e+00> : vector<8x512xf32>
    %352 = tpu.matmul %345, %223, %cst_116 {dimension_numbers = #tpu.dot_dimension_numbers<[1], [0], [0], [1], [0, 0, 1, 1], [], []>} : vector<8x128xf32>, vector<128x512xf32>, vector<8x512xf32> -> vector<8x512xf32>
    %353 = arith.addf %351, %352 : vector<8x512xf32>
    %354 = vector.extract_strided_slice %353 {offsets = [0, 0], sizes = [8, 384], strides = [1, 1]} : vector<8x512xf32> to vector<8x384xf32>
    %355 = arith.negf %354 : vector<8x384xf32>
    %356 = math.exp %355 : vector<8x384xf32>
    %cst_117 = arith.constant 1.000000e+00 : f32
    %357 = vector.broadcast %cst_117 : f32 to vector<8x384xf32>
    %358 = arith.addf %357, %356 : vector<8x384xf32>
    %359 = arith.divf %357, %358 : vector<8x384xf32>
    %360 = vector.extract_strided_slice %359 {offsets = [0, 0], sizes = [8, 128], strides = [1, 1]} : vector<8x384xf32> to vector<8x128xf32>
    %361 = vector.extract_strided_slice %359 {offsets = [0, 128], sizes = [8, 128], strides = [1, 1]} : vector<8x384xf32> to vector<8x128xf32>
    %362 = vector.extract_strided_slice %359 {offsets = [0, 256], sizes = [8, 128], strides = [1, 1]} : vector<8x384xf32> to vector<8x128xf32>
    %363 = vector.extract_strided_slice %353 {offsets = [0, 384], sizes = [8, 128], strides = [1, 1]} : vector<8x512xf32> to vector<8x128xf32>
    %364 = math.tanh %363 : vector<8x128xf32>
    %365 = arith.mulf %361, %343 : vector<8x128xf32>
    %366 = arith.mulf %360, %364 : vector<8x128xf32>
    %367 = arith.addf %365, %366 : vector<8x128xf32>
    %368 = math.tanh %367 : vector<8x128xf32>
    %369 = arith.mulf %362, %368 : vector<8x128xf32>
    %370 = arith.index_cast %349 : i32 to index
    %c0_118 = arith.constant 0 : index
    %371 = vector.load %arg6[%370, %c0_118] : memref<64x128xf32, #tpu.memory_space<vmem>>, vector<8x128xf32>
    tpu.vector_store %arg6[%370, %c0_118], %369 {strides = array<i32>} : memref<64x128xf32, #tpu.memory_space<vmem>>, vector<8x128xf32>,
    %c6_i32_119 = arith.constant 6 : i32
    %c8_i32_120 = arith.constant 8 : i32
    %372 = arith.muli %c6_i32_119, %c8_i32_120 : i32
    %373 = tpu.assume_multiple %372, 8 : i32
    %374 = arith.index_cast %373 : i32 to index
    %c0_121 = arith.constant 0 : index
    %375 = vector.load %arg9[%374, %c0_121] : memref<64x512xf32, #tpu.memory_space<vmem>>, vector<8x512xf32>
    %cst_122 = arith.constant dense<0.000000e+00> : vector<8x512xf32>
    %376 = tpu.matmul %369, %223, %cst_122 {dimension_numbers = #tpu.dot_dimension_numbers<[1], [0], [0], [1], [0, 0, 1, 1], [], []>} : vector<8x128xf32>, vector<128x512xf32>, vector<8x512xf32> -> vector<8x512xf32>
    %377 = arith.addf %375, %376 : vector<8x512xf32>
    %378 = vector.extract_strided_slice %377 {offsets = [0, 0], sizes = [8, 384], strides = [1, 1]} : vector<8x512xf32> to vector<8x384xf32>
    %379 = arith.negf %378 : vector<8x384xf32>
    %380 = math.exp %379 : vector<8x384xf32>
    %cst_123 = arith.constant 1.000000e+00 : f32
    %381 = vector.broadcast %cst_123 : f32 to vector<8x384xf32>
    %382 = arith.addf %381, %380 : vector<8x384xf32>
    %383 = arith.divf %381, %382 : vector<8x384xf32>
    %384 = vector.extract_strided_slice %383 {offsets = [0, 0], sizes = [8, 128], strides = [1, 1]} : vector<8x384xf32> to vector<8x128xf32>
    %385 = vector.extract_strided_slice %383 {offsets = [0, 128], sizes = [8, 128], strides = [1, 1]} : vector<8x384xf32> to vector<8x128xf32>
    %386 = vector.extract_strided_slice %383 {offsets = [0, 256], sizes = [8, 128], strides = [1, 1]} : vector<8x384xf32> to vector<8x128xf32>
    %387 = vector.extract_strided_slice %377 {offsets = [0, 384], sizes = [8, 128], strides = [1, 1]} : vector<8x512xf32> to vector<8x128xf32>
    %388 = math.tanh %387 : vector<8x128xf32>
    %389 = arith.mulf %385, %367 : vector<8x128xf32>
    %390 = arith.mulf %384, %388 : vector<8x128xf32>
    %391 = arith.addf %389, %390 : vector<8x128xf32>
    %392 = math.tanh %391 : vector<8x128xf32>
    %393 = arith.mulf %386, %392 : vector<8x128xf32>
    %394 = arith.index_cast %373 : i32 to index
    %c0_124 = arith.constant 0 : index
    %395 = vector.load %arg6[%394, %c0_124] : memref<64x128xf32, #tpu.memory_space<vmem>>, vector<8x128xf32>
    tpu.vector_store %arg6[%394, %c0_124], %393 {strides = array<i32>} : memref<64x128xf32, #tpu.memory_space<vmem>>, vector<8x128xf32>,
    %c7_i32_125 = arith.constant 7 : i32
    %c8_i32_126 = arith.constant 8 : i32
    %396 = arith.muli %c7_i32_125, %c8_i32_126 : i32
    %397 = tpu.assume_multiple %396, 8 : i32
    %398 = arith.index_cast %397 : i32 to index
    %c0_127 = arith.constant 0 : index
    %399 = vector.load %arg9[%398, %c0_127] : memref<64x512xf32, #tpu.memory_space<vmem>>, vector<8x512xf32>
    %cst_128 = arith.constant dense<0.000000e+00> : vector<8x512xf32>
    %400 = tpu.matmul %393, %223, %cst_128 {dimension_numbers = #tpu.dot_dimension_numbers<[1], [0], [0], [1], [0, 0, 1, 1], [], []>} : vector<8x128xf32>, vector<128x512xf32>, vector<8x512xf32> -> vector<8x512xf32>
    %401 = arith.addf %399, %400 : vector<8x512xf32>
    %402 = vector.extract_strided_slice %401 {offsets = [0, 0], sizes = [8, 384], strides = [1, 1]} : vector<8x512xf32> to vector<8x384xf32>
    %403 = arith.negf %402 : vector<8x384xf32>
    %404 = math.exp %403 : vector<8x384xf32>
    %cst_129 = arith.constant 1.000000e+00 : f32
    %405 = vector.broadcast %cst_129 : f32 to vector<8x384xf32>
    %406 = arith.addf %405, %404 : vector<8x384xf32>
    %407 = arith.divf %405, %406 : vector<8x384xf32>
    %408 = vector.extract_strided_slice %407 {offsets = [0, 0], sizes = [8, 128], strides = [1, 1]} : vector<8x384xf32> to vector<8x128xf32>
    %409 = vector.extract_strided_slice %407 {offsets = [0, 128], sizes = [8, 128], strides = [1, 1]} : vector<8x384xf32> to vector<8x128xf32>
    %410 = vector.extract_strided_slice %407 {offsets = [0, 256], sizes = [8, 128], strides = [1, 1]} : vector<8x384xf32> to vector<8x128xf32>
    %411 = vector.extract_strided_slice %401 {offsets = [0, 384], sizes = [8, 128], strides = [1, 1]} : vector<8x512xf32> to vector<8x128xf32>
    %412 = math.tanh %411 : vector<8x128xf32>
    %413 = arith.mulf %409, %391 : vector<8x128xf32>
    %414 = arith.mulf %408, %412 : vector<8x128xf32>
    %415 = arith.addf %413, %414 : vector<8x128xf32>
    %416 = math.tanh %415 : vector<8x128xf32>
    %417 = arith.mulf %410, %416 : vector<8x128xf32>
    %418 = arith.index_cast %397 : i32 to index
    %c0_130 = arith.constant 0 : index
    %419 = vector.load %arg6[%418, %c0_130] : memref<64x128xf32, #tpu.memory_space<vmem>>, vector<8x128xf32>
    tpu.vector_store %arg6[%418, %c0_130], %417 {strides = array<i32>} : memref<64x128xf32, #tpu.memory_space<vmem>>, vector<8x128xf32>,
    %c8_i32_131 = arith.constant 8 : i32
    %c1_132 = arith.constant 1 : index
    %c0_133 = arith.constant 0 : index
    %c0_134 = arith.constant 0 : index
    %420 = vector.load %arg7[%c1_132, %c0_133, %c0_134] : memref<2x8x128xf32, #tpu.memory_space<vmem>>, vector<1x8x128xf32>
    %421 = vector.shape_cast %420 : vector<1x8x128xf32> to vector<8x128xf32>
    %422 = vector.shape_cast %417 : vector<8x128xf32> to vector<1x8x128xf32>
    tpu.vector_store %arg7[%c1_132, %c0_133, %c0_134], %422 {strides = array<i32>} : memref<2x8x128xf32, #tpu.memory_space<vmem>>, vector<1x8x128xf32>,
    %c1_135 = arith.constant 1 : index
    %c0_136 = arith.constant 0 : index
    %c0_137 = arith.constant 0 : index
    %423 = vector.load %arg8[%c1_135, %c0_136, %c0_137] : memref<2x8x128xf32, #tpu.memory_space<vmem>>, vector<1x8x128xf32>
    %424 = vector.shape_cast %423 : vector<1x8x128xf32> to vector<8x128xf32>
    %425 = vector.shape_cast %415 : vector<8x128xf32> to vector<1x8x128xf32>
    tpu.vector_store %arg8[%c1_135, %c0_136, %c0_137], %425 {strides = array<i32>} : memref<2x8x128xf32, #tpu.memory_space<vmem>>, vector<1x8x128xf32>,
    return
  }
}

</mosaic_0001>

<bundles_post_ra>
// kernel: tpu_custom_call.1
= control target key start
LH: loop header
LB: loop body
LE: loop exit
PB: predicated region body
PF: predicated region fallthrough
CT: control target
= control target key end

     0   :  { %14 = vsyncpa [#allocation4], 0  ;;  %s6536_s0 = inlined_call_operand.hbm [shape: f32[64,128], index: 0, kind: input, shape index: {}]   ;;  %s6537_s1 = inlined_call_operand.hbm [shape: f32[2,128,512], index: 1, kind: input, shape index: {}]   ;;  %s6538_s2 = inlined_call_operand.hbm [shape: f32[2,128,512], index: 2, kind: input, shape index: {}]   ;;  %s6539_s3 = inlined_call_operand.hbm [shape: f32[2,1,512], index: 3, kind: input, shape index: {}]   ;;  %s6540_s4 = inlined_call_operand.hbm [shape: f32[2,8,128], index: 4, kind: input, shape index: {}]   ;;  %s6541_s5 = inlined_call_operand.hbm [shape: f32[2,8,128], index: 5, kind: input, shape index: {}]   ;;  %s6542_s6 = inlined_call_operand.hbm [shape: f32[64,128], index: 6, kind: output, shape index: {0}]   ;;  %s6543_s7 = inlined_call_operand.hbm [shape: f32[2,8,128], index: 7, kind: output, shape index: {1}]   ;;  %s6544_s8 = inlined_call_operand.hbm [shape: f32[2,8,128], index: 8, kind: output, shape index: {2}]  }
   0x1   :  { %15 = vsyncpa [#allocation7], 0 }
   0x2   :  { %16 = vsyncpa [#allocation10], 0 }
   0x3   :  { %17 = vsyncpa [#allocation13], 0 }
   0x4   :  { %18 = vsyncpa [#allocation5], 0 }
   0x5   :  { %19 = vsyncpa [#allocation16], 0  ;;  %s4486_s27 = smov [#allocation6]  }
   0x6   :  { %s37_s28 = sshll.u32 %s4486_s27, 4  ;;  %s38_s28 = int_to_ptr.vmem [resolvable:$true] %s37_s28 }
   0x7   :  { %s4302_s29 = scalar_lea.vmem %s38_s28, 16384  ;;  %p4307_p1 = scmp.lt.s32.totalorder %s38_s28, %s38_s28 }
   0x8   :  { %p4303_p0 = scmp.ne.s32.totalorder %s38_s28, %s4302_s29  ;;  %p4308_p2 = scmp.lt.s32.totalorder %s4302_s29, %s4302_s29 }
   0xa   :  { %p4309_p3 = por %p4308_p2, %p4307_p1 }
   0xc   :  { %p4310_p4 = pnand %p4309_p3, %p4303_p0 }
   0xe   :  { %4313 = shalt.err (!%p4310_p4)
}
   0xf   :  { %s4487_s30 = smov 512   ;;  %s4488_s9 = smov 32  }
  0x10   :  { %43 = dma.hbm_to_vmem [thread:$0]  %s6537_s1, 16384, %s38_s28, [#allocation7], %s4487_s30, %s4487_s30, %s4488_s9  }
  0x11   :  { %s4489_s12 = smov [#allocation9]  }
  0x12   :  { %s61_s13 = sshll.u32 %s4489_s12, 4  ;;  %s62_s13 = int_to_ptr.vmem [resolvable:$true] %s61_s13 }
  0x13   :  { %s4322_s14 = scalar_lea.vmem %s62_s13, 128  ;;  %p4327_p6 = scmp.lt.s32.totalorder %s62_s13, %s62_s13 }
  0x14   :  { %p4323_p5 = scmp.ne.s32.totalorder %s62_s13, %s4322_s14  ;;  %p4328_p7 = scmp.lt.s32.totalorder %s4322_s14, %s4322_s14 }
  0x16   :  { %p4329_p8 = por %p4328_p7, %p4327_p6 }
  0x18   :  { %p4330_p9 = pnand %p4329_p8, %p4323_p5 }
  0x1a   :  { %4333 = shalt.err (!%p4330_p9)
}
  0x1b   :  { %s4490_s15 = smov 64   ;;  %s4491_s16 = smov 4  }
  0x1c   :  { %67 = dma.hbm_to_vmem [thread:$0]  %s6539_s3, 128, %s62_s13, [#allocation10], %s4490_s15, %s4490_s15, %s4491_s16  }
  0x1d   :  { %s4492_s19 = smov [#allocation3]  }
  0x1e   :  { %s25_s20 = sshll.u32 %s4492_s19, 4  ;;  %s26_s20 = int_to_ptr.vmem [resolvable:$true] %s25_s20 }
  0x1f   :  { %s4342_s1 = scalar_lea.vmem %s26_s20, 1024  ;;  %p4347_p11 = scmp.lt.s32.totalorder %s26_s20, %s26_s20 }
  0x20   :  { %p4343_p10 = scmp.ne.s32.totalorder %s26_s20, %s4342_s1  ;;  %p4348_p12 = scmp.lt.s32.totalorder %s4342_s1, %s4342_s1 }
  0x22   :  { %p4349_p13 = por %p4348_p12, %p4347_p11 }
  0x24   :  { %p4350_p0 = pnand %p4349_p13, %p4343_p10 }
  0x26   :  { %4353 = shalt.err (!%p4350_p0)
}
  0x27   :  { %s4493_s21 = smov 128   ;;  %s4494_s22 = smov 8  }
  0x28   :  { %31 = dma.hbm_to_vmem [thread:$0]  %s6536_s0, 1024, %s26_s20, [#allocation4], %s4493_s21, %s4493_s21, %s4494_s22  }
  0x29   :  { %s4495_s3 = smov [#allocation8]   ;;  %s4496_s26 = smov [#allocation11]  }
  0x2a   :  { %s49_s25 = sshll.u32 %s4495_s3, 4  ;;  %s73_s27 = sshll.u32 %s4496_s26, 4  ;;  %s50_s25 = int_to_ptr.vmem [resolvable:$true] %s49_s25  ;;  %s74_s27 = int_to_ptr.vmem [resolvable:$true] %s73_s27 }
  0x2b   :  { %s4362_s28 = scalar_lea.vmem %s50_s25, 16384  ;;  %p4367_p2 = scmp.lt.s32.totalorder %s50_s25, %s50_s25 }
  0x2c   :  { %p4363_p1 = scmp.ne.s32.totalorder %s50_s25, %s4362_s28  ;;  %p4368_p3 = scmp.lt.s32.totalorder %s4362_s28, %s4362_s28 }
  0x2e   :  { %p4369_p4 = por %p4368_p3, %p4367_p2 }
  0x30   :  { %p4370_p5 = pnand %p4369_p4, %p4363_p1 }
  0x32   :  { %4373 = shalt.err (!%p4370_p5)
}
  0x33   :  { %55 = dma.hbm_to_vmem [thread:$0]  %s6538_s2, 16384, %s50_s25, [#allocation7], %s4487_s30, %s4487_s30, %s4488_s9  }
  0x34   :  { %s4382_s0 = scalar_lea.vmem %s74_s27, 256  ;;  %p4387_p7 = scmp.lt.s32.totalorder %s74_s27, %s74_s27 }
  0x35   :  { %p4383_p6 = scmp.ne.s32.totalorder %s74_s27, %s4382_s0  ;;  %p4388_p8 = scmp.lt.s32.totalorder %s4382_s0, %s4382_s0 }
  0x37   :  { %p4389_p9 = por %p4388_p8, %p4387_p7 }
  0x39   :  { %p4390_p10 = pnand %p4389_p9, %p4383_p6 }
  0x3b   :  { %4393 = shalt.err (!%p4390_p10)
}
  0x3c   :  { %79 = dma.hbm_to_vmem [thread:$0]  %s6540_s4, 256, %s74_s27, [#allocation10], %s4493_s21, %s4493_s21, %s4494_s22  }
  0x3d   :  { %s4497_s13 = smov [#allocation12]  }
  0x3e   :  { %s85_s14 = sshll.u32 %s4497_s13, 4  ;;  %s86_s14 = int_to_ptr.vmem [resolvable:$true] %s85_s14 }
  0x3f   :  { %s4402_s15 = scalar_lea.vmem %s86_s14, 256  ;;  %p4407_p12 = scmp.lt.s32.totalorder %s86_s14, %s86_s14 }
  0x40   :  { %p4403_p11 = scmp.ne.s32.totalorder %s86_s14, %s4402_s15  ;;  %p4408_p13 = scmp.lt.s32.totalorder %s4402_s15, %s4402_s15 }
  0x42   :  { %p4409_p0 = por %p4408_p13, %p4407_p12 }
  0x44   :  { %p4410_p1 = pnand %p4409_p0, %p4403_p11 }
  0x46   :  { %4413 = shalt.err (!%p4410_p1)
}
  0x47   :  { %91 = dma.hbm_to_vmem [thread:$0]  %s6541_s5, 256, %s86_s14, [#allocation13], %s4493_s21, %s4493_s21, %s4494_s22  }
  0x48   :  { %4474 = dma.done.wait [#allocation4], 1024  }
  0x49   :  { %4475 = vsyncadd [#allocation4], 4294966272 }
  0x4a   :  { %4476 = dma.done.wait [#allocation7], 32768  }
  0x4b   :  { %4477 = vsyncadd [#allocation7], 4294934528 }
  0x4c   :  { %4478 = dma.done.wait [#allocation10], 384  }
  0x4d   :  { %4479 = vsyncadd [#allocation10], 4294966912 }
  0x4e   :  { %4480 = dma.done.wait [#allocation13], 256  }
  0x4f   :  { %4481 = vsyncadd [#allocation13], 4294967040  ;;  %v6545_v0 = vmov 0.0   ;;  %v179_v1 = vld [vmem:[#allocation6 + $0x1e8] sm:$0xff]  ;;  %v181_v2 = vld [vmem:[#allocation6 + $0x1f8] sm:$0xff]  ;;  %s4499_s4 = smov [#allocation15]  }
  0x50   :  { %268 = vmatprep.mubr.f32.mxu0 %v6545_v0  ;;  %381 = vmatprep.mubr.f32.mxu1 %v6545_v0  ;;  %v178_v3 = vld [vmem:[#allocation6 + $0x1e0] sm:$0xff]  ;;  %v180_v4 = vld [vmem:[#allocation6 + $0x1f0] sm:$0xff]  ;;  %v175_v5 = vld [vmem:[#allocation6 + $0x1c8] sm:$0xff]  ;;  %s3805_s5 = sshll.u32 %s4499_s4, 4  ;;  %s4500_s9 = smov [#allocation14]   ;;  %s3806_s5 = int_to_ptr.vmem [resolvable:$true] %s3805_s5 }
  0x51   :  { %204 = vmatprep.subr.mxu0 %v179_v1  ;;  %317 = vmatprep.subr.mxu1 %v181_v2  ;;  %v177_v6 = vld [vmem:[#allocation6 + $0x1d8] sm:$0xff]  ;;  %v174_v7 = vld [vmem:[#allocation6 + $0x1c0] sm:$0xff]  ;;  %v176_v8 = vld [vmem:[#allocation6 + $0x1d0] sm:$0xff]  ;;  %s3793_s16 = sshll.u32 %s4500_s9, 4  ;;  %s4501_s17 = smov [#allocation17]   ;;  %s3794_s16 = int_to_ptr.vmem [resolvable:$true] %s3793_s16 }
  0x52   :  { %205 = vmatpush1.msra.mxu0 %v178_v3  ;;  %318 = vmatpush1.msra.mxu1 %v180_v4  ;;  %v171_v9 = vld [vmem:[#allocation6 + $0x1a8] sm:$0xff]  ;;  %v173_v10 = vld [vmem:[#allocation6 + $0x1b8] sm:$0xff]  ;;  %v170_v11 = vld [vmem:[#allocation6 + $0x1a0] sm:$0xff]  ;;  %s3817_s18 = sshll.u32 %s4501_s17, 4  ;;  %s4414_s19 = scalar_lea.vmem %s3806_s5, 256  ;;  %s3818_s18 = int_to_ptr.vmem [resolvable:$true] %s3817_s18 }
  0x53   :  { %206 = vmatprep.subr.mxu0 %v175_v5  ;;  %319 = vmatprep.subr.mxu1 %v177_v6  ;;  %v172_v12 = vld [vmem:[#allocation6 + $0x1b0] sm:$0xff]  ;;  %v167_v13 = vld [vmem:[#allocation6 + $0x188] sm:$0xff]  ;;  %v169_v14 = vld [vmem:[#allocation6 + $0x198] sm:$0xff]  ;;  %p4415_p2 = scmp.ne.s32.totalorder %s3806_s5, %s4414_s19  ;;  %p4419_p3 = scmp.lt.s32.totalorder %s3806_s5, %s3806_s5 }
  0x54   :  { %207 = vmatpush1.msra.mxu0 %v174_v7  ;;  %320 = vmatpush1.msra.mxu1 %v176_v8  ;;  %v166_v15 = vld [vmem:[#allocation6 + $0x180] sm:$0xff]  ;;  %v168_v16 = vld [vmem:[#allocation6 + $0x190] sm:$0xff]  ;;  %v163_v17 = vld [vmem:[#allocation6 + $0x168] sm:$0xff]  ;;  %p4420_p4 = scmp.lt.s32.totalorder %s4414_s19, %s4414_s19 }
  0x55   :  { %208 = vmatprep.subr.mxu0 %v171_v9  ;;  %321 = vmatprep.subr.mxu1 %v173_v10  ;;  %v165_v18 = vld [vmem:[#allocation6 + $0x178] sm:$0xff]  ;;  %v162_v19 = vld [vmem:[#allocation6 + $0x160] sm:$0xff]  ;;  %v164_v20 = vld [vmem:[#allocation6 + $0x170] sm:$0xff] }
  0x56   :  { %209 = vmatpush1.msra.mxu0 %v170_v11  ;;  %322 = vmatpush1.msra.mxu1 %v172_v12  ;;  %v159_v21 = vld [vmem:[#allocation6 + $0x148] sm:$0xff]  ;;  %v161_v22 = vld [vmem:[#allocation6 + $0x158] sm:$0xff]  ;;  %v158_v23 = vld [vmem:[#allocation6 + $0x140] sm:$0xff]  ;;  %p4421_p5 = por %p4420_p4, %p4419_p3 }
  0x57   :  { %210 = vmatprep.subr.mxu0 %v167_v13  ;;  %323 = vmatprep.subr.mxu1 %v169_v14  ;;  %v160_v24 = vld [vmem:[#allocation6 + $0x150] sm:$0xff]  ;;  %v155_v25 = vld [vmem:[#allocation6 + $0x128] sm:$0xff]  ;;  %v157_v26 = vld [vmem:[#allocation6 + $0x138] sm:$0xff] }
  0x58   :  { %211 = vmatpush1.msra.mxu0 %v166_v15  ;;  %324 = vmatpush1.msra.mxu1 %v168_v16  ;;  %v154_v27 = vld [vmem:[#allocation6 + $0x120] sm:$0xff]  ;;  %v156_v28 = vld [vmem:[#allocation6 + $0x130] sm:$0xff]  ;;  %v151_v29 = vld [vmem:[#allocation6 + $0x108] sm:$0xff]  ;;  %p4422_p6 = pnand %p4421_p5, %p4415_p2 }
  0x59   :  { %212 = vmatprep.subr.mxu0 %v163_v17  ;;  %325 = vmatprep.subr.mxu1 %v165_v18  ;;  %v153_v30 = vld [vmem:[#allocation6 + $0x118] sm:$0xff]  ;;  %v150_v31 = vld [vmem:[#allocation6 + $0x100] sm:$0xff]  ;;  %v152_v32 = vld [vmem:[#allocation6 + $0x110] sm:$0xff] }
  0x5a   :  { %213 = vmatpush1.msra.mxu0 %v162_v19  ;;  %326 = vmatpush1.msra.mxu1 %v164_v20  ;;  %v147_v33 = vld [vmem:[#allocation6 + $0xe8] sm:$0xff]  ;;  %v149_v34 = vld [vmem:[#allocation6 + $0xf8] sm:$0xff]  ;;  %v146_v35 = vld [vmem:[#allocation6 + $0xe0] sm:$0xff] }
  0x5b   :  { %214 = vmatprep.subr.mxu0 %v159_v21  ;;  %327 = vmatprep.subr.mxu1 %v161_v22  ;;  %v148_v36 = vld [vmem:[#allocation6 + $0xf0] sm:$0xff]  ;;  %v143_v37 = vld [vmem:[#allocation6 + $0xc8] sm:$0xff]  ;;  %v145_v38 = vld [vmem:[#allocation6 + $0xd8] sm:$0xff] }
  0x5c   :  { %215 = vmatpush1.msra.mxu0 %v158_v23  ;;  %328 = vmatpush1.msra.mxu1 %v160_v24  ;;  %v142_v39 = vld [vmem:[#allocation6 + $0xc0] sm:$0xff]  ;;  %v144_v40 = vld [vmem:[#allocation6 + $0xd0] sm:$0xff]  ;;  %v139_v41 = vld [vmem:[#allocation6 + $0xa8] sm:$0xff] }
  0x5d   :  { %216 = vmatprep.subr.mxu0 %v155_v25  ;;  %329 = vmatprep.subr.mxu1 %v157_v26  ;;  %v141_v42 = vld [vmem:[#allocation6 + $0xb8] sm:$0xff]  ;;  %v138_v43 = vld [vmem:[#allocation6 + $0xa0] sm:$0xff]  ;;  %v140_v44 = vld [vmem:[#allocation6 + $0xb0] sm:$0xff] }
  0x5e   :  { %217 = vmatpush1.msra.mxu0 %v154_v27  ;;  %330 = vmatpush1.msra.mxu1 %v156_v28  ;;  %v135_v45 = vld [vmem:[#allocation6 + $0x88] sm:$0xff]  ;;  %v137_v46 = vld [vmem:[#allocation6 + $0x98] sm:$0xff]  ;;  %v134_v47 = vld [vmem:[#allocation6 + $0x80] sm:$0xff] }
  0x5f   :  { %218 = vmatprep.subr.mxu0 %v151_v29  ;;  %331 = vmatprep.subr.mxu1 %v153_v30  ;;  %v136_v48 = vld [vmem:[#allocation6 + $0x90] sm:$0xff]  ;;  %v131_v49 = vld [vmem:[#allocation6 + $0x68] sm:$0xff]  ;;  %v133_v50 = vld [vmem:[#allocation6 + $0x78] sm:$0xff] }
  0x60   :  { %219 = vmatpush1.msra.mxu0 %v150_v31  ;;  %332 = vmatpush1.msra.mxu1 %v152_v32  ;;  %v130_v51 = vld [vmem:[#allocation6 + $0x60] sm:$0xff]  ;;  %v132_v52 = vld [vmem:[#allocation6 + $0x70] sm:$0xff]  ;;  %v127_v53 = vld [vmem:[#allocation6 + $0x48] sm:$0xff] }
  0x61   :  { %220 = vmatprep.subr.mxu0 %v147_v33  ;;  %333 = vmatprep.subr.mxu1 %v149_v34  ;;  %v129_v54 = vld [vmem:[#allocation6 + $0x58] sm:$0xff]  ;;  %v126_v55 = vld [vmem:[#allocation6 + $0x40] sm:$0xff]  ;;  %v128_v56 = vld [vmem:[#allocation6 + $0x50] sm:$0xff] }
  0x62   :  { %221 = vmatpush1.msra.mxu0 %v146_v35  ;;  %334 = vmatpush1.msra.mxu1 %v148_v36  ;;  %v123_v57 = vld [vmem:[#allocation6 + $0x28] sm:$0xff]  ;;  %v125_v58 = vld [vmem:[#allocation6 + $0x38] sm:$0xff]  ;;  %v122_v59 = vld [vmem:[#allocation6 + $0x20] sm:$0xff] }
  0x63   :  { %222 = vmatprep.subr.mxu0 %v143_v37  ;;  %335 = vmatprep.subr.mxu1 %v145_v38  ;;  %v124_v60 = vld [vmem:[#allocation6 + $0x30] sm:$0xff]  ;;  %v119_v61 = vld [vmem:[#allocation6 + $0x8] sm:$0xff]  ;;  %v121_v62 = vld [vmem:[#allocation6 + $0x18] sm:$0xff] }
  0x64   :  { %223 = vmatpush1.msra.mxu0 %v142_v39  ;;  %336 = vmatpush1.msra.mxu1 %v144_v40  ;;  %v118_v63 = vld [vmem:[#allocation6] sm:$0xff]  ;;  %v120_v1 = vld [vmem:[#allocation6 + $0x10] sm:$0xff]  ;;  %v4582_v3 = vld [vmem:[#allocation8 + $0x1e8] sm:$0xff] }
  0x65   :  { %224 = vmatprep.subr.mxu0 %v139_v41  ;;  %337 = vmatprep.subr.mxu1 %v141_v42  ;;  %v110_v2 = vld [vmem:[#allocation3] sm:$0xff]  ;;  %6747 = vst [vmem:[#allocation24_spill] sm:$0xff] %v4582_v3  ;;  %v4584_v4 = vld [vmem:[#allocation8 + $0x1f8] sm:$0xff]  ;;  %v4588_v6 = vld [vmem:[#allocation8 + $0x1f0] sm:$0xff] }
  0x66   :  { %225 = vmatpush1.msra.mxu0 %v138_v43  ;;  %338 = vmatpush1.msra.mxu1 %v140_v44  ;;  %6748 = vst [vmem:[#allocation25_spill] sm:$0xff] %v4584_v4  ;;  %v4586_v5 = vld [vmem:[#allocation8 + $0x1e0] sm:$0xff]  ;;  %v4590_v7 = vld [vmem:[#allocation8 + $0x1c8] sm:$0xff]  ;;  %v4592_v8 = vld [vmem:[#allocation8 + $0x1d8] sm:$0xff] }
  0x67   :  { %226 = vmatprep.subr.mxu0 %v135_v45  ;;  %339 = vmatprep.subr.mxu1 %v137_v46  ;;  %v4598_v9 = vld [vmem:[#allocation8 + $0x1c0] sm:$0xff]  ;;  %v4600_v10 = vld [vmem:[#allocation8 + $0x1d0] sm:$0xff]  ;;  %v111_v11 = vld [vmem:[#allocation3 + $0x8] sm:$0xff] }
  0x68   :  { %227 = vmatpush1.msra.mxu0 %v134_v47  ;;  %340 = vmatpush1.msra.mxu1 %v136_v48  ;;  %v4606_v12 = vld [vmem:[#allocation8 + $0x1a8] sm:$0xff]  ;;  %v4608_v13 = vld [vmem:[#allocation8 + $0x1b8] sm:$0xff]  ;;  %v4612_v14 = vld [vmem:[#allocation8 + $0x1a0] sm:$0xff] }
  0x69   :  { %228 = vmatprep.subr.mxu0 %v131_v49  ;;  %341 = vmatprep.subr.mxu1 %v133_v50  ;;  %v4614_v15 = vld [vmem:[#allocation8 + $0x1b0] sm:$0xff]  ;;  %v4616_v16 = vld [vmem:[#allocation8 + $0x188] sm:$0xff]  ;;  %v4618_v17 = vld [vmem:[#allocation8 + $0x198] sm:$0xff] }
  0x6a   :  { %229 = vmatpush1.msra.mxu0 %v130_v51  ;;  %342 = vmatpush1.msra.mxu1 %v132_v52  ;;  %v4624_v18 = vld [vmem:[#allocation8 + $0x180] sm:$0xff]  ;;  %v4626_v19 = vld [vmem:[#allocation8 + $0x190] sm:$0xff]  ;;  %v4632_v21 = vld [vmem:[#allocation8 + $0x168] sm:$0xff] }
  0x6b   :  { %230 = vmatprep.subr.mxu0 %v127_v53  ;;  %343 = vmatprep.subr.mxu1 %v129_v54  ;;  %v112_v20 = vld [vmem:[#allocation3 + $0x10] sm:$0xff]  ;;  %v4634_v22 = vld [vmem:[#allocation8 + $0x178] sm:$0xff]  ;;  %v4638_v23 = vld [vmem:[#allocation8 + $0x160] sm:$0xff] }
  0x6c   :  { %231 = vmatpush1.msra.mxu0 %v126_v55  ;;  %344 = vmatpush1.msra.mxu1 %v128_v56  ;;  %v4640_v24 = vld [vmem:[#allocation8 + $0x170] sm:$0xff]  ;;  %v4642_v25 = vld [vmem:[#allocation8 + $0x148] sm:$0xff]  ;;  %v4644_v26 = vld [vmem:[#allocation8 + $0x158] sm:$0xff] }
  0x6d   :  { %232 = vmatprep.subr.mxu0 %v123_v57  ;;  %345 = vmatprep.subr.mxu1 %v125_v58  ;;  %v4650_v27 = vld [vmem:[#allocation8 + $0x140] sm:$0xff]  ;;  %v4652_v28 = vld [vmem:[#allocation8 + $0x150] sm:$0xff]  ;;  %v113_v29 = vld [vmem:[#allocation3 + $0x18] sm:$0xff] }
  0x6e   :  { %233 = vmatpush1.msra.mxu0 %v122_v59  ;;  %346 = vmatpush1.msra.mxu1 %v124_v60  ;;  %v4658_v30 = vld [vmem:[#allocation8 + $0x128] sm:$0xff]  ;;  %v4660_v31 = vld [vmem:[#allocation8 + $0x138] sm:$0xff]  ;;  %v4664_v32 = vld [vmem:[#allocation8 + $0x120] sm:$0xff] }
  0x6f   :  { %234 = vmatprep.subr.mxu0 %v119_v61  ;;  %347 = vmatprep.subr.mxu1 %v121_v62  ;;  %v4666_v33 = vld [vmem:[#allocation8 + $0x130] sm:$0xff]  ;;  %v4668_v34 = vld [vmem:[#allocation8 + $0x108] sm:$0xff]  ;;  %v4670_v35 = vld [vmem:[#allocation8 + $0x118] sm:$0xff] }
  0x70   :  { %235 = vmatpush1.msra.mxu0 %v118_v63  ;;  %348 = vmatpush1.msra.mxu1 %v120_v1  ;;  %v4676_v36 = vld [vmem:[#allocation8 + $0x100] sm:$0xff]  ;;  %v4678_v37 = vld [vmem:[#allocation8 + $0x110] sm:$0xff]  ;;  %v4684_v39 = vld [vmem:[#allocation8 + $0xe8] sm:$0xff] }
  0x71   :  { %269 = vmatmul.mubr.f32.vlgmr.msra.gmra.mxu0 %v110_v2  ;;  %382 = vmatmul.mubr.f32.vlgmr.msra.gmra.mxu1 %v110_v2  ;;  %v114_v38 = vld [vmem:[#allocation3 + $0x20] sm:$0xff]  ;;  %v4686_v40 = vld [vmem:[#allocation8 + $0xf8] sm:$0xff]  ;;  %v4692_v42 = vld [vmem:[#allocation8 + $0xf0] sm:$0xff] }
  0x72   :  { %535 = vmatprep.subr.mxu0 %v4582_v3  ;;  %606 = vmatprep.subr.mxu1 %v4584_v4  ;;  %v4690_v41 = vld [vmem:[#allocation8 + $0xe0] sm:$0xff]  ;;  %v4694_v43 = vld [vmem:[#allocation8 + $0xc8] sm:$0xff]  ;;  %v4696_v44 = vld [vmem:[#allocation8 + $0xd8] sm:$0xff] }
  0x73   :  { %536 = vmatpush1.msra.mxu0 %v4586_v5  ;;  %607 = vmatpush1.msra.mxu1 %v4588_v6  ;;  %v4702_v45 = vld [vmem:[#allocation8 + $0xc0] sm:$0xff]  ;;  %v4704_v46 = vld [vmem:[#allocation8 + $0xd0] sm:$0xff]  ;;  %v115_v47 = vld [vmem:[#allocation3 + $0x28] sm:$0xff] }
  0x74   :  { %537 = vmatprep.subr.mxu0 %v4590_v7  ;;  %608 = vmatprep.subr.mxu1 %v4592_v8  ;;  %v4710_v48 = vld [vmem:[#allocation8 + $0xa8] sm:$0xff]  ;;  %v4712_v49 = vld [vmem:[#allocation8 + $0xb8] sm:$0xff]  ;;  %v4716_v50 = vld [vmem:[#allocation8 + $0xa0] sm:$0xff] }
  0x75   :  { %274 = vmatprep.mubr.f32.mxu0 %v6545_v0  ;;  %387 = vmatprep.mubr.f32.mxu1 %v6545_v0  ;;  %v4718_v51 = vld [vmem:[#allocation8 + $0xb0] sm:$0xff]  ;;  %v4720_v52 = vld [vmem:[#allocation8 + $0x88] sm:$0xff]  ;;  %v4722_v53 = vld [vmem:[#allocation8 + $0x98] sm:$0xff] }
  0x76   :  { %538 = vmatpush1.msra.mxu0 %v4598_v9  ;;  %609 = vmatpush1.msra.mxu1 %v4600_v10  ;;  %6749 = vst [vmem:[#allocation26_spill] sm:$0xff] %v4718_v51  ;;  %6750 = vst [vmem:[#allocation27_spill] sm:$0xff] %v4720_v52  ;;  %v4728_v54 = vld [vmem:[#allocation8 + $0x80] sm:$0xff]  ;;  %v4730_v55 = vld [vmem:[#allocation8 + $0x90] sm:$0xff] }
  0x77   :  { %275 = vmatmul.mubr.f32.gmra.mxu0 %v111_v11  ;;  %388 = vmatmul.mubr.f32.gmra.mxu1 %v111_v11  ;;  %6751 = vst [vmem:[#allocation28_spill] sm:$0xff] %v4722_v53  ;;  %6752 = vst [vmem:[#allocation29_spill] sm:$0xff] %v4728_v54  ;;  %v116_v56 = vld [vmem:[#allocation3 + $0x30] sm:$0xff]  ;;  %v4736_v57 = vld [vmem:[#allocation8 + $0x68] sm:$0xff] }
  0x78   :  { %539 = vmatprep.subr.mxu0 %v4606_v12  ;;  %610 = vmatprep.subr.mxu1 %v4608_v13  ;;  %6753 = vst [vmem:[#allocation30_spill] sm:$0xff] %v4730_v55  ;;  %6754 = vst [vmem:[#allocation31_spill] sm:$0xff] %v4736_v57  ;;  %v4738_v58 = vld [vmem:[#allocation8 + $0x78] sm:$0xff]  ;;  %v4742_v59 = vld [vmem:[#allocation8 + $0x60] sm:$0xff] }
  0x79   :  { %540 = vmatpush1.msra.mxu0 %v4612_v14  ;;  %611 = vmatpush1.msra.mxu1 %v4614_v15  ;;  %6755 = vst [vmem:[#allocation32_spill] sm:$0xff] %v4738_v58  ;;  %6756 = vst [vmem:[#allocation33_spill] sm:$0xff] %v4742_v59  ;;  %v4744_v60 = vld [vmem:[#allocation8 + $0x70] sm:$0xff]  ;;  %v4746_v61 = vld [vmem:[#allocation8 + $0x48] sm:$0xff] }
  0x7a   :  { %541 = vmatprep.subr.mxu0 %v4616_v16  ;;  %612 = vmatprep.subr.mxu1 %v4618_v17  ;;  %6757 = vst [vmem:[#allocation34_spill] sm:$0xff] %v4744_v60  ;;  %6758 = vst [vmem:[#allocation35_spill] sm:$0xff] %v4746_v61  ;;  %v4748_v62 = vld [vmem:[#allocation8 + $0x58] sm:$0xff]  ;;  %v4754_v63 = vld [vmem:[#allocation8 + $0x40] sm:$0xff] }
  0x7b   :  { %280 = vmatprep.mubr.f32.mxu0 %v6545_v0  ;;  %393 = vmatprep.mubr.f32.mxu1 %v6545_v0  ;;  %6759 = vst [vmem:[#allocation36_spill] sm:$0xff] %v4748_v62  ;;  %6760 = vst [vmem:[#allocation37_spill] sm:$0xff] %v4754_v63  ;;  %v4756_v1 = vld [vmem:[#allocation8 + $0x50] sm:$0xff]  ;;  %v117_v2 = vld [vmem:[#allocation3 + $0x38] sm:$0xff] }
  0x7c   :  { %542 = vmatpush1.msra.mxu0 %v4624_v18  ;;  %613 = vmatpush1.msra.mxu1 %v4626_v19  ;;  %6761 = vst [vmem:[#allocation38_spill] sm:$0xff] %v4756_v1  ;;  %v4762_v11 = vld [vmem:[#allocation8 + $0x28] sm:$0xff] }
  0x7d   :  { %281 = vmatmul.mubr.f32.gmra.mxu0 %v112_v20  ;;  %394 = vmatmul.mubr.f32.gmra.mxu1 %v112_v20  ;;  %6762 = vst [vmem:[#allocation39_spill] sm:$0xff] %v4762_v11  ;;  %v4764_v20 = vld [vmem:[#allocation8 + $0x38] sm:$0xff] }
  0x7e   :  { %543 = vmatprep.subr.mxu0 %v4632_v21  ;;  %614 = vmatprep.subr.mxu1 %v4634_v22  ;;  %6763 = vst [vmem:[#allocation40_spill] sm:$0xff] %v4764_v20 }
  0x7f   :  { %544 = vmatpush1.msra.mxu0 %v4638_v23  ;;  %615 = vmatpush1.msra.mxu1 %v4640_v24 }
  0x80   :  { %545 = vmatprep.subr.mxu0 %v4642_v25  ;;  %616 = vmatprep.subr.mxu1 %v4644_v26 }
  0x81   :  { %286 = vmatprep.mubr.f32.mxu0 %v6545_v0  ;;  %399 = vmatprep.mubr.f32.mxu1 %v6545_v0 }
  0x82   :  { %546 = vmatpush1.msra.mxu0 %v4650_v27  ;;  %617 = vmatpush1.msra.mxu1 %v4652_v28 }
  0x83   :  { %287 = vmatmul.mubr.f32.gmra.mxu0 %v113_v29  ;;  %400 = vmatmul.mubr.f32.gmra.mxu1 %v113_v29  ;;  %v4768_v29 = vld [vmem:[#allocation8 + $0x20] sm:$0xff] }
  0x84   :  { %547 = vmatprep.subr.mxu0 %v4658_v30  ;;  %618 = vmatprep.subr.mxu1 %v4660_v31  ;;  %6764 = vst [vmem:[#allocation41_spill] sm:$0xff] %v4768_v29 }
  0x85   :  { %548 = vmatpush1.msra.mxu0 %v4664_v32  ;;  %619 = vmatpush1.msra.mxu1 %v4666_v33 }
  0x86   :  { %549 = vmatprep.subr.mxu0 %v4668_v34  ;;  %620 = vmatprep.subr.mxu1 %v4670_v35 }
  0x87   :  { %292 = vmatprep.mubr.f32.mxu0 %v6545_v0  ;;  %405 = vmatprep.mubr.f32.mxu1 %v6545_v0 }
  0x88   :  { %550 = vmatpush1.msra.mxu0 %v4676_v36  ;;  %621 = vmatpush1.msra.mxu1 %v4678_v37 }
  0x89   :  { %293 = vmatmul.mubr.f32.gmra.mxu0 %v114_v38  ;;  %406 = vmatmul.mubr.f32.gmra.mxu1 %v114_v38  ;;  %v4770_v38 = vld [vmem:[#allocation8 + $0x30] sm:$0xff] }
  0x8a   :  { %551 = vmatprep.subr.mxu0 %v4684_v39  ;;  %622 = vmatprep.subr.mxu1 %v4686_v40  ;;  %6765 = vst [vmem:[#allocation42_spill] sm:$0xff] %v4770_v38 }
  0x8b   :  { %552 = vmatpush1.msra.mxu0 %v4690_v41  ;;  %623 = vmatpush1.msra.mxu1 %v4692_v42 }
  0x8c   :  { %553 = vmatprep.subr.mxu0 %v4694_v43  ;;  %624 = vmatprep.subr.mxu1 %v4696_v44 }
  0x8d   :  { %298 = vmatprep.mubr.f32.mxu0 %v6545_v0  ;;  %411 = vmatprep.mubr.f32.mxu1 %v6545_v0 }
  0x8e   :  { %554 = vmatpush1.msra.mxu0 %v4702_v45  ;;  %625 = vmatpush1.msra.mxu1 %v4704_v46 }
  0x8f   :  { %299 = vmatmul.mubr.f32.gmra.mxu0 %v115_v47  ;;  %412 = vmatmul.mubr.f32.gmra.mxu1 %v115_v47  ;;  %v4772_v47 = vld [vmem:[#allocation8 + $0x8] sm:$0xff] }
  0x90   :  { %555 = vmatprep.subr.mxu0 %v4710_v48  ;;  %626 = vmatprep.subr.mxu1 %v4712_v49  ;;  %6766 = vst [vmem:[#allocation43_spill] sm:$0xff] %v4772_v47 }
  0x91   :  { %556 = vmatpush1.msra.mxu0 %v4716_v50  ;;  %627 = vmatpush1.msra.mxu1 %v4718_v51 }
  0x92   :  { %557 = vmatprep.subr.mxu0 %v4720_v52  ;;  %628 = vmatprep.subr.mxu1 %v4722_v53 }
  0x93   :  { %304 = vmatprep.mubr.f32.mxu0 %v6545_v0  ;;  %417 = vmatprep.mubr.f32.mxu1 %v6545_v0 }
  0x94   :  { %558 = vmatpush1.msra.mxu0 %v4728_v54  ;;  %629 = vmatpush1.msra.mxu1 %v4730_v55 }
  0x95   :  { %305 = vmatmul.mubr.f32.gmra.mxu0 %v116_v56  ;;  %418 = vmatmul.mubr.f32.gmra.mxu1 %v116_v56  ;;  %v4774_v56 = vld [vmem:[#allocation8 + $0x18] sm:$0xff] }
  0x96   :  { %559 = vmatprep.subr.mxu0 %v4736_v57  ;;  %630 = vmatprep.subr.mxu1 %v4738_v58  ;;  %6767 = vst [vmem:[#allocation44_spill] sm:$0xff] %v4774_v56 }
  0x97   :  { %560 = vmatpush1.msra.mxu0 %v4742_v59  ;;  %631 = vmatpush1.msra.mxu1 %v4744_v60 }
  0x98   :  { %561 = vmatprep.subr.mxu0 %v4746_v61  ;;  %632 = vmatprep.subr.mxu1 %v4748_v62 }
  0x99   :  { %310 = vmatprep.mubr.f32.mxu0 %v6545_v0  ;;  %423 = vmatprep.mubr.f32.mxu1 %v6545_v0  ;;  %v4778_v0 = vld [vmem:[#allocation8] sm:$0xff] }
  0x9a   :  { %562 = vmatpush1.msra.mxu0 %v4754_v63  ;;  %633 = vmatpush1.msra.mxu1 %v4756_v1  ;;  %6768 = vst [vmem:[#allocation45_spill] sm:$0xff] %v4778_v0  ;;  %v4782_v1 = vld [vmem:[#allocation8 + $0x10] sm:$0xff]  ;;  %v6770_v63 = vmov 0.0  }
  0x9b   :  { %311 = vmatmul.mubr.f32.gmra.mxu0 %v117_v2  ;;  %424 = vmatmul.mubr.f32.gmra.mxu1 %v117_v2  ;;  %6769 = vst [vmem:[#allocation46_spill] sm:$0xff] %v4782_v1  ;;  %v526_v2 = vld [vmem:[#allocation11] sm:$0xff] }
  0x9c   :  { %563 = vmatprep.subr.mxu0 %v4762_v11  ;;  %634 = vmatprep.subr.mxu1 %v4764_v20 }
  0x9d   :  { %564 = vmatpush1.msra.mxu0 %v4768_v29  ;;  %635 = vmatpush1.msra.mxu1 %v4770_v38 }
  0x9e   :  { %565 = vmatprep.subr.mxu0 %v4772_v47  ;;  %636 = vmatprep.subr.mxu1 %v4774_v56 }
  0x9f   :  { %566 = vmatpush1.msra.mxu0 %v4778_v0  ;;  %599 = vmatprep.mubr.f32.mxu0 %v6770_v63 }
  0xa0   :  { %637 = vmatpush1.msra.mxu1 %v4782_v1  ;;  %670 = vmatprep.mubr.f32.mxu1 %v6770_v63 }
  0xa1   :  { %600 = vmatmul.mubr.f32.vlgmr.msra.gmra.mxu0 %v526_v2  ;;  %671 = vmatmul.mubr.f32.vlgmr.msra.gmra.mxu1 %v526_v2  ;;  %v6771_v2 = vld [vmem:[#allocation37_spill] sm:$0xff] }
  0xa2   :  { %713 = vmatprep.subr.mxu0 %v4582_v3  ;;  %784 = vmatprep.subr.mxu1 %v4584_v4 }
  0xa3   :  { %714 = vmatpush1.msra.mxu0 %v4586_v5  ;;  %785 = vmatpush1.msra.mxu1 %v4588_v6 }
  0xa4   :  { %715 = vmatprep.subr.mxu0 %v4590_v7  ;;  %786 = vmatprep.subr.mxu1 %v4592_v8 }
  0xa5   :  { %716 = vmatpush1.msra.mxu0 %v4598_v9  ;;  %787 = vmatpush1.msra.mxu1 %v4600_v10 }
  0xa6   :  { %717 = vmatprep.subr.mxu0 %v4606_v12  ;;  %788 = vmatprep.subr.mxu1 %v4608_v13 }
  0xa7   :  { %718 = vmatpush1.msra.mxu0 %v4612_v14  ;;  %789 = vmatpush1.msra.mxu1 %v4614_v15 }
  0xa8   :  { %719 = vmatprep.subr.mxu0 %v4616_v16  ;;  %790 = vmatprep.subr.mxu1 %v4618_v17 }
  0xa9   :  { %720 = vmatpush1.msra.mxu0 %v4624_v18  ;;  %791 = vmatpush1.msra.mxu1 %v4626_v19 }
  0xaa   :  { %721 = vmatprep.subr.mxu0 %v4632_v21  ;;  %792 = vmatprep.subr.mxu1 %v4634_v22 }
  0xab   :  { %722 = vmatpush1.msra.mxu0 %v4638_v23  ;;  %793 = vmatpush1.msra.mxu1 %v4640_v24 }
  0xac   :  { %723 = vmatprep.subr.mxu0 %v4642_v25  ;;  %794 = vmatprep.subr.mxu1 %v4644_v26 }
  0xad   :  { %724 = vmatpush1.msra.mxu0 %v4650_v27  ;;  %795 = vmatpush1.msra.mxu1 %v4652_v28 }
  0xae   :  { %725 = vmatprep.subr.mxu0 %v4658_v30  ;;  %796 = vmatprep.subr.mxu1 %v4660_v31 }
  0xaf   :  { %726 = vmatpush1.msra.mxu0 %v4664_v32  ;;  %797 = vmatpush1.msra.mxu1 %v4666_v33 }
  0xb0   :  { %727 = vmatprep.subr.mxu0 %v4668_v34  ;;  %798 = vmatprep.subr.mxu1 %v4670_v35 }
  0xb1   :  { %728 = vmatpush1.msra.mxu0 %v4676_v36  ;;  %799 = vmatpush1.msra.mxu1 %v4678_v37 }
  0xb2   :  { %729 = vmatprep.subr.mxu0 %v4684_v39  ;;  %800 = vmatprep.subr.mxu1 %v4686_v40 }
  0xb3   :  { %730 = vmatpush1.msra.mxu0 %v4690_v41  ;;  %801 = vmatpush1.msra.mxu1 %v4692_v42 }
  0xb4   :  { %731 = vmatprep.subr.mxu0 %v4694_v43  ;;  %802 = vmatprep.subr.mxu1 %v4696_v44 }
  0xb5   :  { %732 = vmatpush1.msra.mxu0 %v4702_v45  ;;  %803 = vmatpush1.msra.mxu1 %v4704_v46 }
  0xb6   :  { %733 = vmatprep.subr.mxu0 %v4710_v48  ;;  %804 = vmatprep.subr.mxu1 %v4712_v49 }
  0xb7   :  { %734 = vmatpush1.msra.mxu0 %v4716_v50  ;;  %805 = vmatpush1.msra.mxu1 %v4718_v51 }
  0xb8   :  { %735 = vmatprep.subr.mxu0 %v4720_v52  ;;  %806 = vmatprep.subr.mxu1 %v4722_v53  ;;  %v6772_v52 = vld [vmem:[#allocation38_spill] sm:$0xff] }
  0xb9   :  { %736 = vmatpush1.msra.mxu0 %v4728_v54  ;;  %807 = vmatpush1.msra.mxu1 %v4730_v55 }
  0xba   :  { %737 = vmatprep.subr.mxu0 %v4736_v57  ;;  %808 = vmatprep.subr.mxu1 %v4738_v58 }
  0xbb   :  { %738 = vmatpush1.msra.mxu0 %v4742_v59  ;;  %809 = vmatpush1.msra.mxu1 %v4744_v60 }
  0xbc   :  { %739 = vmatprep.subr.mxu0 %v4746_v61  ;;  %810 = vmatprep.subr.mxu1 %v4748_v62 }
  0xbd   :  { %740 = vmatpush1.msra.mxu0 %v6771_v2  ;;  %811 = vmatpush1.msra.mxu1 %v6772_v52 }
  0xbe   :  { %741 = vmatprep.subr.mxu0 %v4762_v11  ;;  %812 = vmatprep.subr.mxu1 %v4764_v20  ;;  %v184_v20 = vlaneseq  ;;  %v182_v11 = vld [vmem:[#allocation9] sm:$0xf] }
  0xbf   :  { %742 = vmatpush1.msra.mxu0 %v4768_v29  ;;  %813 = vmatpush1.msra.mxu1 %v4770_v38 }
  0xc0   :  { %743 = vmatprep.subr.mxu0 %v4772_v47  ;;  %814 = vmatprep.subr.mxu1 %v4774_v56  ;;  %v4858_v29 = vshrl.u32 %v184_v20, 7 }
  0xc1   :  { %744 = vmatpush1.msra.mxu0 %v4778_v0  ;;  %777 = vmatprep.mubr.f32.mxu0 %v6770_v63 }
  0xc2   :  { %815 = vmatpush1.msra.mxu1 %v4782_v1  ;;  %848 = vmatprep.mubr.f32.mxu1 %v6770_v63  ;;  %6773 = vst [vmem:[#allocation47_spill] sm:$0xff] %v4858_v29  ;;  %v6584_v56 = vsub.s32 0, %v4858_v29  ;;  %v6587_v0 = vsub.s32 2, %v4858_v29 }
  0xc3   :  { %892 = vmatprep.subr.mxu0 %v4582_v3  ;;  %963 = vmatprep.subr.mxu1 %v4584_v4  ;;  %v6594_v3 = vsub.s32 1, %v4858_v29  ;;  %v6595_v4 = vsub.s32 3, %v4858_v29 }
  0xc4   :  { %v187_v20 = vrot.slane %v182_v11, %v6584_v56  ;;  %v4876_v63 = vrot.slane %v182_v11, %v6587_v0 }
  0xc5   :  { %v191_v61 = vrot.slane %v182_v11, %v6594_v3  ;;  %v4882_v60 = vrot.slane %v182_v11, %v6595_v4 }
 0x131   :  { %v4860_v38 = vpop.f32.mrf.mxu0  ;;  %v4862_v47 = vpop.f32.mrf.mxu1 }
 0x133   :  { %v4866_v52 = vpop.f32.mrf.mxu0  ;;  %v4868_v1 = vpop.f32.mrf.mxu1 }
 0x137   :  { %v276_v2 = vpop.f32.mrf.mxu0  ;;  %v389_v62 = vpop.f32.mrf.mxu1 }
 0x138   :  { %v4884_v59 = vadd.f32 %v276_v2, %v187_v20  ;;  %v4887_v58 = vadd.f32 %v389_v62, %v4876_v63 }
 0x139   :  { %v278_v57 = vpop.f32.mrf.mxu0  ;;  %v391_v56 = vpop.f32.mrf.mxu1 }
 0x13a   :  { %6774 = vst [vmem:[#allocation48_spill] sm:$0xff] %v4887_v58  ;;  %v4889_v55 = vadd.f32 %v278_v57, %v191_v61  ;;  %v4892_v0 = vadd.f32 %v391_v56, %v4882_v60 }
 0x13c   :  { %6775 = vst [vmem:[#allocation49_spill] sm:$0xff] %v4889_v55  ;;  %6776 = vst [vmem:[#allocation50_spill] sm:$0xff] %v4892_v0 }
 0x13d   :  { %v282_v54 = vpop.f32.mrf.mxu0  ;;  %v395_v53 = vpop.f32.mrf.mxu1 }
 0x13e   :  { %v4894_v51 = vadd.f32 %v282_v54, %v187_v20  ;;  %v4897_v3 = vadd.f32 %v395_v53, %v4876_v63 }
 0x13f   :  { %v284_v11 = vpop.f32.mrf.mxu0  ;;  %v397_v2 = vpop.f32.mrf.mxu1 }
 0x140   :  { %6777 = vst [vmem:[#allocation51_spill] sm:$0xff] %v4894_v51  ;;  %6778 = vst [vmem:[#allocation52_spill] sm:$0xff] %v4897_v3  ;;  %v4899_v4 = vadd.f32 %v284_v11, %v191_v61  ;;  %v4902_v62 = vadd.f32 %v397_v2, %v4882_v60 }
 0x142   :  { %6779 = vst [vmem:[#allocation53_spill] sm:$0xff] %v4899_v4  ;;  %6780 = vst [vmem:[#allocation54_spill] sm:$0xff] %v4902_v62 }
 0x143   :  { %v288_v29 = vpop.f32.mrf.mxu0  ;;  %v401_v57 = vpop.f32.mrf.mxu1 }
 0x144   :  { %v4904_v58 = vadd.f32 %v288_v29, %v187_v20  ;;  %v4907_v56 = vadd.f32 %v401_v57, %v4876_v63 }
 0x145   :  { %v290_v0 = vpop.f32.mrf.mxu0  ;;  %v403_v54 = vpop.f32.mrf.mxu1 }
 0x146   :  { %6781 = vst [vmem:[#allocation55_spill] sm:$0xff] %v4904_v58  ;;  %6782 = vst [vmem:[#allocation56_spill] sm:$0xff] %v4907_v56  ;;  %v4909_v51 = vadd.f32 %v290_v0, %v191_v61  ;;  %v4912_v53 = vadd.f32 %v403_v54, %v4882_v60 }
 0x148   :  { %6783 = vst [vmem:[#allocation57_spill] sm:$0xff] %v4909_v51  ;;  %6784 = vst [vmem:[#allocation58_spill] sm:$0xff] %v4912_v53 }
 0x149   :  { %v294_v3 = vpop.f32.mrf.mxu0  ;;  %v407_v11 = vpop.f32.mrf.mxu1 }
 0x14a   :  { %v4914_v4 = vadd.f32 %v294_v3, %v187_v20  ;;  %v4917_v2 = vadd.f32 %v407_v11, %v4876_v63 }
 0x14b   :  { %v296_v62 = vpop.f32.mrf.mxu0  ;;  %v409_v29 = vpop.f32.mrf.mxu1 }
 0x14c   :  { %6785 = vst [vmem:[#allocation59_spill] sm:$0xff] %v4914_v4  ;;  %6786 = vst [vmem:[#allocation60_spill] sm:$0xff] %v4917_v2  ;;  %v4919_v58 = vadd.f32 %v296_v62, %v191_v61  ;;  %v4922_v57 = vadd.f32 %v409_v29, %v4882_v60 }
 0x14e   :  { %6787 = vst [vmem:[#allocation61_spill] sm:$0xff] %v4919_v58  ;;  %6788 = vst [vmem:[#allocation62_spill] sm:$0xff] %v4922_v57 }
 0x14f   :  { %v300_v56 = vpop.f32.mrf.mxu0  ;;  %v413_v0 = vpop.f32.mrf.mxu1 }
 0x150   :  { %v4924_v51 = vadd.f32 %v300_v56, %v187_v20  ;;  %v4927_v54 = vadd.f32 %v413_v0, %v4876_v63 }
 0x151   :  { %v302_v53 = vpop.f32.mrf.mxu0  ;;  %v415_v3 = vpop.f32.mrf.mxu1 }
 0x152   :  { %6789 = vst [vmem:[#allocation63_spill] sm:$0xff] %v4924_v51  ;;  %6790 = vst [vmem:[#allocation64_spill] sm:$0xff] %v4927_v54  ;;  %v4929_v4 = vadd.f32 %v302_v53, %v191_v61  ;;  %v4932_v11 = vadd.f32 %v415_v3, %v4882_v60 }
 0x154   :  { %6791 = vst [vmem:[#allocation65_spill] sm:$0xff] %v4929_v4  ;;  %6792 = vst [vmem:[#allocation66_spill] sm:$0xff] %v4932_v11 }
 0x155   :  { %v306_v2 = vpop.f32.mrf.mxu0  ;;  %v419_v62 = vpop.f32.mrf.mxu1 }
 0x156   :  { %v4934_v58 = vadd.f32 %v306_v2, %v187_v20  ;;  %v4937_v29 = vadd.f32 %v419_v62, %v4876_v63 }
 0x157   :  { %v308_v57 = vpop.f32.mrf.mxu0  ;;  %v421_v56 = vpop.f32.mrf.mxu1 }
 0x158   :  { %6793 = vst [vmem:[#allocation67_spill] sm:$0xff] %v4934_v58  ;;  %6794 = vst [vmem:[#allocation68_spill] sm:$0xff] %v4937_v29  ;;  %v4939_v51 = vadd.f32 %v308_v57, %v191_v61  ;;  %v4942_v0 = vadd.f32 %v421_v56, %v4882_v60  ;;  %v271_v57 = vadd.f32 %v4860_v38, %v187_v20 }
 0x159   :  { %v273_v56 = vadd.f32 %v4866_v52, %v191_v61 }
 0x15a   :  { %6795 = vst [vmem:[#allocation69_spill] sm:$0xff] %v4939_v51  ;;  %6796 = vst [vmem:[#allocation70_spill] sm:$0xff] %v4942_v0 }
 0x15b   :  { %v312_v54 = vpop.f32.mrf.mxu0  ;;  %v425_v53 = vpop.f32.mrf.mxu1 }
 0x15c   :  { %v4944_v4 = vadd.f32 %v312_v54, %v187_v20  ;;  %v4947_v3 = vadd.f32 %v425_v53, %v4876_v63 }
 0x15d   :  { %v314_v11 = vpop.f32.mrf.mxu0  ;;  %v427_v2 = vpop.f32.mrf.mxu1 }
 0x15e   :  { %6797 = vst [vmem:[#allocation71_spill] sm:$0xff] %v4944_v4  ;;  %6798 = vst [vmem:[#allocation72_spill] sm:$0xff] %v4947_v3  ;;  %v4949_v58 = vadd.f32 %v314_v11, %v191_v61  ;;  %v4952_v62 = vadd.f32 %v427_v2, %v4882_v60  ;;  %v384_v11 = vadd.f32 %v4862_v47, %v4876_v63 }
 0x15f   :  { %v386_v2 = vadd.f32 %v4868_v1, %v4882_v60 }
 0x160   :  { %6799 = vst [vmem:[#allocation73_spill] sm:$0xff] %v4949_v58  ;;  %6800 = vst [vmem:[#allocation74_spill] sm:$0xff] %v4952_v62 }
 0x161   :  { %v601_v29 = vpop.f32.mrf.mxu0  ;;  %v672_v53 = vpop.f32.mrf.mxu1 }
 0x162   :  { %v677_v0 = vadd.f32 %v601_v29, %v271_v57  ;;  %v679_v3 = vadd.f32 %v672_v53, %v384_v11  ;;  %v527_v29 = vld [vmem:[#allocation12] sm:$0xff]  ;;  %v6803_v53 = vld [vmem:[#allocation28_spill] sm:$0xff]  ;;  %v6804_v11 = vld [vmem:[#allocation29_spill] sm:$0xff] }
 0x163   :  { %v603_v51 = vpop.f32.mrf.mxu0  ;;  %v674_v58 = vpop.f32.mrf.mxu1 }
 0x164   :  { %v3846_v55 = vmul.f32 -1.442695, %v677_v0  ;;  %v678_v54 = vadd.f32 %v603_v51, %v273_v56  ;;  %v3848_v38 = vmul.f32 -1.442695, %v679_v3  ;;  %v680_v62 = vadd.f32 %v674_v58, %v386_v2  ;;  %v6801_v3 = vld [vmem:[#allocation26_spill] sm:$0xff] }
 0x165   :  { %v6805_v2 = vld [vmem:[#allocation30_spill] sm:$0xff] }
 0x166   :  { %3910 = vpow2.f32 %v3846_v55  ;;  %v3847_v4 = vmul.f32 -1.442695, %v678_v54 }
 0x168   :  { %3912 = vpow2.f32 %v3847_v4 }
 0x169   :  { %3914 = vpow2.f32 %v3848_v38  ;;  %v6806_v38 = vld [vmem:[#allocation31_spill] sm:$0xff] }
 0x173   :  { %v3911_v20 = vpop.eup %3910 }
 0x174   :  { %v690_v52 = vadd.f32 1.0, %v3911_v20  ;;  %v6807_v20 = vld [vmem:[#allocation32_spill] sm:$0xff] }
 0x175   :  { %v3913_v61 = vpop.eup %3912 }
 0x176   :  { %3916 = vrcp.f32 %v690_v52  ;;  %v691_v51 = vadd.f32 1.0, %v3913_v61  ;;  %v3915_v4 = vpop.eup %3914  ;;  %v6808_v52 = vld [vmem:[#allocation33_spill] sm:$0xff]  ;;  %v6809_v61 = vld [vmem:[#allocation34_spill] sm:$0xff] }
 0x177   :  { %3918 = vtanh.f32 %v680_v62  ;;  %v692_v47 = vadd.f32 1.0, %v3915_v4  ;;  %v6802_v62 = vld [vmem:[#allocation27_spill] sm:$0xff]  ;;  %v6811_v4 = vld [vmem:[#allocation36_spill] sm:$0xff] }
 0x178   :  { %3920 = vrcp.f32 %v691_v51  ;;  %v6810_v51 = vld [vmem:[#allocation35_spill] sm:$0xff] }
 0x179   :  { %3922 = vrcp.f32 %v692_v47  ;;  %v6816_v47 = vld [vmem:[#allocation41_spill] sm:$0xff] }
 0x183   :  { %v3917_v55 = vpop.eup %3916 }
 0x184   :  { %v3919_v0 = vpop.eup %3918 }
 0x185   :  { %v3921_v63 = vpop.eup %3920  ;;  %v701_v56 = vmul.f32 %v3919_v0, %v3917_v55  ;;  %v6812_v55 = vld [vmem:[#allocation37_spill] sm:$0xff]  ;;  %v6814_v0 = vld [vmem:[#allocation39_spill] sm:$0xff] }
 0x186   :  { %v700_v57 = vmul.f32 %v3921_v63, %v527_v29  ;;  %v3923_v58 = vpop.eup %3922  ;;  %v6813_v29 = vld [vmem:[#allocation38_spill] sm:$0xff]  ;;  %v6815_v63 = vld [vmem:[#allocation40_spill] sm:$0xff] }
 0x188   :  { %v4960_v54 = vadd.f32 %v701_v56, %v700_v57  ;;  %v6817_v57 = vld [vmem:[#allocation42_spill] sm:$0xff]  ;;  %v6818_v56 = vld [vmem:[#allocation43_spill] sm:$0xff] }
 0x18a   :  { %3924 = vtanh.f32 %v4960_v54 }
 0x197   :  { %v3925_v60 = vpop.eup %3924 }
 0x198   :  { %v704_v1 = vmul.f32 %v3925_v60, %v3923_v58  ;;  %v6819_v58 = vld [vmem:[#allocation44_spill] sm:$0xff]  ;;  %v6820_v60 = vld [vmem:[#allocation45_spill] sm:$0xff] }
 0x19a   :  { %705 = vst [vmem:[#allocation14] sm:$0xff] %v704_v1  ;;  %778 = vmatmul.mubr.f32.vlgmr.msra.gmra.mxu0 %v704_v1  ;;  %849 = vmatmul.mubr.f32.vlgmr.msra.gmra.mxu1 %v704_v1  ;;  %v6821_v1 = vmov 0.0  }
 0x19b   :  { %893 = vmatpush1.msra.mxu0 %v4586_v5  ;;  %964 = vmatpush1.msra.mxu1 %v4588_v6 }
 0x19c   :  { %894 = vmatprep.subr.mxu0 %v4590_v7  ;;  %965 = vmatprep.subr.mxu1 %v4592_v8 }
 0x19d   :  { %895 = vmatpush1.msra.mxu0 %v4598_v9  ;;  %966 = vmatpush1.msra.mxu1 %v4600_v10 }
 0x19e   :  { %896 = vmatprep.subr.mxu0 %v4606_v12  ;;  %967 = vmatprep.subr.mxu1 %v4608_v13 }
 0x19f   :  { %897 = vmatpush1.msra.mxu0 %v4612_v14  ;;  %968 = vmatpush1.msra.mxu1 %v4614_v15 }
 0x1a0   :  { %898 = vmatprep.subr.mxu0 %v4616_v16  ;;  %969 = vmatprep.subr.mxu1 %v4618_v17 }
 0x1a1   :  { %899 = vmatpush1.msra.mxu0 %v4624_v18  ;;  %970 = vmatpush1.msra.mxu1 %v4626_v19 }
 0x1a2   :  { %900 = vmatprep.subr.mxu0 %v4632_v21  ;;  %971 = vmatprep.subr.mxu1 %v4634_v22 }
 0x1a3   :  { %901 = vmatpush1.msra.mxu0 %v4638_v23  ;;  %972 = vmatpush1.msra.mxu1 %v4640_v24 }
 0x1a4   :  { %902 = vmatprep.subr.mxu0 %v4642_v25  ;;  %973 = vmatprep.subr.mxu1 %v4644_v26 }
 0x1a5   :  { %903 = vmatpush1.msra.mxu0 %v4650_v27  ;;  %974 = vmatpush1.msra.mxu1 %v4652_v28 }
 0x1a6   :  { %904 = vmatprep.subr.mxu0 %v4658_v30  ;;  %975 = vmatprep.subr.mxu1 %v4660_v31 }
 0x1a7   :  { %905 = vmatpush1.msra.mxu0 %v4664_v32  ;;  %976 = vmatpush1.msra.mxu1 %v4666_v33 }
 0x1a8   :  { %906 = vmatprep.subr.mxu0 %v4668_v34  ;;  %977 = vmatprep.subr.mxu1 %v4670_v35 }
 0x1a9   :  { %907 = vmatpush1.msra.mxu0 %v4676_v36  ;;  %978 = vmatpush1.msra.mxu1 %v4678_v37 }
 0x1aa   :  { %908 = vmatprep.subr.mxu0 %v4684_v39  ;;  %979 = vmatprep.subr.mxu1 %v4686_v40 }
 0x1ab   :  { %909 = vmatpush1.msra.mxu0 %v4690_v41  ;;  %980 = vmatpush1.msra.mxu1 %v4692_v42 }
 0x1ac   :  { %910 = vmatprep.subr.mxu0 %v4694_v43  ;;  %981 = vmatprep.subr.mxu1 %v4696_v44 }
 0x1ad   :  { %911 = vmatpush1.msra.mxu0 %v4702_v45  ;;  %982 = vmatpush1.msra.mxu1 %v4704_v46 }
 0x1ae   :  { %912 = vmatprep.subr.mxu0 %v4710_v48  ;;  %983 = vmatprep.subr.mxu1 %v4712_v49 }
 0x1af   :  { %913 = vmatpush1.msra.mxu0 %v4716_v50  ;;  %984 = vmatpush1.msra.mxu1 %v6801_v3 }
 0x1b0   :  { %914 = vmatprep.subr.mxu0 %v6802_v62  ;;  %985 = vmatprep.subr.mxu1 %v6803_v53 }
 0x1b1   :  { %915 = vmatpush1.msra.mxu0 %v6804_v11  ;;  %986 = vmatpush1.msra.mxu1 %v6805_v2 }
 0x1b2   :  { %916 = vmatprep.subr.mxu0 %v6806_v38  ;;  %987 = vmatprep.subr.mxu1 %v6807_v20 }
 0x1b3   :  { %917 = vmatpush1.msra.mxu0 %v6808_v52  ;;  %988 = vmatpush1.msra.mxu1 %v6809_v61  ;;  %v6826_v61 = vld [vmem:[#allocation48_spill] sm:$0xff] }
 0x1b4   :  { %918 = vmatprep.subr.mxu0 %v6810_v51  ;;  %989 = vmatprep.subr.mxu1 %v6811_v4  ;;  %v6822_v4 = vld [vmem:[#allocation46_spill] sm:$0xff] }
 0x1b5   :  { %919 = vmatpush1.msra.mxu0 %v6812_v55  ;;  %990 = vmatpush1.msra.mxu1 %v6813_v29  ;;  %v6823_v29 = vld [vmem:[#allocation24_spill] sm:$0xff] }
 0x1b6   :  { %920 = vmatprep.subr.mxu0 %v6814_v0  ;;  %991 = vmatprep.subr.mxu1 %v6815_v63  ;;  %v6824_v0 = vld [vmem:[#allocation25_spill] sm:$0xff] }
 0x1b7   :  { %921 = vmatpush1.msra.mxu0 %v6816_v47  ;;  %992 = vmatpush1.msra.mxu1 %v6817_v57 }
 0x1b8   :  { %922 = vmatprep.subr.mxu0 %v6818_v56  ;;  %993 = vmatprep.subr.mxu1 %v6819_v58  ;;  %v6825_v56 = vld [vmem:[#allocation49_spill] sm:$0xff] }
 0x1b9   :  { %923 = vmatpush1.msra.mxu0 %v6820_v60  ;;  %956 = vmatprep.mubr.f32.mxu0 %v6821_v1 }
 0x1ba   :  { %994 = vmatpush1.msra.mxu1 %v6822_v4  ;;  %1027 = vmatprep.mubr.f32.mxu1 %v6821_v1  ;;  %v6827_v1 = vld [vmem:[#allocation50_spill] sm:$0xff] }
 0x1bb   :  { %1071 = vmatprep.subr.mxu0 %v6823_v29  ;;  %1142 = vmatprep.subr.mxu1 %v6824_v0 }
 0x25a   :  { %v779_v63 = vpop.f32.mrf.mxu0  ;;  %v850_v60 = vpop.f32.mrf.mxu1 }
 0x25b   :  { %v855_v47 = vadd.f32 %v779_v63, %v4884_v59  ;;  %v857_v52 = vadd.f32 %v850_v60, %v6826_v61 }
 0x25c   :  { %v781_v57 = vpop.f32.mrf.mxu0  ;;  %v852_v4 = vpop.f32.mrf.mxu1 }
 0x25d   :  { %v3849_v55 = vmul.f32 -1.442695, %v855_v47  ;;  %v856_v51 = vadd.f32 %v781_v57, %v6825_v56  ;;  %v3851_v20 = vmul.f32 -1.442695, %v857_v52  ;;  %v858_v38 = vadd.f32 %v852_v4, %v6827_v1 }
 0x25f   :  { %3926 = vpow2.f32 %v3849_v55  ;;  %v3850_v58 = vmul.f32 -1.442695, %v856_v51 }
 0x261   :  { %3928 = vpow2.f32 %v3850_v58 }
 0x262   :  { %3930 = vpow2.f32 %v3851_v20 }
 0x263   :  { %3932 = vtanh.f32 %v858_v38 }
 0x26c   :  { %v3927_v29 = vpop.eup %3926 }
 0x26d   :  { %v868_v2 = vadd.f32 1.0, %v3927_v29  ;;  %v6851_v29 = vld [vmem:[#allocation54_spill] sm:$0xff] }
 0x26e   :  { %v3929_v0 = vpop.eup %3928 }
 0x26f   :  { %3934 = vrcp.f32 %v868_v2  ;;  %v869_v59 = vadd.f32 1.0, %v3929_v0  ;;  %v3931_v63 = vpop.eup %3930  ;;  %v6850_v2 = vld [vmem:[#allocation52_spill] sm:$0xff] }
 0x270   :  { %v3933_v47 = vpop.eup %3932  ;;  %v870_v56 = vadd.f32 1.0, %v3931_v63 }
 0x271   :  { %3936 = vrcp.f32 %v869_v59 }
 0x272   :  { %3938 = vrcp.f32 %v870_v56 }
 0x27c   :  { %v3935_v55 = vpop.eup %3934 }
 0x27d   :  { %v879_v51 = vmul.f32 %v3935_v55, %v3933_v47 }
 0x27e   :  { %v3937_v57 = vpop.eup %3936 }
 0x27f   :  { %v878_v61 = vmul.f32 %v3937_v57, %v4960_v54  ;;  %v3939_v52 = vpop.eup %3938 }
 0x281   :  { %v5034_v58 = vadd.f32 %v879_v51, %v878_v61 }
 0x283   :  { %3940 = vtanh.f32 %v5034_v58 }
 0x290   :  { %v3941_v20 = vpop.eup %3940 }
 0x291   :  { %v882_v4 = vmul.f32 %v3941_v20, %v3939_v52 }
 0x293   :  { %884 = vst [vmem:[#allocation14 + $0x8] sm:$0xff] %v882_v4  ;;  %957 = vmatmul.mubr.f32.vlgmr.msra.gmra.mxu0 %v882_v4  ;;  %1028 = vmatmul.mubr.f32.vlgmr.msra.gmra.mxu1 %v882_v4 }
 0x294   :  { %1072 = vmatpush1.msra.mxu0 %v4586_v5  ;;  %1143 = vmatpush1.msra.mxu1 %v4588_v6  ;;  %v6828_v5 = vld [vmem:[#allocation30_spill] sm:$0xff]  ;;  %v6829_v6 = vld [vmem:[#allocation31_spill] sm:$0xff] }
 0x295   :  { %1073 = vmatprep.subr.mxu0 %v4590_v7  ;;  %1144 = vmatprep.subr.mxu1 %v4592_v8  ;;  %v6830_v7 = vld [vmem:[#allocation32_spill] sm:$0xff]  ;;  %v6831_v8 = vld [vmem:[#allocation33_spill] sm:$0xff] }
 0x296   :  { %1074 = vmatpush1.msra.mxu0 %v4598_v9  ;;  %1145 = vmatpush1.msra.mxu1 %v4600_v10  ;;  %v6832_v9 = vld [vmem:[#allocation34_spill] sm:$0xff]  ;;  %v6833_v10 = vld [vmem:[#allocation35_spill] sm:$0xff] }
 0x297   :  { %1075 = vmatprep.subr.mxu0 %v4606_v12  ;;  %1146 = vmatprep.subr.mxu1 %v4608_v13  ;;  %v6834_v12 = vld [vmem:[#allocation36_spill] sm:$0xff]  ;;  %v6835_v13 = vld [vmem:[#allocation37_spill] sm:$0xff] }
 0x298   :  { %1076 = vmatpush1.msra.mxu0 %v4612_v14  ;;  %1147 = vmatpush1.msra.mxu1 %v4614_v15  ;;  %v6836_v14 = vld [vmem:[#allocation38_spill] sm:$0xff]  ;;  %v6837_v15 = vld [vmem:[#allocation39_spill] sm:$0xff] }
 0x299   :  { %1077 = vmatprep.subr.mxu0 %v4616_v16  ;;  %1148 = vmatprep.subr.mxu1 %v4618_v17  ;;  %v6838_v16 = vld [vmem:[#allocation40_spill] sm:$0xff]  ;;  %v6839_v17 = vld [vmem:[#allocation41_spill] sm:$0xff] }
 0x29a   :  { %1078 = vmatpush1.msra.mxu0 %v4624_v18  ;;  %1149 = vmatpush1.msra.mxu1 %v4626_v19  ;;  %v6840_v18 = vld [vmem:[#allocation42_spill] sm:$0xff]  ;;  %v6841_v19 = vld [vmem:[#allocation43_spill] sm:$0xff] }
 0x29b   :  { %1079 = vmatprep.subr.mxu0 %v4632_v21  ;;  %1150 = vmatprep.subr.mxu1 %v4634_v22  ;;  %v6842_v21 = vld [vmem:[#allocation44_spill] sm:$0xff]  ;;  %v6843_v22 = vld [vmem:[#allocation45_spill] sm:$0xff] }
 0x29c   :  { %1080 = vmatpush1.msra.mxu0 %v4638_v23  ;;  %1151 = vmatpush1.msra.mxu1 %v4640_v24  ;;  %v6844_v23 = vmov 0.0   ;;  %v6845_v24 = vld [vmem:[#allocation46_spill] sm:$0xff] }
 0x29d   :  { %1081 = vmatprep.subr.mxu0 %v4642_v25  ;;  %1152 = vmatprep.subr.mxu1 %v4644_v26  ;;  %v5101_v25 = vld [vmem:[#allocation8 + $0x1e8] sm:$0xff]  ;;  %v5104_v26 = vld [vmem:[#allocation8 + $0x1f8] sm:$0xff] }
 0x29e   :  { %1082 = vmatpush1.msra.mxu0 %v4650_v27  ;;  %1153 = vmatpush1.msra.mxu1 %v4652_v28  ;;  %6846 = vst [vmem:[#allocation26_spill] sm:$0xff] %v5101_v25  ;;  %6847 = vst [vmem:[#allocation27_spill] sm:$0xff] %v5104_v26  ;;  %v6848_v28 = vld [vmem:[#allocation51_spill] sm:$0xff] }
 0x29f   :  { %1083 = vmatprep.subr.mxu0 %v4658_v30  ;;  %1154 = vmatprep.subr.mxu1 %v4660_v31 }
 0x2a0   :  { %1084 = vmatpush1.msra.mxu0 %v4664_v32  ;;  %1155 = vmatpush1.msra.mxu1 %v4666_v33  ;;  %v6849_v33 = vld [vmem:[#allocation53_spill] sm:$0xff] }
 0x2a1   :  { %1085 = vmatprep.subr.mxu0 %v4668_v34  ;;  %1156 = vmatprep.subr.mxu1 %v4670_v35 }
 0x2a2   :  { %1086 = vmatpush1.msra.mxu0 %v4676_v36  ;;  %1157 = vmatpush1.msra.mxu1 %v4678_v37 }
 0x2a3   :  { %1087 = vmatprep.subr.mxu0 %v4684_v39  ;;  %1158 = vmatprep.subr.mxu1 %v4686_v40 }
 0x2a4   :  { %1088 = vmatpush1.msra.mxu0 %v4690_v41  ;;  %1159 = vmatpush1.msra.mxu1 %v4692_v42 }
 0x2a5   :  { %1089 = vmatprep.subr.mxu0 %v4694_v43  ;;  %1160 = vmatprep.subr.mxu1 %v4696_v44 }
 0x2a6   :  { %1090 = vmatpush1.msra.mxu0 %v4702_v45  ;;  %1161 = vmatpush1.msra.mxu1 %v4704_v46 }
 0x2a7   :  { %1091 = vmatprep.subr.mxu0 %v4710_v48  ;;  %1162 = vmatprep.subr.mxu1 %v4712_v49 }
 0x2a8   :  { %1092 = vmatpush1.msra.mxu0 %v4716_v50  ;;  %1163 = vmatpush1.msra.mxu1 %v6801_v3 }
 0x2a9   :  { %1093 = vmatprep.subr.mxu0 %v6802_v62  ;;  %1164 = vmatprep.subr.mxu1 %v6803_v53 }
 0x2aa   :  { %1094 = vmatpush1.msra.mxu0 %v6804_v11  ;;  %1165 = vmatpush1.msra.mxu1 %v6828_v5 }
 0x2ab   :  { %1095 = vmatprep.subr.mxu0 %v6829_v6  ;;  %1166 = vmatprep.subr.mxu1 %v6830_v7 }
 0x2ac   :  { %1096 = vmatpush1.msra.mxu0 %v6831_v8  ;;  %1167 = vmatpush1.msra.mxu1 %v6832_v9 }
 0x2ad   :  { %1097 = vmatprep.subr.mxu0 %v6833_v10  ;;  %1168 = vmatprep.subr.mxu1 %v6834_v12 }
 0x2ae   :  { %1098 = vmatpush1.msra.mxu0 %v6835_v13  ;;  %1169 = vmatpush1.msra.mxu1 %v6836_v14 }
 0x2af   :  { %1099 = vmatprep.subr.mxu0 %v6837_v15  ;;  %1170 = vmatprep.subr.mxu1 %v6838_v16 }
 0x2b0   :  { %1100 = vmatpush1.msra.mxu0 %v6839_v17  ;;  %1171 = vmatpush1.msra.mxu1 %v6840_v18 }
 0x2b1   :  { %1101 = vmatprep.subr.mxu0 %v6841_v19  ;;  %1172 = vmatprep.subr.mxu1 %v6842_v21 }
 0x2b2   :  { %1102 = vmatpush1.msra.mxu0 %v6843_v22  ;;  %1135 = vmatprep.mubr.f32.mxu0 %v6844_v23 }
 0x2b3   :  { %1173 = vmatpush1.msra.mxu1 %v6845_v24  ;;  %1206 = vmatprep.mubr.f32.mxu1 %v6844_v23 }
 0x2b4   :  { %1250 = vmatprep.subr.mxu0 %v5101_v25  ;;  %1321 = vmatprep.subr.mxu1 %v5104_v26 }
 0x353   :  { %v958_v27 = vpop.f32.mrf.mxu0  ;;  %v1029_v54 = vpop.f32.mrf.mxu1 }
 0x354   :  { %v1034_v30 = vadd.f32 %v958_v27, %v6848_v28  ;;  %v1036_v38 = vadd.f32 %v1029_v54, %v6850_v2  ;;  %v5130_v54 = vld [vmem:[#allocation8 + $0x1d0] sm:$0xff]  ;;  %v5133_v2 = vld [vmem:[#allocation8 + $0x1a8] sm:$0xff] }
 0x355   :  { %v960_v31 = vpop.f32.mrf.mxu0  ;;  %v1031_v60 = vpop.f32.mrf.mxu1 }
 0x356   :  { %v3852_v32 = vmul.f32 -1.442695, %v1034_v30  ;;  %v1035_v34 = vadd.f32 %v960_v31, %v6849_v33  ;;  %v3854_v1 = vmul.f32 -1.442695, %v1036_v38  ;;  %v1037_v0 = vadd.f32 %v1031_v60, %v6851_v29  ;;  %v5118_v33 = vld [vmem:[#allocation8 + $0x1f0] sm:$0xff]  ;;  %v5136_v38 = vld [vmem:[#allocation8 + $0x1b8] sm:$0xff] }
 0x357   :  { %v5139_v60 = vld [vmem:[#allocation8 + $0x1a0] sm:$0xff]  ;;  %v5145_v29 = vld [vmem:[#allocation8 + $0x188] sm:$0xff] }
 0x358   :  { %3942 = vpow2.f32 %v3852_v32  ;;  %v3853_v35 = vmul.f32 -1.442695, %v1035_v34  ;;  %v5115_v32 = vld [vmem:[#allocation8 + $0x1e0] sm:$0xff]  ;;  %v5124_v34 = vld [vmem:[#allocation8 + $0x1d8] sm:$0xff] }
 0x35a   :  { %3944 = vpow2.f32 %v3853_v35  ;;  %v5127_v35 = vld [vmem:[#allocation8 + $0x1c0] sm:$0xff] }
 0x35b   :  { %3946 = vpow2.f32 %v3854_v1  ;;  %v5142_v1 = vld [vmem:[#allocation8 + $0x1b0] sm:$0xff] }
 0x35c   :  { %3948 = vtanh.f32 %v1037_v0  ;;  %v5148_v0 = vld [vmem:[#allocation8 + $0x198] sm:$0xff] }
 0x365   :  { %v3943_v59 = vpop.eup %3942 }
 0x366   :  { %v1047_v63 = vadd.f32 1.0, %v3943_v59  ;;  %v5151_v59 = vld [vmem:[#allocation8 + $0x180] sm:$0xff] }
 0x367   :  { %v3945_v47 = vpop.eup %3944 }
 0x368   :  { %3950 = vrcp.f32 %v1047_v63  ;;  %v1048_v55 = vadd.f32 1.0, %v3945_v47  ;;  %v3947_v51 = vpop.eup %3946  ;;  %v5154_v63 = vld [vmem:[#allocation8 + $0x190] sm:$0xff]  ;;  %v5157_v47 = vld [vmem:[#allocation8 + $0x168] sm:$0xff] }
 0x369   :  { %v3949_v57 = vpop.eup %3948  ;;  %v1049_v20 = vadd.f32 1.0, %v3947_v51  ;;  %v5163_v51 = vld [vmem:[#allocation8 + $0x160] sm:$0xff] }
 0x36a   :  { %3952 = vrcp.f32 %v1048_v55  ;;  %v5160_v55 = vld [vmem:[#allocation8 + $0x178] sm:$0xff] }
 0x36b   :  { %3954 = vrcp.f32 %v1049_v20  ;;  %v5178_v20 = vld [vmem:[#allocation8 + $0x150] sm:$0xff] }
 0x36c   :  { %6853 = vst [vmem:[#allocation29_spill] sm:$0xff] %v5178_v20 }
 0x375   :  { %v3951_v56 = vpop.eup %3950 }
 0x376   :  { %v1058_v61 = vmul.f32 %v3951_v56, %v3949_v57  ;;  %v5166_v57 = vld [vmem:[#allocation8 + $0x170] sm:$0xff]  ;;  %v5169_v56 = vld [vmem:[#allocation8 + $0x148] sm:$0xff] }
 0x377   :  { %v3953_v52 = vpop.eup %3952 }
 0x378   :  { %v1057_v4 = vmul.f32 %v3953_v52, %v5034_v58  ;;  %v3955_v28 = vpop.eup %3954  ;;  %v5121_v58 = vld [vmem:[#allocation8 + $0x1c8] sm:$0xff]  ;;  %v5175_v52 = vld [vmem:[#allocation8 + $0x140] sm:$0xff] }
 0x379   :  { %6852 = vst [vmem:[#allocation28_spill] sm:$0xff] %v5175_v52 }
 0x37a   :  { %v5112_v27 = vadd.f32 %v1058_v61, %v1057_v4  ;;  %v5172_v61 = vld [vmem:[#allocation8 + $0x158] sm:$0xff]  ;;  %v5181_v4 = vld [vmem:[#allocation8 + $0x128] sm:$0xff] }
 0x37c   :  { %3956 = vtanh.f32 %v5112_v27 }
 0x389   :  { %v3957_v30 = vpop.eup %3956 }
 0x38a   :  { %v1061_v31 = vmul.f32 %v3957_v30, %v3955_v28  ;;  %v5184_v28 = vld [vmem:[#allocation8 + $0x138] sm:$0xff]  ;;  %v5187_v30 = vld [vmem:[#allocation8 + $0x120] sm:$0xff] }
 0x38c   :  { %1063 = vst [vmem:[#allocation14 + $0x10] sm:$0xff] %v1061_v31  ;;  %1136 = vmatmul.mubr.f32.vlgmr.msra.gmra.mxu0 %v1061_v31  ;;  %1207 = vmatmul.mubr.f32.vlgmr.msra.gmra.mxu1 %v1061_v31  ;;  %v5190_v31 = vld [vmem:[#allocation8 + $0x130] sm:$0xff] }
 0x38d   :  { %1251 = vmatpush1.msra.mxu0 %v5115_v32  ;;  %1322 = vmatpush1.msra.mxu1 %v5118_v33 }
 0x38e   :  { %1252 = vmatprep.subr.mxu0 %v5121_v58  ;;  %1323 = vmatprep.subr.mxu1 %v5124_v34 }
 0x38f   :  { %1253 = vmatpush1.msra.mxu0 %v5127_v35  ;;  %1324 = vmatpush1.msra.mxu1 %v5130_v54 }
 0x390   :  { %1254 = vmatprep.subr.mxu0 %v5133_v2  ;;  %1325 = vmatprep.subr.mxu1 %v5136_v38 }
 0x391   :  { %1255 = vmatpush1.msra.mxu0 %v5139_v60  ;;  %1326 = vmatpush1.msra.mxu1 %v5142_v1 }
 0x392   :  { %1256 = vmatprep.subr.mxu0 %v5145_v29  ;;  %1327 = vmatprep.subr.mxu1 %v5148_v0 }
 0x393   :  { %1257 = vmatpush1.msra.mxu0 %v5151_v59  ;;  %1328 = vmatpush1.msra.mxu1 %v5154_v63 }
 0x394   :  { %1258 = vmatprep.subr.mxu0 %v5157_v47  ;;  %1329 = vmatprep.subr.mxu1 %v5160_v55 }
 0x395   :  { %1259 = vmatpush1.msra.mxu0 %v5163_v51  ;;  %1330 = vmatpush1.msra.mxu1 %v5166_v57 }
 0x396   :  { %1260 = vmatprep.subr.mxu0 %v5169_v56  ;;  %1331 = vmatprep.subr.mxu1 %v5172_v61 }
 0x397   :  { %1261 = vmatpush1.msra.mxu0 %v5175_v52  ;;  %1332 = vmatpush1.msra.mxu1 %v5178_v20  ;;  %v5193_v52 = vld [vmem:[#allocation8 + $0x108] sm:$0xff]  ;;  %v5196_v20 = vld [vmem:[#allocation8 + $0x118] sm:$0xff] }
 0x398   :  { %1262 = vmatprep.subr.mxu0 %v5181_v4  ;;  %1333 = vmatprep.subr.mxu1 %v5184_v28 }
 0x399   :  { %1263 = vmatpush1.msra.mxu0 %v5187_v30  ;;  %1334 = vmatpush1.msra.mxu1 %v5190_v31 }
 0x39a   :  { %1264 = vmatprep.subr.mxu0 %v5193_v52  ;;  %1335 = vmatprep.subr.mxu1 %v5196_v20 }
 0x39b   :  { %1265 = vmatpush1.msra.mxu0 %v4676_v36  ;;  %1336 = vmatpush1.msra.mxu1 %v4678_v37  ;;  %v6854_v37 = vld [vmem:[#allocation55_spill] sm:$0xff] }
 0x39c   :  { %1266 = vmatprep.subr.mxu0 %v4684_v39  ;;  %1337 = vmatprep.subr.mxu1 %v4686_v40 }
 0x39d   :  { %1267 = vmatpush1.msra.mxu0 %v4690_v41  ;;  %1338 = vmatpush1.msra.mxu1 %v4692_v42  ;;  %v6855_v42 = vld [vmem:[#allocation57_spill] sm:$0xff] }
 0x39e   :  { %1268 = vmatprep.subr.mxu0 %v4694_v43  ;;  %1339 = vmatprep.subr.mxu1 %v4696_v44 }
 0x39f   :  { %1269 = vmatpush1.msra.mxu0 %v4702_v45  ;;  %1340 = vmatpush1.msra.mxu1 %v4704_v46  ;;  %v6856_v46 = vld [vmem:[#allocation56_spill] sm:$0xff] }
 0x3a0   :  { %1270 = vmatprep.subr.mxu0 %v4710_v48  ;;  %1341 = vmatprep.subr.mxu1 %v4712_v49 }
 0x3a1   :  { %1271 = vmatpush1.msra.mxu0 %v4716_v50  ;;  %1342 = vmatpush1.msra.mxu1 %v6801_v3  ;;  %v6857_v3 = vld [vmem:[#allocation58_spill] sm:$0xff] }
 0x3a2   :  { %1272 = vmatprep.subr.mxu0 %v6802_v62  ;;  %1343 = vmatprep.subr.mxu1 %v6803_v53 }
 0x3a3   :  { %1273 = vmatpush1.msra.mxu0 %v6804_v11  ;;  %1344 = vmatpush1.msra.mxu1 %v6828_v5 }
 0x3a4   :  { %1274 = vmatprep.subr.mxu0 %v6829_v6  ;;  %1345 = vmatprep.subr.mxu1 %v6830_v7 }
 0x3a5   :  { %1275 = vmatpush1.msra.mxu0 %v6831_v8  ;;  %1346 = vmatpush1.msra.mxu1 %v6832_v9 }
 0x3a6   :  { %1276 = vmatprep.subr.mxu0 %v6833_v10  ;;  %1347 = vmatprep.subr.mxu1 %v6834_v12 }
 0x3a7   :  { %1277 = vmatpush1.msra.mxu0 %v6835_v13  ;;  %1348 = vmatpush1.msra.mxu1 %v6836_v14 }
 0x3a8   :  { %1278 = vmatprep.subr.mxu0 %v6837_v15  ;;  %1349 = vmatprep.subr.mxu1 %v6838_v16 }
 0x3a9   :  { %1279 = vmatpush1.msra.mxu0 %v6839_v17  ;;  %1350 = vmatpush1.msra.mxu1 %v6840_v18 }
 0x3aa   :  { %1280 = vmatprep.subr.mxu0 %v6841_v19  ;;  %1351 = vmatprep.subr.mxu1 %v6842_v21  ;;  %v6859_v19 = vld [vmem:[#allocation28_spill] sm:$0xff]  ;;  %v6860_v21 = vld [vmem:[#allocation29_spill] sm:$0xff] }
 0x3ab   :  { %1281 = vmatpush1.msra.mxu0 %v6843_v22  ;;  %1314 = vmatprep.mubr.f32.mxu0 %v6844_v23  ;;  %v5277_v22 = vld [vmem:[#allocation8 + $0x100] sm:$0xff] }
 0x3ac   :  { %1352 = vmatpush1.msra.mxu1 %v6845_v24  ;;  %1385 = vmatprep.mubr.f32.mxu1 %v6844_v23  ;;  %v5280_v24 = vld [vmem:[#allocation8 + $0x110] sm:$0xff] }
 0x3ad   :  { %1429 = vmatprep.subr.mxu0 %v5101_v25  ;;  %1500 = vmatprep.subr.mxu1 %v5104_v26 }
 0x44c   :  { %v1137_v36 = vpop.f32.mrf.mxu0  ;;  %v1208_v45 = vpop.f32.mrf.mxu1 }
 0x44d   :  { %v1213_v39 = vadd.f32 %v1137_v36, %v6854_v37  ;;  %v1215_v48 = vadd.f32 %v1208_v45, %v6856_v46  ;;  %v5286_v36 = vld [vmem:[#allocation8 + $0xf8] sm:$0xff]  ;;  %v5289_v37 = vld [vmem:[#allocation8 + $0xe0] sm:$0xff] }
 0x44e   :  { %v1139_v40 = vpop.f32.mrf.mxu0  ;;  %v1210_v49 = vpop.f32.mrf.mxu1  ;;  %v5310_v45 = vld [vmem:[#allocation8 + $0xb8] sm:$0xff]  ;;  %v5313_v46 = vld [vmem:[#allocation8 + $0xa0] sm:$0xff] }
 0x44f   :  { %v3855_v41 = vmul.f32 -1.442695, %v1213_v39  ;;  %v1214_v43 = vadd.f32 %v1139_v40, %v6855_v42  ;;  %v3857_v50 = vmul.f32 -1.442695, %v1215_v48  ;;  %v1216_v62 = vadd.f32 %v1210_v49, %v6857_v3  ;;  %v5292_v39 = vld [vmem:[#allocation8 + $0xf0] sm:$0xff]  ;;  %v5295_v40 = vld [vmem:[#allocation8 + $0xc8] sm:$0xff] }
 0x450   :  { %v5301_v42 = vld [vmem:[#allocation8 + $0xc0] sm:$0xff]  ;;  %v5316_v48 = vld [vmem:[#allocation8 + $0xb0] sm:$0xff]  ;;  %v5319_v49 = vld [vmem:[#allocation8 + $0x88] sm:$0xff] }
 0x451   :  { %3958 = vpow2.f32 %v3855_v41  ;;  %v3856_v44 = vmul.f32 -1.442695, %v1214_v43  ;;  %v5298_v41 = vld [vmem:[#allocation8 + $0xd8] sm:$0xff]  ;;  %v5304_v43 = vld [vmem:[#allocation8 + $0xd0] sm:$0xff]  ;;  %v5325_v3 = vld [vmem:[#allocation8 + $0x80] sm:$0xff] }
 0x453   :  { %3960 = vpow2.f32 %v3856_v44  ;;  %v5307_v44 = vld [vmem:[#allocation8 + $0xa8] sm:$0xff] }
 0x454   :  { %3962 = vpow2.f32 %v3857_v50  ;;  %v5322_v50 = vld [vmem:[#allocation8 + $0x98] sm:$0xff] }
 0x455   :  { %3964 = vtanh.f32 %v1216_v62  ;;  %v5328_v62 = vld [vmem:[#allocation8 + $0x90] sm:$0xff] }
 0x456   :  { %6861 = vst [vmem:[#allocation25_spill] sm:$0xff] %v5328_v62 }
 0x45e   :  { %v3959_v53 = vpop.eup %3958 }
 0x45f   :  { %v1226_v11 = vadd.f32 1.0, %v3959_v53  ;;  %v5331_v53 = vld [vmem:[#allocation8 + $0x68] sm:$0xff] }
 0x460   :  { %v3961_v5 = vpop.eup %3960  ;;  %6862 = vst [vmem:[#allocation49_spill] sm:$0xff] %v5331_v53 }
 0x461   :  { %3966 = vrcp.f32 %v1226_v11  ;;  %v1227_v6 = vadd.f32 1.0, %v3961_v5  ;;  %v3963_v7 = vpop.eup %3962  ;;  %v5334_v11 = vld [vmem:[#allocation8 + $0x78] sm:$0xff]  ;;  %v5337_v5 = vld [vmem:[#allocation8 + $0x60] sm:$0xff] }
 0x462   :  { %v3965_v8 = vpop.eup %3964  ;;  %v1228_v13 = vadd.f32 1.0, %v3963_v7  ;;  %6863 = vst [vmem:[#allocation48_spill] sm:$0xff] %v5334_v11  ;;  %6864 = vst [vmem:[#allocation50_spill] sm:$0xff] %v5337_v5  ;;  %v5343_v7 = vld [vmem:[#allocation8 + $0x48] sm:$0xff] }
 0x463   :  { %3968 = vrcp.f32 %v1227_v6  ;;  %v5340_v6 = vld [vmem:[#allocation8 + $0x70] sm:$0xff]  ;;  %6866 = vst [vmem:[#allocation31_spill] sm:$0xff] %v5343_v7 }
 0x464   :  { %3970 = vrcp.f32 %v1228_v13  ;;  %6865 = vst [vmem:[#allocation30_spill] sm:$0xff] %v5340_v6  ;;  %v5358_v13 = vld [vmem:[#allocation8 + $0x38] sm:$0xff] }
 0x465   :  { %6871 = vst [vmem:[#allocation36_spill] sm:$0xff] %v5358_v13 }
 0x46e   :  { %v3967_v9 = vpop.eup %3966 }
 0x46f   :  { %v1237_v10 = vmul.f32 %v3967_v9, %v3965_v8  ;;  %v5346_v8 = vld [vmem:[#allocation8 + $0x58] sm:$0xff]  ;;  %v5349_v9 = vld [vmem:[#allocation8 + $0x40] sm:$0xff] }
 0x470   :  { %v3969_v12 = vpop.eup %3968  ;;  %6867 = vst [vmem:[#allocation32_spill] sm:$0xff] %v5346_v8  ;;  %6868 = vst [vmem:[#allocation33_spill] sm:$0xff] %v5349_v9 }
 0x471   :  { %v1236_v14 = vmul.f32 %v3969_v12, %v5112_v27  ;;  %v3971_v16 = vpop.eup %3970  ;;  %v5283_v27 = vld [vmem:[#allocation8 + $0xe8] sm:$0xff] }
 0x472   :  { %v5355_v12 = vld [vmem:[#allocation8 + $0x28] sm:$0xff] }
 0x473   :  { %v5242_v15 = vadd.f32 %v1237_v10, %v1236_v14  ;;  %v5352_v10 = vld [vmem:[#allocation8 + $0x50] sm:$0xff]  ;;  %6870 = vst [vmem:[#allocation35_spill] sm:$0xff] %v5355_v12  ;;  %v5361_v14 = vld [vmem:[#allocation8 + $0x20] sm:$0xff] }
 0x474   :  { %6869 = vst [vmem:[#allocation34_spill] sm:$0xff] %v5352_v10  ;;  %6872 = vst [vmem:[#allocation37_spill] sm:$0xff] %v5361_v14 }
 0x475   :  { %3972 = vtanh.f32 %v5242_v15 }
 0x482   :  { %v3973_v17 = vpop.eup %3972 }
 0x483   :  { %v5245_v18 = vmul.f32 %v3973_v17, %v3971_v16  ;;  %v5364_v16 = vld [vmem:[#allocation8 + $0x30] sm:$0xff]  ;;  %v5367_v17 = vld [vmem:[#allocation8 + $0x8] sm:$0xff] }
 0x484   :  { %6873 = vst [vmem:[#allocation38_spill] sm:$0xff] %v5364_v16  ;;  %6874 = vst [vmem:[#allocation39_spill] sm:$0xff] %v5367_v17 }
 0x485   :  { %6858 = vst [vmem:[#allocation24_spill] sm:$0xff] %v5245_v18  ;;  %1315 = vmatmul.mubr.f32.vlgmr.msra.gmra.mxu0 %v5245_v18  ;;  %1386 = vmatmul.mubr.f32.vlgmr.msra.gmra.mxu1 %v5245_v18  ;;  %v5370_v18 = vld [vmem:[#allocation8 + $0x18] sm:$0xff] }
 0x486   :  { %1430 = vmatpush1.msra.mxu0 %v5115_v32  ;;  %1501 = vmatpush1.msra.mxu1 %v5118_v33  ;;  %6875 = vst [vmem:[#allocation40_spill] sm:$0xff] %v5370_v18 }
 0x487   :  { %1431 = vmatprep.subr.mxu0 %v5121_v58  ;;  %1502 = vmatprep.subr.mxu1 %v5124_v34 }
 0x488   :  { %1432 = vmatpush1.msra.mxu0 %v5127_v35  ;;  %1503 = vmatpush1.msra.mxu1 %v5130_v54 }
 0x489   :  { %1433 = vmatprep.subr.mxu0 %v5133_v2  ;;  %1504 = vmatprep.subr.mxu1 %v5136_v38 }
 0x48a   :  { %1434 = vmatpush1.msra.mxu0 %v5139_v60  ;;  %1505 = vmatpush1.msra.mxu1 %v5142_v1 }
 0x48b   :  { %1435 = vmatprep.subr.mxu0 %v5145_v29  ;;  %1506 = vmatprep.subr.mxu1 %v5148_v0 }
 0x48c   :  { %1436 = vmatpush1.msra.mxu0 %v5151_v59  ;;  %1507 = vmatpush1.msra.mxu1 %v5154_v63 }
 0x48d   :  { %1437 = vmatprep.subr.mxu0 %v5157_v47  ;;  %1508 = vmatprep.subr.mxu1 %v5160_v55 }
 0x48e   :  { %1438 = vmatpush1.msra.mxu0 %v5163_v51  ;;  %1509 = vmatpush1.msra.mxu1 %v5166_v57 }
 0x48f   :  { %1439 = vmatprep.subr.mxu0 %v5169_v56  ;;  %1510 = vmatprep.subr.mxu1 %v5172_v61 }
 0x490   :  { %1440 = vmatpush1.msra.mxu0 %v6859_v19  ;;  %1511 = vmatpush1.msra.mxu1 %v6860_v21 }
 0x491   :  { %1441 = vmatprep.subr.mxu0 %v5181_v4  ;;  %1512 = vmatprep.subr.mxu1 %v5184_v28 }
 0x492   :  { %1442 = vmatpush1.msra.mxu0 %v5187_v30  ;;  %1513 = vmatpush1.msra.mxu1 %v5190_v31 }
 0x493   :  { %1443 = vmatprep.subr.mxu0 %v5193_v52  ;;  %1514 = vmatprep.subr.mxu1 %v5196_v20 }
 0x494   :  { %1444 = vmatpush1.msra.mxu0 %v5277_v22  ;;  %1515 = vmatpush1.msra.mxu1 %v5280_v24 }
 0x495   :  { %1445 = vmatprep.subr.mxu0 %v5283_v27  ;;  %1516 = vmatprep.subr.mxu1 %v5286_v36 }
 0x496   :  { %1446 = vmatpush1.msra.mxu0 %v5289_v37  ;;  %1517 = vmatpush1.msra.mxu1 %v5292_v39 }
 0x497   :  { %1447 = vmatprep.subr.mxu0 %v5295_v40  ;;  %1518 = vmatprep.subr.mxu1 %v5298_v41 }
 0x498   :  { %1448 = vmatpush1.msra.mxu0 %v5301_v42  ;;  %1519 = vmatpush1.msra.mxu1 %v5304_v43 }
 0x499   :  { %1449 = vmatprep.subr.mxu0 %v5307_v44  ;;  %1520 = vmatprep.subr.mxu1 %v5310_v45 }
 0x49a   :  { %1450 = vmatpush1.msra.mxu0 %v5313_v46  ;;  %1521 = vmatpush1.msra.mxu1 %v5316_v48 }
 0x49b   :  { %1451 = vmatprep.subr.mxu0 %v5319_v49  ;;  %1522 = vmatprep.subr.mxu1 %v5322_v50 }
 0x49c   :  { %1452 = vmatpush1.msra.mxu0 %v5325_v3  ;;  %1523 = vmatpush1.msra.mxu1 %v5328_v62 }
 0x49d   :  { %1453 = vmatprep.subr.mxu0 %v5331_v53  ;;  %1524 = vmatprep.subr.mxu1 %v5334_v11 }
 0x49e   :  { %1454 = vmatpush1.msra.mxu0 %v5337_v5  ;;  %1525 = vmatpush1.msra.mxu1 %v5340_v6  ;;  %v6880_v6 = vld [vmem:[#allocation60_spill] sm:$0xff] }
 0x49f   :  { %1455 = vmatprep.subr.mxu0 %v5343_v7  ;;  %1526 = vmatprep.subr.mxu1 %v5346_v8 }
 0x4a0   :  { %1456 = vmatpush1.msra.mxu0 %v5349_v9  ;;  %1527 = vmatpush1.msra.mxu1 %v5352_v10  ;;  %v6879_v9 = vld [vmem:[#allocation61_spill] sm:$0xff] }
 0x4a1   :  { %1457 = vmatprep.subr.mxu0 %v5355_v12  ;;  %1528 = vmatprep.subr.mxu1 %v5358_v13  ;;  %v5373_v12 = vld [vmem:[#allocation8] sm:$0xff]  ;;  %v5377_v13 = vld [vmem:[#allocation8 + $0x10] sm:$0xff] }
 0x4a2   :  { %1458 = vmatpush1.msra.mxu0 %v5361_v14  ;;  %1529 = vmatpush1.msra.mxu1 %v5364_v16  ;;  %6876 = vst [vmem:[#allocation41_spill] sm:$0xff] %v5373_v12  ;;  %6877 = vst [vmem:[#allocation42_spill] sm:$0xff] %v5377_v13  ;;  %v6878_v16 = vld [vmem:[#allocation59_spill] sm:$0xff] }
 0x4a3   :  { %1459 = vmatprep.subr.mxu0 %v5367_v17  ;;  %1530 = vmatprep.subr.mxu1 %v5370_v18 }
 0x4a4   :  { %1460 = vmatpush1.msra.mxu0 %v5373_v12  ;;  %1493 = vmatprep.mubr.f32.mxu0 %v6844_v23 }
 0x4a5   :  { %1531 = vmatpush1.msra.mxu1 %v5377_v13  ;;  %1564 = vmatprep.mubr.f32.mxu1 %v6844_v23  ;;  %v6881_v23 = vld [vmem:[#allocation62_spill] sm:$0xff] }
 0x4a6   :  { %1608 = vmatprep.subr.mxu0 %v5101_v25  ;;  %1679 = vmatprep.subr.mxu1 %v5104_v26 }
 0x545   :  { %v1316_v17 = vpop.f32.mrf.mxu0  ;;  %v1387_v7 = vpop.f32.mrf.mxu1 }
 0x546   :  { %v1392_v14 = vadd.f32 %v1316_v17, %v6878_v16  ;;  %v1394_v5 = vadd.f32 %v1387_v7, %v6880_v6  ;;  %v6889_v17 = vld [vmem:[#allocation32_spill] sm:$0xff] }
 0x547   :  { %v1318_v18 = vpop.f32.mrf.mxu0  ;;  %v1389_v13 = vpop.f32.mrf.mxu1 }
 0x548   :  { %v3858_v10 = vmul.f32 -1.442695, %v1392_v14  ;;  %v1393_v8 = vadd.f32 %v1318_v18, %v6879_v9  ;;  %v3860_v11 = vmul.f32 -1.442695, %v1394_v5  ;;  %v1395_v53 = vadd.f32 %v1389_v13, %v6881_v23  ;;  %v6887_v5 = vld [vmem:[#allocation30_spill] sm:$0xff]  ;;  %v6888_v13 = vld [vmem:[#allocation31_spill] sm:$0xff] }
 0x54a   :  { %3974 = vpow2.f32 %v3858_v10  ;;  %v3859_v12 = vmul.f32 -1.442695, %v1393_v8 }
 0x54c   :  { %3976 = vpow2.f32 %v3859_v12 }
 0x54d   :  { %3978 = vpow2.f32 %v3860_v11 }
 0x54e   :  { %3980 = vtanh.f32 %v1395_v53  ;;  %v6886_v53 = vld [vmem:[#allocation50_spill] sm:$0xff] }
 0x557   :  { %v3975_v25 = vpop.eup %3974 }
 0x558   :  { %v1405_v62 = vadd.f32 1.0, %v3975_v25 }
 0x559   :  { %v3977_v26 = vpop.eup %3976 }
 0x55a   :  { %3982 = vrcp.f32 %v1405_v62  ;;  %v1406_v16 = vadd.f32 1.0, %v3977_v26  ;;  %v3979_v14 = vpop.eup %3978  ;;  %v6883_v26 = vld [vmem:[#allocation25_spill] sm:$0xff]  ;;  %v6885_v62 = vld [vmem:[#allocation48_spill] sm:$0xff] }
 0x55b   :  { %v3981_v18 = vpop.eup %3980  ;;  %v1407_v12 = vadd.f32 1.0, %v3979_v14  ;;  %v6891_v14 = vld [vmem:[#allocation34_spill] sm:$0xff] }
 0x55c   :  { %3984 = vrcp.f32 %v1406_v16  ;;  %v6890_v16 = vld [vmem:[#allocation33_spill] sm:$0xff] }
 0x55d   :  { %3986 = vrcp.f32 %v1407_v12  ;;  %v6896_v12 = vld [vmem:[#allocation39_spill] sm:$0xff] }
 0x567   :  { %v3983_v9 = vpop.eup %3982 }
 0x568   :  { %v1416_v8 = vmul.f32 %v3983_v9, %v3981_v18  ;;  %v6892_v18 = vld [vmem:[#allocation35_spill] sm:$0xff]  ;;  %v6893_v9 = vld [vmem:[#allocation36_spill] sm:$0xff] }
 0x569   :  { %v3985_v10 = vpop.eup %3984 }
 0x56a   :  { %v1415_v6 = vmul.f32 %v3985_v10, %v5242_v15  ;;  %v3987_v23 = vpop.eup %3986  ;;  %v6884_v15 = vld [vmem:[#allocation49_spill] sm:$0xff]  ;;  %v6895_v10 = vld [vmem:[#allocation38_spill] sm:$0xff] }
 0x56c   :  { %v5388_v7 = vadd.f32 %v1416_v8, %v1415_v6  ;;  %v6894_v8 = vld [vmem:[#allocation37_spill] sm:$0xff]  ;;  %v6897_v6 = vld [vmem:[#allocation40_spill] sm:$0xff] }
 0x56e   :  { %3988 = vtanh.f32 %v5388_v7 }
 0x57b   :  { %v3989_v25 = vpop.eup %3988 }
 0x57c   :  { %v5391_v11 = vmul.f32 %v3989_v25, %v3987_v23  ;;  %v6898_v23 = vld [vmem:[#allocation41_spill] sm:$0xff]  ;;  %v6899_v25 = vmov 0.0  }
 0x57e   :  { %6882 = vst [vmem:[#allocation43_spill] sm:$0xff] %v5391_v11  ;;  %1494 = vmatmul.mubr.f32.vlgmr.msra.gmra.mxu0 %v5391_v11  ;;  %1565 = vmatmul.mubr.f32.vlgmr.msra.gmra.mxu1 %v5391_v11  ;;  %v6900_v11 = vld [vmem:[#allocation42_spill] sm:$0xff] }
 0x57f   :  { %1609 = vmatpush1.msra.mxu0 %v5115_v32  ;;  %1680 = vmatpush1.msra.mxu1 %v5118_v33 }
 0x580   :  { %1610 = vmatprep.subr.mxu0 %v5121_v58  ;;  %1681 = vmatprep.subr.mxu1 %v5124_v34 }
 0x581   :  { %1611 = vmatpush1.msra.mxu0 %v5127_v35  ;;  %1682 = vmatpush1.msra.mxu1 %v5130_v54 }
 0x582   :  { %1612 = vmatprep.subr.mxu0 %v5133_v2  ;;  %1683 = vmatprep.subr.mxu1 %v5136_v38 }
 0x583   :  { %1613 = vmatpush1.msra.mxu0 %v5139_v60  ;;  %1684 = vmatpush1.msra.mxu1 %v5142_v1 }
 0x584   :  { %1614 = vmatprep.subr.mxu0 %v5145_v29  ;;  %1685 = vmatprep.subr.mxu1 %v5148_v0 }
 0x585   :  { %1615 = vmatpush1.msra.mxu0 %v5151_v59  ;;  %1686 = vmatpush1.msra.mxu1 %v5154_v63 }
 0x586   :  { %1616 = vmatprep.subr.mxu0 %v5157_v47  ;;  %1687 = vmatprep.subr.mxu1 %v5160_v55 }
 0x587   :  { %1617 = vmatpush1.msra.mxu0 %v5163_v51  ;;  %1688 = vmatpush1.msra.mxu1 %v5166_v57 }
 0x588   :  { %1618 = vmatprep.subr.mxu0 %v5169_v56  ;;  %1689 = vmatprep.subr.mxu1 %v5172_v61 }
 0x589   :  { %1619 = vmatpush1.msra.mxu0 %v6859_v19  ;;  %1690 = vmatpush1.msra.mxu1 %v6860_v21 }
 0x58a   :  { %1620 = vmatprep.subr.mxu0 %v5181_v4  ;;  %1691 = vmatprep.subr.mxu1 %v5184_v28 }
 0x58b   :  { %1621 = vmatpush1.msra.mxu0 %v5187_v30  ;;  %1692 = vmatpush1.msra.mxu1 %v5190_v31 }
 0x58c   :  { %1622 = vmatprep.subr.mxu0 %v5193_v52  ;;  %1693 = vmatprep.subr.mxu1 %v5196_v20 }
 0x58d   :  { %1623 = vmatpush1.msra.mxu0 %v5277_v22  ;;  %1694 = vmatpush1.msra.mxu1 %v5280_v24 }
 0x58e   :  { %1624 = vmatprep.subr.mxu0 %v5283_v27  ;;  %1695 = vmatprep.subr.mxu1 %v5286_v36 }
 0x58f   :  { %1625 = vmatpush1.msra.mxu0 %v5289_v37  ;;  %1696 = vmatpush1.msra.mxu1 %v5292_v39 }
 0x590   :  { %1626 = vmatprep.subr.mxu0 %v5295_v40  ;;  %1697 = vmatprep.subr.mxu1 %v5298_v41 }
 0x591   :  { %1627 = vmatpush1.msra.mxu0 %v5301_v42  ;;  %1698 = vmatpush1.msra.mxu1 %v5304_v43 }
 0x592   :  { %1628 = vmatprep.subr.mxu0 %v5307_v44  ;;  %1699 = vmatprep.subr.mxu1 %v5310_v45 }
 0x593   :  { %1629 = vmatpush1.msra.mxu0 %v5313_v46  ;;  %1700 = vmatpush1.msra.mxu1 %v5316_v48 }
 0x594   :  { %1630 = vmatprep.subr.mxu0 %v5319_v49  ;;  %1701 = vmatprep.subr.mxu1 %v5322_v50 }
 0x595   :  { %1631 = vmatpush1.msra.mxu0 %v5325_v3  ;;  %1702 = vmatpush1.msra.mxu1 %v6883_v26 }
 0x596   :  { %1632 = vmatprep.subr.mxu0 %v6884_v15  ;;  %1703 = vmatprep.subr.mxu1 %v6885_v62 }
 0x597   :  { %1633 = vmatpush1.msra.mxu0 %v6886_v53  ;;  %1704 = vmatpush1.msra.mxu1 %v6887_v5  ;;  %v6905_v5 = vld [vmem:[#allocation64_spill] sm:$0xff] }
 0x598   :  { %1634 = vmatprep.subr.mxu0 %v6888_v13  ;;  %1705 = vmatprep.subr.mxu1 %v6889_v17 }
 0x599   :  { %1635 = vmatpush1.msra.mxu0 %v6890_v16  ;;  %1706 = vmatpush1.msra.mxu1 %v6891_v14  ;;  %v6901_v14 = vld [vmem:[#allocation26_spill] sm:$0xff] }
 0x59a   :  { %1636 = vmatprep.subr.mxu0 %v6892_v18  ;;  %1707 = vmatprep.subr.mxu1 %v6893_v9  ;;  %v6902_v18 = vld [vmem:[#allocation27_spill] sm:$0xff] }
 0x59b   :  { %1637 = vmatpush1.msra.mxu0 %v6894_v8  ;;  %1708 = vmatpush1.msra.mxu1 %v6895_v10  ;;  %v6903_v8 = vld [vmem:[#allocation63_spill] sm:$0xff] }
 0x59c   :  { %1638 = vmatprep.subr.mxu0 %v6896_v12  ;;  %1709 = vmatprep.subr.mxu1 %v6897_v6  ;;  %v6904_v12 = vld [vmem:[#allocation65_spill] sm:$0xff] }
 0x59d   :  { %1639 = vmatpush1.msra.mxu0 %v6898_v23  ;;  %1672 = vmatprep.mubr.f32.mxu0 %v6899_v25 }
 0x59e   :  { %1710 = vmatpush1.msra.mxu1 %v6900_v11  ;;  %1743 = vmatprep.mubr.f32.mxu1 %v6899_v25  ;;  %v6906_v25 = vld [vmem:[#allocation66_spill] sm:$0xff] }
 0x59f   :  { %1787 = vmatprep.subr.mxu0 %v6901_v14  ;;  %1858 = vmatprep.subr.mxu1 %v6902_v18 }
 0x63e   :  { %v1495_v9 = vpop.f32.mrf.mxu0  ;;  %v1566_v23 = vpop.f32.mrf.mxu1 }
 0x63f   :  { %v1571_v16 = vadd.f32 %v1495_v9, %v6903_v8  ;;  %v1573_v53 = vadd.f32 %v1566_v23, %v6905_v5 }
 0x640   :  { %v1497_v10 = vpop.f32.mrf.mxu0  ;;  %v1568_v11 = vpop.f32.mrf.mxu1 }
 0x641   :  { %v3861_v17 = vmul.f32 -1.442695, %v1571_v16  ;;  %v1572_v13 = vadd.f32 %v1497_v10, %v6904_v12  ;;  %v3863_v62 = vmul.f32 -1.442695, %v1573_v53  ;;  %v1574_v15 = vadd.f32 %v1568_v11, %v6906_v25 }
 0x643   :  { %3990 = vpow2.f32 %v3861_v17  ;;  %v3862_v6 = vmul.f32 -1.442695, %v1572_v13 }
 0x645   :  { %3992 = vpow2.f32 %v3862_v6 }
 0x646   :  { %3994 = vpow2.f32 %v3863_v62 }
 0x647   :  { %3996 = vtanh.f32 %v1574_v15 }
 0x650   :  { %v3991_v14 = vpop.eup %3990 }
 0x651   :  { %v1584_v26 = vadd.f32 1.0, %v3991_v14  ;;  %v2030_v14 = vld [vmem:[#allocation6 + $0x3e0] sm:$0xff] }
 0x652   :  { %v3993_v18 = vpop.eup %3992 }
 0x653   :  { %3998 = vrcp.f32 %v1584_v26  ;;  %v1585_v9 = vadd.f32 1.0, %v3993_v18  ;;  %v3995_v16 = vpop.eup %3994  ;;  %v2032_v18 = vld [vmem:[#allocation6 + $0x3f0] sm:$0xff] }
 0x654   :  { %v3997_v8 = vpop.eup %3996  ;;  %v1586_v12 = vadd.f32 1.0, %v3995_v16  ;;  %v2029_v16 = vld [vmem:[#allocation6 + $0x3d8] sm:$0xff] }
 0x655   :  { %4000 = vrcp.f32 %v1585_v9  ;;  %v2027_v9 = vld [vmem:[#allocation6 + $0x3c8] sm:$0xff] }
 0x656   :  { %4002 = vrcp.f32 %v1586_v12  ;;  %v2022_v12 = vld [vmem:[#allocation6 + $0x3a0] sm:$0xff] }
 0x660   :  { %v3999_v17 = vpop.eup %3998 }
 0x661   :  { %v1595_v13 = vmul.f32 %v3999_v17, %v3997_v8  ;;  %v2026_v8 = vld [vmem:[#allocation6 + $0x3c0] sm:$0xff]  ;;  %v2028_v17 = vld [vmem:[#allocation6 + $0x3d0] sm:$0xff] }
 0x662   :  { %v4001_v10 = vpop.eup %4000 }
 0x663   :  { %v1594_v5 = vmul.f32 %v4001_v10, %v5388_v7  ;;  %v4003_v11 = vpop.eup %4002  ;;  %v2025_v10 = vld [vmem:[#allocation6 + $0x3b8] sm:$0xff] }
 0x665   :  { %v5466_v6 = vadd.f32 %v1595_v13, %v1594_v5  ;;  %v2023_v13 = vld [vmem:[#allocation6 + $0x3a8] sm:$0xff]  ;;  %v2024_v5 = vld [vmem:[#allocation6 + $0x3b0] sm:$0xff] }
 0x667   :  { %4004 = vtanh.f32 %v5466_v6 }
 0x674   :  { %v4005_v62 = vpop.eup %4004 }
 0x675   :  { %v5469_v53 = vmul.f32 %v4005_v62, %v4003_v11  ;;  %v2021_v11 = vld [vmem:[#allocation6 + $0x398] sm:$0xff]  ;;  %v2018_v62 = vld [vmem:[#allocation6 + $0x380] sm:$0xff] }
 0x677   :  { %1673 = vmatmul.mubr.f32.vlgmr.msra.gmra.mxu0 %v5469_v53  ;;  %1744 = vmatmul.mubr.f32.vlgmr.msra.gmra.mxu1 %v5469_v53 }
 0x678   :  { %1788 = vmatpush1.msra.mxu0 %v5115_v32  ;;  %1859 = vmatpush1.msra.mxu1 %v5118_v33  ;;  %v6907_v32 = vld [vmem:[#allocation25_spill] sm:$0xff] }
 0x679   :  { %1789 = vmatprep.subr.mxu0 %v5121_v58  ;;  %1860 = vmatprep.subr.mxu1 %v5124_v34  ;;  %v6908_v33 = vld [vmem:[#allocation49_spill] sm:$0xff]  ;;  %v6909_v58 = vld [vmem:[#allocation48_spill] sm:$0xff]  ;;  %v6910_v34 = vld [vmem:[#allocation50_spill] sm:$0xff] }
 0x67a   :  { %1790 = vmatpush1.msra.mxu0 %v5127_v35  ;;  %1861 = vmatpush1.msra.mxu1 %v5130_v54  ;;  %v6911_v35 = vld [vmem:[#allocation30_spill] sm:$0xff]  ;;  %v6912_v54 = vld [vmem:[#allocation31_spill] sm:$0xff] }
 0x67b   :  { %1791 = vmatprep.subr.mxu0 %v5133_v2  ;;  %1862 = vmatprep.subr.mxu1 %v5136_v38  ;;  %v6913_v2 = vld [vmem:[#allocation32_spill] sm:$0xff]  ;;  %v6914_v38 = vld [vmem:[#allocation33_spill] sm:$0xff] }
 0x67c   :  { %1792 = vmatpush1.msra.mxu0 %v5139_v60  ;;  %1863 = vmatpush1.msra.mxu1 %v5142_v1  ;;  %v6915_v60 = vld [vmem:[#allocation34_spill] sm:$0xff]  ;;  %v6916_v1 = vld [vmem:[#allocation35_spill] sm:$0xff] }
 0x67d   :  { %1793 = vmatprep.subr.mxu0 %v5145_v29  ;;  %1864 = vmatprep.subr.mxu1 %v5148_v0  ;;  %v6917_v29 = vld [vmem:[#allocation36_spill] sm:$0xff]  ;;  %v6918_v0 = vld [vmem:[#allocation37_spill] sm:$0xff] }
 0x67e   :  { %1794 = vmatpush1.msra.mxu0 %v5151_v59  ;;  %1865 = vmatpush1.msra.mxu1 %v5154_v63  ;;  %v6919_v59 = vld [vmem:[#allocation38_spill] sm:$0xff]  ;;  %v6920_v63 = vld [vmem:[#allocation39_spill] sm:$0xff] }
 0x67f   :  { %1795 = vmatprep.subr.mxu0 %v5157_v47  ;;  %1866 = vmatprep.subr.mxu1 %v5160_v55  ;;  %v6921_v47 = vld [vmem:[#allocation40_spill] sm:$0xff]  ;;  %v6922_v55 = vld [vmem:[#allocation41_spill] sm:$0xff] }
 0x680   :  { %1796 = vmatpush1.msra.mxu0 %v5163_v51  ;;  %1867 = vmatpush1.msra.mxu1 %v5166_v57  ;;  %v6923_v51 = vld [vmem:[#allocation42_spill] sm:$0xff]  ;;  %v6924_v57 = vmov 0.0  }
 0x681   :  { %1797 = vmatprep.subr.mxu0 %v5169_v56  ;;  %1868 = vmatprep.subr.mxu1 %v5172_v61  ;;  %v2031_v56 = vld [vmem:[#allocation6 + $0x3e8] sm:$0xff]  ;;  %v2033_v61 = vld [vmem:[#allocation6 + $0x3f8] sm:$0xff] }
 0x682   :  { %1798 = vmatpush1.msra.mxu0 %v6859_v19  ;;  %1869 = vmatpush1.msra.mxu1 %v6860_v21 }
 0x683   :  { %1799 = vmatprep.subr.mxu0 %v5181_v4  ;;  %1870 = vmatprep.subr.mxu1 %v5184_v28 }
 0x684   :  { %1800 = vmatpush1.msra.mxu0 %v5187_v30  ;;  %1871 = vmatpush1.msra.mxu1 %v5190_v31  ;;  %v6926_v31 = vld [vmem:[#allocation69_spill] sm:$0xff] }
 0x685   :  { %1801 = vmatprep.subr.mxu0 %v5193_v52  ;;  %1872 = vmatprep.subr.mxu1 %v5196_v20  ;;  %v6925_v20 = vld [vmem:[#allocation67_spill] sm:$0xff] }
 0x686   :  { %1802 = vmatpush1.msra.mxu0 %v5277_v22  ;;  %1873 = vmatpush1.msra.mxu1 %v5280_v24  ;;  %v6927_v24 = vld [vmem:[#allocation68_spill] sm:$0xff] }
 0x687   :  { %1803 = vmatprep.subr.mxu0 %v5283_v27  ;;  %1874 = vmatprep.subr.mxu1 %v5286_v36 }
 0x688   :  { %1804 = vmatpush1.msra.mxu0 %v5289_v37  ;;  %1875 = vmatpush1.msra.mxu1 %v5292_v39  ;;  %v6928_v39 = vld [vmem:[#allocation70_spill] sm:$0xff] }
 0x689   :  { %1805 = vmatprep.subr.mxu0 %v5295_v40  ;;  %1876 = vmatprep.subr.mxu1 %v5298_v41 }
 0x68a   :  { %1806 = vmatpush1.msra.mxu0 %v5301_v42  ;;  %1877 = vmatpush1.msra.mxu1 %v5304_v43 }
 0x68b   :  { %1807 = vmatprep.subr.mxu0 %v5307_v44  ;;  %1878 = vmatprep.subr.mxu1 %v5310_v45 }
 0x68c   :  { %1808 = vmatpush1.msra.mxu0 %v5313_v46  ;;  %1879 = vmatpush1.msra.mxu1 %v5316_v48 }
 0x68d   :  { %1809 = vmatprep.subr.mxu0 %v5319_v49  ;;  %1880 = vmatprep.subr.mxu1 %v5322_v50 }
 0x68e   :  { %1810 = vmatpush1.msra.mxu0 %v5325_v3  ;;  %1881 = vmatpush1.msra.mxu1 %v6907_v32  ;;  %v2020_v32 = vld [vmem:[#allocation6 + $0x390] sm:$0xff] }
 0x68f   :  { %1811 = vmatprep.subr.mxu0 %v6908_v33  ;;  %1882 = vmatprep.subr.mxu1 %v6909_v58  ;;  %v2015_v33 = vld [vmem:[#allocation6 + $0x368] sm:$0xff]  ;;  %v2017_v58 = vld [vmem:[#allocation6 + $0x378] sm:$0xff] }
 0x690   :  { %1812 = vmatpush1.msra.mxu0 %v6910_v34  ;;  %1883 = vmatpush1.msra.mxu1 %v6911_v35  ;;  %v2014_v34 = vld [vmem:[#allocation6 + $0x360] sm:$0xff]  ;;  %v2016_v35 = vld [vmem:[#allocation6 + $0x370] sm:$0xff] }
 0x691   :  { %1813 = vmatprep.subr.mxu0 %v6912_v54  ;;  %1884 = vmatprep.subr.mxu1 %v6913_v2  ;;  %v2011_v54 = vld [vmem:[#allocation6 + $0x348] sm:$0xff]  ;;  %v2013_v2 = vld [vmem:[#allocation6 + $0x358] sm:$0xff] }
 0x692   :  { %1814 = vmatpush1.msra.mxu0 %v6914_v38  ;;  %1885 = vmatpush1.msra.mxu1 %v6915_v60  ;;  %v2010_v38 = vld [vmem:[#allocation6 + $0x340] sm:$0xff]  ;;  %v2012_v60 = vld [vmem:[#allocation6 + $0x350] sm:$0xff] }
 0x693   :  { %1815 = vmatprep.subr.mxu0 %v6916_v1  ;;  %1886 = vmatprep.subr.mxu1 %v6917_v29  ;;  %v2007_v1 = vld [vmem:[#allocation6 + $0x328] sm:$0xff]  ;;  %v2009_v29 = vld [vmem:[#allocation6 + $0x338] sm:$0xff] }
 0x694   :  { %1816 = vmatpush1.msra.mxu0 %v6918_v0  ;;  %1887 = vmatpush1.msra.mxu1 %v6919_v59  ;;  %v2006_v0 = vld [vmem:[#allocation6 + $0x320] sm:$0xff]  ;;  %v2008_v59 = vld [vmem:[#allocation6 + $0x330] sm:$0xff] }
 0x695   :  { %1817 = vmatprep.subr.mxu0 %v6920_v63  ;;  %1888 = vmatprep.subr.mxu1 %v6921_v47  ;;  %v2003_v63 = vld [vmem:[#allocation6 + $0x308] sm:$0xff]  ;;  %v2005_v47 = vld [vmem:[#allocation6 + $0x318] sm:$0xff] }
 0x696   :  { %1818 = vmatpush1.msra.mxu0 %v6922_v55  ;;  %1889 = vmatpush1.msra.mxu1 %v6923_v51  ;;  %v2002_v55 = vld [vmem:[#allocation6 + $0x300] sm:$0xff]  ;;  %v2004_v51 = vld [vmem:[#allocation6 + $0x310] sm:$0xff] }
 0x697   :  { %1851 = vmatprep.mubr.f32.mxu0 %v6924_v57  ;;  %1922 = vmatprep.mubr.f32.mxu1 %v6924_v57 }
 0x698   :  { %2057 = vmatprep.subr.mxu0 %v2031_v56  ;;  %2170 = vmatprep.subr.mxu1 %v2033_v61  ;;  %v1999_v56 = vld [vmem:[#allocation6 + $0x2e8] sm:$0xff]  ;;  %v2001_v61 = vld [vmem:[#allocation6 + $0x2f8] sm:$0xff] }
 0x737   :  { %v1674_v52 = vpop.f32.mrf.mxu0  ;;  %v1745_v22 = vpop.f32.mrf.mxu1 }
 0x738   :  { %v1750_v4 = vadd.f32 %v1674_v52, %v6925_v20  ;;  %v1752_v27 = vadd.f32 %v1745_v22, %v6927_v24  ;;  %v1998_v52 = vld [vmem:[#allocation6 + $0x2e0] sm:$0xff]  ;;  %v2000_v20 = vld [vmem:[#allocation6 + $0x2f0] sm:$0xff] }
 0x739   :  { %v1676_v28 = vpop.f32.mrf.mxu0  ;;  %v1747_v36 = vpop.f32.mrf.mxu1  ;;  %v1990_v22 = vld [vmem:[#allocation6 + $0x2a0] sm:$0xff]  ;;  %v1992_v24 = vld [vmem:[#allocation6 + $0x2b0] sm:$0xff] }
 0x73a   :  { %v3864_v30 = vmul.f32 -1.442695, %v1750_v4  ;;  %v1751_v19 = vadd.f32 %v1676_v28, %v6926_v31  ;;  %v3866_v37 = vmul.f32 -1.442695, %v1752_v27  ;;  %v1753_v40 = vadd.f32 %v1747_v36, %v6928_v39  ;;  %v1995_v4 = vld [vmem:[#allocation6 + $0x2c8] sm:$0xff]  ;;  %v1997_v28 = vld [vmem:[#allocation6 + $0x2d8] sm:$0xff] }
 0x73b   :  { %v1996_v31 = vld [vmem:[#allocation6 + $0x2d0] sm:$0xff]  ;;  %v1987_v27 = vld [vmem:[#allocation6 + $0x288] sm:$0xff]  ;;  %v1989_v36 = vld [vmem:[#allocation6 + $0x298] sm:$0xff] }
 0x73c   :  { %4006 = vpow2.f32 %v3864_v30  ;;  %v3865_v21 = vmul.f32 -1.442695, %v1751_v19  ;;  %v1994_v30 = vld [vmem:[#allocation6 + $0x2c0] sm:$0xff]  ;;  %v1991_v19 = vld [vmem:[#allocation6 + $0x2a8] sm:$0xff]  ;;  %v1988_v39 = vld [vmem:[#allocation6 + $0x290] sm:$0xff] }
 0x73e   :  { %4008 = vpow2.f32 %v3865_v21  ;;  %v1993_v21 = vld [vmem:[#allocation6 + $0x2b8] sm:$0xff] }
 0x73f   :  { %4010 = vpow2.f32 %v3866_v37  ;;  %v1986_v37 = vld [vmem:[#allocation6 + $0x280] sm:$0xff] }
 0x740   :  { %4012 = vtanh.f32 %v1753_v40  ;;  %v1983_v40 = vld [vmem:[#allocation6 + $0x268] sm:$0xff] }
 0x749   :  { %v4007_v41 = vpop.eup %4006 }
 0x74a   :  { %v1763_v42 = vadd.f32 1.0, %v4007_v41  ;;  %v1985_v41 = vld [vmem:[#allocation6 + $0x278] sm:$0xff] }
 0x74b   :  { %v4009_v43 = vpop.eup %4008 }
 0x74c   :  { %4014 = vrcp.f32 %v1763_v42  ;;  %v1764_v44 = vadd.f32 1.0, %v4009_v43  ;;  %v4011_v45 = vpop.eup %4010  ;;  %v1982_v42 = vld [vmem:[#allocation6 + $0x260] sm:$0xff]  ;;  %v1984_v43 = vld [vmem:[#allocation6 + $0x270] sm:$0xff] }
 0x74d   :  { %v4013_v46 = vpop.eup %4012  ;;  %v1765_v3 = vadd.f32 1.0, %v4011_v45  ;;  %v1981_v45 = vld [vmem:[#allocation6 + $0x258] sm:$0xff] }
 0x74e   :  { %4016 = vrcp.f32 %v1764_v44  ;;  %v1979_v44 = vld [vmem:[#allocation6 + $0x248] sm:$0xff] }
 0x74f   :  { %4018 = vrcp.f32 %v1765_v3  ;;  %v1974_v3 = vld [vmem:[#allocation6 + $0x220] sm:$0xff] }
 0x759   :  { %v4015_v48 = vpop.eup %4014 }
 0x75a   :  { %v1774_v49 = vmul.f32 %v4015_v48, %v4013_v46  ;;  %v1978_v46 = vld [vmem:[#allocation6 + $0x240] sm:$0xff]  ;;  %v1980_v48 = vld [vmem:[#allocation6 + $0x250] sm:$0xff] }
 0x75b   :  { %v4017_v50 = vpop.eup %4016 }
 0x75c   :  { %v1773_v7 = vmul.f32 %v4017_v50, %v5466_v6  ;;  %v4019_v15 = vpop.eup %4018  ;;  %v2019_v6 = vld [vmem:[#allocation6 + $0x388] sm:$0xff]  ;;  %v1977_v50 = vld [vmem:[#allocation6 + $0x238] sm:$0xff] }
 0x75e   :  { %v5542_v26 = vadd.f32 %v1774_v49, %v1773_v7  ;;  %v1975_v49 = vld [vmem:[#allocation6 + $0x228] sm:$0xff]  ;;  %v1976_v7 = vld [vmem:[#allocation6 + $0x230] sm:$0xff] }
 0x760   :  { %4020 = vtanh.f32 %v5542_v26 }
 0x76d   :  { %v4021_v23 = vpop.eup %4020 }
 0x76e   :  { %v5545_v25 = vmul.f32 %v4021_v23, %v4019_v15  ;;  %v1971_v15 = vld [vmem:[#allocation6 + $0x208] sm:$0xff]  ;;  %v1973_v23 = vld [vmem:[#allocation6 + $0x218] sm:$0xff] }
 0x770   :  { %1852 = vmatmul.mubr.f32.vlgmr.msra.gmra.mxu0 %v5545_v25  ;;  %1923 = vmatmul.mubr.f32.vlgmr.msra.gmra.mxu1 %v5545_v25 }
 0x771   :  { %2058 = vmatpush1.msra.mxu0 %v2030_v14  ;;  %2171 = vmatpush1.msra.mxu1 %v2032_v18  ;;  %v1970_v14 = vld [vmem:[#allocation6 + $0x200] sm:$0xff]  ;;  %v1972_v18 = vld [vmem:[#allocation6 + $0x210] sm:$0xff] }
 0x772   :  { %2059 = vmatprep.subr.mxu0 %v2027_v9  ;;  %2172 = vmatprep.subr.mxu1 %v2029_v16  ;;  %v1961_v9 = vld [vmem:[#allocation14] sm:$0xff]  ;;  %v1962_v16 = vld [vmem:[#allocation14 + $0x8] sm:$0xff] }
 0x773   :  { %2060 = vmatpush1.msra.mxu0 %v2026_v8  ;;  %2173 = vmatpush1.msra.mxu1 %v2028_v17  ;;  %v1963_v8 = vld [vmem:[#allocation14 + $0x10] sm:$0xff]  ;;  %v6929_v17 = vld [vmem:[#allocation24_spill] sm:$0xff] }
 0x774   :  { %2061 = vmatprep.subr.mxu0 %v2023_v13  ;;  %2174 = vmatprep.subr.mxu1 %v2025_v10  ;;  %v6930_v13 = vld [vmem:[#allocation43_spill] sm:$0xff]  ;;  %v5573_v10 = vld [vmem:[#allocation8 + $0x3e8] sm:$0xff] }
 0x775   :  { %2062 = vmatpush1.msra.mxu0 %v2022_v12  ;;  %2175 = vmatpush1.msra.mxu1 %v2024_v5  ;;  %6931 = vst [vmem:[#allocation44_spill] sm:$0xff] %v5573_v10  ;;  %v5575_v12 = vld [vmem:[#allocation8 + $0x3f8] sm:$0xff]  ;;  %v5581_v5 = vld [vmem:[#allocation8 + $0x3f0] sm:$0xff] }
 0x776   :  { %2063 = vmatprep.subr.mxu0 %v2019_v6  ;;  %2176 = vmatprep.subr.mxu1 %v2021_v11  ;;  %6932 = vst [vmem:[#allocation45_spill] sm:$0xff] %v5575_v12  ;;  %v5587_v6 = vld [vmem:[#allocation8 + $0x3d8] sm:$0xff]  ;;  %v5591_v11 = vld [vmem:[#allocation8 + $0x3c0] sm:$0xff] }
 0x777   :  { %2064 = vmatpush1.msra.mxu0 %v2018_v62  ;;  %2177 = vmatpush1.msra.mxu1 %v2020_v32  ;;  %v5593_v62 = vld [vmem:[#allocation8 + $0x3d0] sm:$0xff]  ;;  %v5597_v32 = vld [vmem:[#allocation8 + $0x3a8] sm:$0xff] }
 0x778   :  { %2065 = vmatprep.subr.mxu0 %v2015_v33  ;;  %2178 = vmatprep.subr.mxu1 %v2017_v58  ;;  %v5599_v33 = vld [vmem:[#allocation8 + $0x3b8] sm:$0xff]  ;;  %v5603_v58 = vld [vmem:[#allocation8 + $0x3a0] sm:$0xff] }
 0x779   :  { %2066 = vmatpush1.msra.mxu0 %v2014_v34  ;;  %2179 = vmatpush1.msra.mxu1 %v2016_v35  ;;  %v5605_v34 = vld [vmem:[#allocation8 + $0x3b0] sm:$0xff]  ;;  %v5609_v35 = vld [vmem:[#allocation8 + $0x388] sm:$0xff] }
 0x77a   :  { %2067 = vmatprep.subr.mxu0 %v2011_v54  ;;  %2180 = vmatprep.subr.mxu1 %v2013_v2  ;;  %v5611_v54 = vld [vmem:[#allocation8 + $0x398] sm:$0xff]  ;;  %v5615_v2 = vld [vmem:[#allocation8 + $0x380] sm:$0xff] }
 0x77b   :  { %2068 = vmatpush1.msra.mxu0 %v2010_v38  ;;  %2181 = vmatpush1.msra.mxu1 %v2012_v60  ;;  %v5617_v38 = vld [vmem:[#allocation8 + $0x390] sm:$0xff]  ;;  %v5621_v60 = vld [vmem:[#allocation8 + $0x368] sm:$0xff] }
 0x77c   :  { %2069 = vmatprep.subr.mxu0 %v2007_v1  ;;  %2182 = vmatprep.subr.mxu1 %v2009_v29  ;;  %v5623_v1 = vld [vmem:[#allocation8 + $0x378] sm:$0xff]  ;;  %v5627_v29 = vld [vmem:[#allocation8 + $0x360] sm:$0xff] }
 0x77d   :  { %2070 = vmatpush1.msra.mxu0 %v2006_v0  ;;  %2183 = vmatpush1.msra.mxu1 %v2008_v59  ;;  %v5629_v0 = vld [vmem:[#allocation8 + $0x370] sm:$0xff]  ;;  %v5633_v59 = vld [vmem:[#allocation8 + $0x348] sm:$0xff] }
 0x77e   :  { %2071 = vmatprep.subr.mxu0 %v2003_v63  ;;  %2184 = vmatprep.subr.mxu1 %v2005_v47  ;;  %v5635_v63 = vld [vmem:[#allocation8 + $0x358] sm:$0xff]  ;;  %v5639_v47 = vld [vmem:[#allocation8 + $0x340] sm:$0xff] }
 0x77f   :  { %2072 = vmatpush1.msra.mxu0 %v2002_v55  ;;  %2185 = vmatpush1.msra.mxu1 %v2004_v51  ;;  %v5641_v55 = vld [vmem:[#allocation8 + $0x350] sm:$0xff]  ;;  %v5645_v51 = vld [vmem:[#allocation8 + $0x328] sm:$0xff] }
 0x780   :  { %2073 = vmatprep.subr.mxu0 %v1999_v56  ;;  %2186 = vmatprep.subr.mxu1 %v2001_v61  ;;  %v5647_v56 = vld [vmem:[#allocation8 + $0x338] sm:$0xff]  ;;  %v5651_v61 = vld [vmem:[#allocation8 + $0x320] sm:$0xff] }
 0x781   :  { %2074 = vmatpush1.msra.mxu0 %v1998_v52  ;;  %2187 = vmatpush1.msra.mxu1 %v2000_v20  ;;  %v5653_v52 = vld [vmem:[#allocation8 + $0x330] sm:$0xff]  ;;  %v5657_v20 = vld [vmem:[#allocation8 + $0x308] sm:$0xff] }
 0x782   :  { %2075 = vmatprep.subr.mxu0 %v1995_v4  ;;  %2188 = vmatprep.subr.mxu1 %v1997_v28  ;;  %v5659_v4 = vld [vmem:[#allocation8 + $0x318] sm:$0xff]  ;;  %v5663_v28 = vld [vmem:[#allocation8 + $0x300] sm:$0xff] }
 0x783   :  { %2076 = vmatpush1.msra.mxu0 %v1994_v30  ;;  %2189 = vmatpush1.msra.mxu1 %v1996_v31  ;;  %v5665_v30 = vld [vmem:[#allocation8 + $0x310] sm:$0xff]  ;;  %v5669_v31 = vld [vmem:[#allocation8 + $0x2e8] sm:$0xff] }
 0x784   :  { %2077 = vmatprep.subr.mxu0 %v1991_v19  ;;  %2190 = vmatprep.subr.mxu1 %v1993_v21  ;;  %v5671_v19 = vld [vmem:[#allocation8 + $0x2f8] sm:$0xff]  ;;  %v5675_v21 = vld [vmem:[#allocation8 + $0x2e0] sm:$0xff] }
 0x785   :  { %2078 = vmatpush1.msra.mxu0 %v1990_v22  ;;  %2191 = vmatpush1.msra.mxu1 %v1992_v24  ;;  %v5677_v22 = vld [vmem:[#allocation8 + $0x2f0] sm:$0xff]  ;;  %v5681_v24 = vld [vmem:[#allocation8 + $0x2c8] sm:$0xff] }
 0x786   :  { %2079 = vmatprep.subr.mxu0 %v1987_v27  ;;  %2192 = vmatprep.subr.mxu1 %v1989_v36  ;;  %v5683_v27 = vld [vmem:[#allocation8 + $0x2d8] sm:$0xff]  ;;  %v5687_v36 = vld [vmem:[#allocation8 + $0x2c0] sm:$0xff] }
 0x787   :  { %2080 = vmatpush1.msra.mxu0 %v1986_v37  ;;  %2193 = vmatpush1.msra.mxu1 %v1988_v39  ;;  %v5689_v37 = vld [vmem:[#allocation8 + $0x2d0] sm:$0xff]  ;;  %v5693_v39 = vld [vmem:[#allocation8 + $0x2a8] sm:$0xff] }
 0x788   :  { %2081 = vmatprep.subr.mxu0 %v1983_v40  ;;  %2194 = vmatprep.subr.mxu1 %v1985_v41  ;;  %v5695_v40 = vld [vmem:[#allocation8 + $0x2b8] sm:$0xff]  ;;  %v5699_v41 = vld [vmem:[#allocation8 + $0x2a0] sm:$0xff] }
 0x789   :  { %2082 = vmatpush1.msra.mxu0 %v1982_v42  ;;  %2195 = vmatpush1.msra.mxu1 %v1984_v43  ;;  %v5701_v42 = vld [vmem:[#allocation8 + $0x2b0] sm:$0xff]  ;;  %v5705_v43 = vld [vmem:[#allocation8 + $0x288] sm:$0xff] }
 0x78a   :  { %2083 = vmatprep.subr.mxu0 %v1979_v44  ;;  %2196 = vmatprep.subr.mxu1 %v1981_v45  ;;  %6933 = vst [vmem:[#allocation46_spill] sm:$0xff] %v5701_v42  ;;  %6934 = vst [vmem:[#allocation51_spill] sm:$0xff] %v5705_v43  ;;  %v5707_v44 = vld [vmem:[#allocation8 + $0x298] sm:$0xff]  ;;  %v5711_v45 = vld [vmem:[#allocation8 + $0x280] sm:$0xff] }
 0x78b   :  { %2084 = vmatpush1.msra.mxu0 %v1978_v46  ;;  %2197 = vmatpush1.msra.mxu1 %v1980_v48  ;;  %6935 = vst [vmem:[#allocation53_spill] sm:$0xff] %v5707_v44  ;;  %6936 = vst [vmem:[#allocation52_spill] sm:$0xff] %v5711_v45  ;;  %v5713_v46 = vld [vmem:[#allocation8 + $0x290] sm:$0xff]  ;;  %v5717_v48 = vld [vmem:[#allocation8 + $0x268] sm:$0xff] }
 0x78c   :  { %2085 = vmatprep.subr.mxu0 %v1975_v49  ;;  %2198 = vmatprep.subr.mxu1 %v1977_v50  ;;  %6937 = vst [vmem:[#allocation54_spill] sm:$0xff] %v5713_v46  ;;  %6938 = vst [vmem:[#allocation55_spill] sm:$0xff] %v5717_v48  ;;  %v5719_v49 = vld [vmem:[#allocation8 + $0x278] sm:$0xff]  ;;  %v5723_v50 = vld [vmem:[#allocation8 + $0x260] sm:$0xff] }
 0x78d   :  { %2086 = vmatpush1.msra.mxu0 %v1974_v3  ;;  %2199 = vmatpush1.msra.mxu1 %v1976_v7  ;;  %6939 = vst [vmem:[#allocation57_spill] sm:$0xff] %v5719_v49  ;;  %6940 = vst [vmem:[#allocation56_spill] sm:$0xff] %v5723_v50  ;;  %v5725_v3 = vld [vmem:[#allocation8 + $0x270] sm:$0xff]  ;;  %v5729_v7 = vld [vmem:[#allocation8 + $0x248] sm:$0xff] }
 0x78e   :  { %2087 = vmatprep.subr.mxu0 %v1971_v15  ;;  %2200 = vmatprep.subr.mxu1 %v1973_v23  ;;  %6941 = vst [vmem:[#allocation58_spill] sm:$0xff] %v5725_v3  ;;  %6942 = vst [vmem:[#allocation28_spill] sm:$0xff] %v5729_v7  ;;  %v5731_v15 = vld [vmem:[#allocation8 + $0x258] sm:$0xff]  ;;  %v5735_v23 = vld [vmem:[#allocation8 + $0x240] sm:$0xff] }
 0x78f   :  { %2088 = vmatpush1.msra.mxu0 %v1970_v14  ;;  %2121 = vmatprep.mubr.f32.mxu0 %v6924_v57  ;;  %6943 = vst [vmem:[#allocation29_spill] sm:$0xff] %v5731_v15  ;;  %6944 = vst [vmem:[#allocation59_spill] sm:$0xff] %v5735_v23  ;;  %v5737_v14 = vld [vmem:[#allocation8 + $0x250] sm:$0xff] }
 0x790   :  { %2201 = vmatpush1.msra.mxu1 %v1972_v18  ;;  %2234 = vmatprep.mubr.f32.mxu1 %v6924_v57  ;;  %6945 = vst [vmem:[#allocation61_spill] sm:$0xff] %v5737_v14  ;;  %v5741_v18 = vld [vmem:[#allocation8 + $0x228] sm:$0xff] }
 0x791   :  { %2122 = vmatmul.mubr.f32.vlgmr.msra.gmra.mxu0 %v1961_v9  ;;  %2235 = vmatmul.mubr.f32.vlgmr.msra.gmra.mxu1 %v1961_v9  ;;  %6946 = vst [vmem:[#allocation60_spill] sm:$0xff] %v5741_v18  ;;  %v5743_v9 = vld [vmem:[#allocation8 + $0x238] sm:$0xff] }
 0x792   :  { %2127 = vmatprep.mubr.f32.mxu0 %v6924_v57  ;;  %2240 = vmatprep.mubr.f32.mxu1 %v6924_v57  ;;  %6947 = vst [vmem:[#allocation62_spill] sm:$0xff] %v5743_v9 }
 0x793   :  { %2388 = vmatprep.subr.mxu0 %v5573_v10  ;;  %2459 = vmatprep.subr.mxu1 %v5575_v12 }
 0x794   :  { %2460 = vmatpush1.msra.mxu1 %v5581_v5 }
 0x795   :  { %2128 = vmatmul.mubr.f32.gmra.mxu0 %v1962_v16  ;;  %2241 = vmatmul.mubr.f32.gmra.mxu1 %v1962_v16  ;;  %v5747_v16 = vld [vmem:[#allocation8 + $0x220] sm:$0xff] }
 0x796   :  { %2133 = vmatprep.mubr.f32.mxu0 %v6924_v57  ;;  %2246 = vmatprep.mubr.f32.mxu1 %v6924_v57  ;;  %6948 = vst [vmem:[#allocation26_spill] sm:$0xff] %v5747_v16 }
 0x797   :  { %2461 = vmatprep.subr.mxu1 %v5587_v6 }
 0x798   :  { %2462 = vmatpush1.msra.mxu1 %v5593_v62 }
 0x799   :  { %2134 = vmatmul.mubr.f32.gmra.mxu0 %v1963_v8  ;;  %2247 = vmatmul.mubr.f32.gmra.mxu1 %v1963_v8  ;;  %v5749_v8 = vld [vmem:[#allocation8 + $0x230] sm:$0xff] }
 0x79a   :  { %2139 = vmatprep.mubr.f32.mxu0 %v6924_v57  ;;  %2252 = vmatprep.mubr.f32.mxu1 %v6924_v57  ;;  %6949 = vst [vmem:[#allocation27_spill] sm:$0xff] %v5749_v8 }
 0x79b   :  { %2463 = vmatprep.subr.mxu1 %v5599_v33 }
 0x79c   :  { %2464 = vmatpush1.msra.mxu1 %v5605_v34 }
 0x79d   :  { %2140 = vmatmul.mubr.f32.gmra.mxu0 %v6929_v17  ;;  %2253 = vmatmul.mubr.f32.gmra.mxu1 %v6929_v17  ;;  %v5751_v17 = vld [vmem:[#allocation8 + $0x208] sm:$0xff] }
 0x79e   :  { %2145 = vmatprep.mubr.f32.mxu0 %v6924_v57  ;;  %2258 = vmatprep.mubr.f32.mxu1 %v6924_v57  ;;  %6950 = vst [vmem:[#allocation63_spill] sm:$0xff] %v5751_v17 }
 0x79f   :  { %2465 = vmatprep.subr.mxu1 %v5611_v54 }
 0x7a0   :  { %2466 = vmatpush1.msra.mxu1 %v5617_v38 }
 0x7a1   :  { %2146 = vmatmul.mubr.f32.gmra.mxu0 %v6930_v13  ;;  %2259 = vmatmul.mubr.f32.gmra.mxu1 %v6930_v13  ;;  %v5755_v13 = vld [vmem:[#allocation8 + $0x218] sm:$0xff] }
 0x7a2   :  { %2151 = vmatprep.mubr.f32.mxu0 %v6924_v57  ;;  %2264 = vmatprep.mubr.f32.mxu1 %v6924_v57  ;;  %6951 = vst [vmem:[#allocation65_spill] sm:$0xff] %v5755_v13 }
 0x7a3   :  { %2467 = vmatprep.subr.mxu1 %v5623_v1 }
 0x7a4   :  { %2468 = vmatpush1.msra.mxu1 %v5629_v0 }
 0x7a5   :  { %2152 = vmatmul.mubr.f32.gmra.mxu0 %v5469_v53  ;;  %2265 = vmatmul.mubr.f32.gmra.mxu1 %v5469_v53  ;;  %v5579_v53 = vld [vmem:[#allocation8 + $0x3e0] sm:$0xff] }
 0x7a6   :  { %2157 = vmatprep.mubr.f32.mxu0 %v6924_v57  ;;  %2270 = vmatprep.mubr.f32.mxu1 %v6924_v57 }
 0x7a7   :  { %2389 = vmatpush1.msra.mxu0 %v5579_v53  ;;  %2469 = vmatprep.subr.mxu1 %v5635_v63 }
 0x7a8   :  { %2470 = vmatpush1.msra.mxu1 %v5641_v55 }
 0x7a9   :  { %2158 = vmatmul.mubr.f32.gmra.mxu0 %v5545_v25  ;;  %2271 = vmatmul.mubr.f32.gmra.mxu1 %v5545_v25  ;;  %v5585_v25 = vld [vmem:[#allocation8 + $0x3c8] sm:$0xff] }
 0x7aa   :  { %2163 = vmatprep.mubr.f32.mxu0 %v6924_v57  ;;  %2276 = vmatprep.mubr.f32.mxu1 %v6924_v57 }
 0x7ab   :  { %2390 = vmatprep.subr.mxu0 %v5585_v25  ;;  %2471 = vmatprep.subr.mxu1 %v5647_v56 }
 0x7ac   :  { %2391 = vmatpush1.msra.mxu0 %v5591_v11  ;;  %2472 = vmatpush1.msra.mxu1 %v5653_v52 }
 0x7ad   :  { %2392 = vmatprep.subr.mxu0 %v5597_v32  ;;  %2473 = vmatprep.subr.mxu1 %v5659_v4 }
 0x7ae   :  { %2393 = vmatpush1.msra.mxu0 %v5603_v58  ;;  %2474 = vmatpush1.msra.mxu1 %v5665_v30 }
 0x7af   :  { %2394 = vmatprep.subr.mxu0 %v5609_v35  ;;  %2475 = vmatprep.subr.mxu1 %v5671_v19 }
 0x7b0   :  { %2395 = vmatpush1.msra.mxu0 %v5615_v2  ;;  %2476 = vmatpush1.msra.mxu1 %v5677_v22 }
 0x7b1   :  { %2396 = vmatprep.subr.mxu0 %v5621_v60  ;;  %2477 = vmatprep.subr.mxu1 %v5683_v27 }
 0x7b2   :  { %2397 = vmatpush1.msra.mxu0 %v5627_v29  ;;  %2478 = vmatpush1.msra.mxu1 %v5689_v37 }
 0x7b3   :  { %2398 = vmatprep.subr.mxu0 %v5633_v59  ;;  %2479 = vmatprep.subr.mxu1 %v5695_v40 }
 0x7b4   :  { %2399 = vmatpush1.msra.mxu0 %v5639_v47  ;;  %2480 = vmatpush1.msra.mxu1 %v5701_v42 }
 0x7b5   :  { %2400 = vmatprep.subr.mxu0 %v5645_v51  ;;  %2481 = vmatprep.subr.mxu1 %v5707_v44 }
 0x7b6   :  { %2401 = vmatpush1.msra.mxu0 %v5651_v61  ;;  %2482 = vmatpush1.msra.mxu1 %v5713_v46 }
 0x7b7   :  { %2402 = vmatprep.subr.mxu0 %v5657_v20  ;;  %2483 = vmatprep.subr.mxu1 %v5719_v49 }
 0x7b8   :  { %2403 = vmatpush1.msra.mxu0 %v5663_v28  ;;  %2484 = vmatpush1.msra.mxu1 %v5725_v3 }
 0x7b9   :  { %2404 = vmatprep.subr.mxu0 %v5669_v31  ;;  %2485 = vmatprep.subr.mxu1 %v5731_v15 }
 0x7ba   :  { %2405 = vmatpush1.msra.mxu0 %v5675_v21  ;;  %2486 = vmatpush1.msra.mxu1 %v5737_v14  ;;  %v5757_v14 = vld [vmem:[#allocation8 + $0x200] sm:$0xff] }
 0x7bb   :  { %2406 = vmatprep.subr.mxu0 %v5681_v24  ;;  %2487 = vmatprep.subr.mxu1 %v5743_v9  ;;  %6952 = vst [vmem:[#allocation64_spill] sm:$0xff] %v5757_v14 }
 0x7bc   :  { %2407 = vmatpush1.msra.mxu0 %v5687_v36  ;;  %2488 = vmatpush1.msra.mxu1 %v5749_v8  ;;  %v6954_v8 = vld [vmem:[#allocation71_spill] sm:$0xff] }
 0x7bd   :  { %2408 = vmatprep.subr.mxu0 %v5693_v39  ;;  %2489 = vmatprep.subr.mxu1 %v5755_v13  ;;  %v6956_v13 = vld [vmem:[#allocation72_spill] sm:$0xff] }
 0x7be   :  { %2409 = vmatpush1.msra.mxu0 %v5699_v41 }
 0x7bf   :  { %2410 = vmatprep.subr.mxu0 %v5705_v43 }
 0x7c0   :  { %2411 = vmatpush1.msra.mxu0 %v5711_v45 }
 0x7c1   :  { %2412 = vmatprep.subr.mxu0 %v5717_v48 }
 0x7c2   :  { %2413 = vmatpush1.msra.mxu0 %v5723_v50 }
 0x7c3   :  { %2414 = vmatprep.subr.mxu0 %v5729_v7  ;;  %v6955_v7 = vld [vmem:[#allocation73_spill] sm:$0xff] }
 0x7c4   :  { %2415 = vmatpush1.msra.mxu0 %v5735_v23  ;;  %v5759_v23 = vld [vmem:[#allocation8 + $0x210] sm:$0xff] }
 0x7c5   :  { %2416 = vmatprep.subr.mxu0 %v5741_v18  ;;  %6953 = vst [vmem:[#allocation66_spill] sm:$0xff] %v5759_v23  ;;  %2490 = vmatpush1.msra.mxu1 %v5759_v23  ;;  %v6957_v23 = vld [vmem:[#allocation74_spill] sm:$0xff] }
 0x7c6   :  { %2417 = vmatpush1.msra.mxu0 %v5747_v16  ;;  %2634 = vmatprep.subr.mxu1 %v5575_v12 }
 0x7c7   :  { %2418 = vmatprep.subr.mxu0 %v5751_v17 }
 0x7c8   :  { %2419 = vmatpush1.msra.mxu0 %v5757_v14 }
 0x7c9   :  { %2563 = vmatprep.subr.mxu0 %v5573_v10 }
 0x830   :  { %v1853_v16 = vpop.f32.mrf.mxu0  ;;  %v1924_v17 = vpop.f32.mrf.mxu1 }
 0x831   :  { %v1929_v9 = vadd.f32 %v1853_v16, %v6954_v8  ;;  %v1931_v49 = vadd.f32 %v1924_v17, %v6956_v13  ;;  %v6963_v13 = vld [vmem:[#allocation58_spill] sm:$0xff] }
 0x832   :  { %v1855_v18 = vpop.f32.mrf.mxu0  ;;  %v1926_v14 = vpop.f32.mrf.mxu1 }
 0x833   :  { %v3867_v15 = vmul.f32 -1.442695, %v1929_v9  ;;  %v1930_v3 = vadd.f32 %v1855_v18, %v6955_v7  ;;  %v3869_v48 = vmul.f32 -1.442695, %v1931_v49  ;;  %v1932_v46 = vadd.f32 %v1926_v14, %v6957_v23  ;;  %v6961_v23 = vld [vmem:[#allocation57_spill] sm:$0xff]  ;;  %v6962_v14 = vld [vmem:[#allocation56_spill] sm:$0xff] }
 0x835   :  { %4022 = vpow2.f32 %v3867_v15  ;;  %v3868_v50 = vmul.f32 -1.442695, %v1930_v3 }
 0x837   :  { %4024 = vpow2.f32 %v3868_v50 }
 0x838   :  { %4026 = vpow2.f32 %v3869_v48 }
 0x839   :  { %4028 = vtanh.f32 %v1932_v46  ;;  %v6960_v46 = vld [vmem:[#allocation55_spill] sm:$0xff] }
 0x842   :  { %v4023_v10 = vpop.eup %4022 }
 0x843   :  { %v1942_v45 = vadd.f32 1.0, %v4023_v10 }
 0x844   :  { %v4025_v12 = vpop.eup %4024 }
 0x845   :  { %4030 = vrcp.f32 %v1942_v45  ;;  %v1943_v16 = vadd.f32 1.0, %v4025_v12  ;;  %v4027_v9 = vpop.eup %4026  ;;  %v2381_v12 = vld [vmem:[#allocation11 + $0x8] sm:$0xff]  ;;  %v6959_v45 = vld [vmem:[#allocation54_spill] sm:$0xff] }
 0x846   :  { %v4029_v7 = vpop.eup %4028  ;;  %v1944_v18 = vadd.f32 1.0, %v4027_v9  ;;  %v6965_v9 = vld [vmem:[#allocation29_spill] sm:$0xff] }
 0x847   :  { %4032 = vrcp.f32 %v1943_v16  ;;  %v6964_v16 = vld [vmem:[#allocation28_spill] sm:$0xff] }
 0x848   :  { %4034 = vrcp.f32 %v1944_v18  ;;  %v6970_v18 = vld [vmem:[#allocation26_spill] sm:$0xff] }
 0x852   :  { %v4031_v15 = vpop.eup %4030 }
 0x853   :  { %v1953_v3 = vmul.f32 %v4031_v15, %v4029_v7  ;;  %v6966_v7 = vld [vmem:[#allocation59_spill] sm:$0xff]  ;;  %v6967_v15 = vld [vmem:[#allocation61_spill] sm:$0xff] }
 0x854   :  { %v4033_v50 = vpop.eup %4032 }
 0x855   :  { %v1952_v8 = vmul.f32 %v4033_v50, %v5542_v26  ;;  %v4035_v49 = vpop.eup %4034  ;;  %v6958_v26 = vld [vmem:[#allocation52_spill] sm:$0xff]  ;;  %v6969_v50 = vld [vmem:[#allocation62_spill] sm:$0xff] }
 0x857   :  { %v1954_v17 = vadd.f32 %v1953_v3, %v1952_v8  ;;  %v6968_v3 = vld [vmem:[#allocation60_spill] sm:$0xff]  ;;  %v6971_v8 = vld [vmem:[#allocation27_spill] sm:$0xff] }
 0x859   :  { %4036 = vtanh.f32 %v1954_v17  ;;  %1960 = vst [vmem:[#allocation17] sm:$0xff] %v1954_v17  ;;  %v6972_v17 = vld [vmem:[#allocation63_spill] sm:$0xff] }
 0x866   :  { %v4037_v10 = vpop.eup %4036 }
 0x867   :  { %v1956_v48 = vmul.f32 %v4037_v10, %v4035_v49  ;;  %v6973_v49 = vld [vmem:[#allocation65_spill] sm:$0xff]  ;;  %v6974_v10 = vld [vmem:[#allocation64_spill] sm:$0xff] }
 0x869   :  { %1959 = vst [vmem:[#allocation15] sm:$0xff] %v1956_v48  ;;  %2164 = vmatmul.mubr.f32.gmra.mxu0 %v1956_v48  ;;  %2277 = vmatmul.mubr.f32.gmra.mxu1 %v1956_v48  ;;  %v6975_v48 = vld [vmem:[#allocation66_spill] sm:$0xff] }
 0x86a   :  { %2452 = vmatprep.mubr.f32.mxu0 %v6924_v57  ;;  %2523 = vmatprep.mubr.f32.mxu1 %v6924_v57 }
 0x86d   :  { %2453 = vmatmul.mubr.f32.vlgmr.msra.gmra.mxu0 %v2381_v12  ;;  %2524 = vmatmul.mubr.f32.vlgmr.msra.gmra.mxu1 %v2381_v12  ;;  %v6976_v12 = vld [vmem:[#allocation44_spill] sm:$0xff] }
 0x86e   :  { %2564 = vmatpush1.msra.mxu0 %v5579_v53  ;;  %2635 = vmatpush1.msra.mxu1 %v5581_v5 }
 0x86f   :  { %2565 = vmatprep.subr.mxu0 %v5585_v25  ;;  %2636 = vmatprep.subr.mxu1 %v5587_v6 }
 0x870   :  { %2566 = vmatpush1.msra.mxu0 %v5591_v11  ;;  %2637 = vmatpush1.msra.mxu1 %v5593_v62 }
 0x871   :  { %2567 = vmatprep.subr.mxu0 %v5597_v32  ;;  %2638 = vmatprep.subr.mxu1 %v5599_v33 }
 0x872   :  { %2568 = vmatpush1.msra.mxu0 %v5603_v58  ;;  %2639 = vmatpush1.msra.mxu1 %v5605_v34 }
 0x873   :  { %2569 = vmatprep.subr.mxu0 %v5609_v35  ;;  %2640 = vmatprep.subr.mxu1 %v5611_v54 }
 0x874   :  { %2570 = vmatpush1.msra.mxu0 %v5615_v2  ;;  %2641 = vmatpush1.msra.mxu1 %v5617_v38 }
 0x875   :  { %2571 = vmatprep.subr.mxu0 %v5621_v60  ;;  %2642 = vmatprep.subr.mxu1 %v5623_v1 }
 0x876   :  { %2572 = vmatpush1.msra.mxu0 %v5627_v29  ;;  %2643 = vmatpush1.msra.mxu1 %v5629_v0 }
 0x877   :  { %2573 = vmatprep.subr.mxu0 %v5633_v59  ;;  %2644 = vmatprep.subr.mxu1 %v5635_v63 }
 0x878   :  { %2574 = vmatpush1.msra.mxu0 %v5639_v47  ;;  %2645 = vmatpush1.msra.mxu1 %v5641_v55 }
 0x879   :  { %2575 = vmatprep.subr.mxu0 %v5645_v51  ;;  %2646 = vmatprep.subr.mxu1 %v5647_v56 }
 0x87a   :  { %2576 = vmatpush1.msra.mxu0 %v5651_v61  ;;  %2647 = vmatpush1.msra.mxu1 %v5653_v52 }
 0x87b   :  { %2577 = vmatprep.subr.mxu0 %v5657_v20  ;;  %2648 = vmatprep.subr.mxu1 %v5659_v4 }
 0x87c   :  { %2578 = vmatpush1.msra.mxu0 %v5663_v28  ;;  %2649 = vmatpush1.msra.mxu1 %v5665_v30 }
 0x87d   :  { %2579 = vmatprep.subr.mxu0 %v5669_v31  ;;  %2650 = vmatprep.subr.mxu1 %v5671_v19 }
 0x87e   :  { %2580 = vmatpush1.msra.mxu0 %v5675_v21  ;;  %2651 = vmatpush1.msra.mxu1 %v5677_v22 }
 0x87f   :  { %2581 = vmatprep.subr.mxu0 %v5681_v24  ;;  %2652 = vmatprep.subr.mxu1 %v5683_v27 }
 0x880   :  { %2582 = vmatpush1.msra.mxu0 %v5687_v36  ;;  %2653 = vmatpush1.msra.mxu1 %v5689_v37 }
 0x881   :  { %2583 = vmatprep.subr.mxu0 %v5693_v39  ;;  %2654 = vmatprep.subr.mxu1 %v5695_v40 }
 0x882   :  { %2584 = vmatpush1.msra.mxu0 %v5699_v41  ;;  %2655 = vmatpush1.msra.mxu1 %v5701_v42 }
 0x883   :  { %2585 = vmatprep.subr.mxu0 %v5705_v43  ;;  %2656 = vmatprep.subr.mxu1 %v5707_v44 }
 0x884   :  { %2586 = vmatpush1.msra.mxu0 %v6958_v26  ;;  %2657 = vmatpush1.msra.mxu1 %v6959_v45 }
 0x885   :  { %2587 = vmatprep.subr.mxu0 %v6960_v46  ;;  %2658 = vmatprep.subr.mxu1 %v6961_v23 }
 0x886   :  { %2588 = vmatpush1.msra.mxu0 %v6962_v14  ;;  %2659 = vmatpush1.msra.mxu1 %v6963_v13 }
 0x887   :  { %2589 = vmatprep.subr.mxu0 %v6964_v16  ;;  %2660 = vmatprep.subr.mxu1 %v6965_v9 }
 0x888   :  { %2590 = vmatpush1.msra.mxu0 %v6966_v7  ;;  %2661 = vmatpush1.msra.mxu1 %v6967_v15  ;;  %v2236_v15 = vpop.f32.mrf.mxu1 }
 0x889   :  { %2591 = vmatprep.subr.mxu0 %v6968_v3  ;;  %2662 = vmatprep.subr.mxu1 %v6969_v50  ;;  %v6977_v3 = vld [vmem:[#allocation45_spill] sm:$0xff]  ;;  %v2123_v50 = vpop.f32.mrf.mxu0 }
 0x88a   :  { %2592 = vmatpush1.msra.mxu0 %v6970_v18  ;;  %2663 = vmatpush1.msra.mxu1 %v6971_v8 }
 0x88b   :  { %2593 = vmatprep.subr.mxu0 %v6972_v17  ;;  %2664 = vmatprep.subr.mxu1 %v6973_v49  ;;  %v2125_v18 = vpop.f32.mrf.mxu0  ;;  %v2238_v17 = vpop.f32.mrf.mxu1 }
 0x88c   :  { %2594 = vmatpush1.msra.mxu0 %v6974_v10  ;;  %2627 = vmatprep.mubr.f32.mxu0 %v6924_v57 }
 0x88d   :  { %2665 = vmatpush1.msra.mxu1 %v6975_v48  ;;  %2698 = vmatprep.mubr.f32.mxu1 %v6924_v57  ;;  %v5840_v8 = vpop.f32.mrf.mxu0  ;;  %v5844_v49 = vpop.f32.mrf.mxu1 }
 0x88e   :  { %2738 = vmatprep.subr.mxu0 %v6976_v12  ;;  %2809 = vmatprep.subr.mxu1 %v6977_v3  ;;  %6978 = vst [vmem:[#allocation25_spill] sm:$0xff] %v5840_v8  ;;  %6980 = vst [vmem:[#allocation48_spill] sm:$0xff] %v5844_v49 }
 0x88f   :  { %v5842_v7 = vpop.f32.mrf.mxu0  ;;  %v5848_v9 = vpop.f32.mrf.mxu1 }
 0x890   :  { %6979 = vst [vmem:[#allocation49_spill] sm:$0xff] %v5842_v7  ;;  %6982 = vst [vmem:[#allocation30_spill] sm:$0xff] %v5848_v9 }
 0x891   :  { %v5846_v10 = vpop.f32.mrf.mxu0  ;;  %v5852_v57 = vpop.f32.mrf.mxu1 }
 0x892   :  { %6981 = vst [vmem:[#allocation50_spill] sm:$0xff] %v5846_v10  ;;  %6984 = vst [vmem:[#allocation32_spill] sm:$0xff] %v5852_v57 }
 0x893   :  { %v5850_v48 = vpop.f32.mrf.mxu0  ;;  %v5856_v3 = vpop.f32.mrf.mxu1 }
 0x894   :  { %6983 = vst [vmem:[#allocation31_spill] sm:$0xff] %v5850_v48  ;;  %6986 = vst [vmem:[#allocation34_spill] sm:$0xff] %v5856_v3 }
 0x895   :  { %v5854_v12 = vpop.f32.mrf.mxu0  ;;  %v5860_v8 = vpop.f32.mrf.mxu1 }
 0x896   :  { %6985 = vst [vmem:[#allocation33_spill] sm:$0xff] %v5854_v12  ;;  %6988 = vst [vmem:[#allocation36_spill] sm:$0xff] %v5860_v8  ;;  %v2035_v8 = vld [vmem:[#allocation9 + $0x4] sm:$0xf] }
 0x897   :  { %v5858_v16 = vpop.f32.mrf.mxu0  ;;  %v5864_v7 = vpop.f32.mrf.mxu1 }
 0x898   :  { %6987 = vst [vmem:[#allocation35_spill] sm:$0xff] %v5858_v16  ;;  %6990 = vst [vmem:[#allocation38_spill] sm:$0xff] %v5864_v7  ;;  %v7000_v7 = vld [vmem:[#allocation47_spill] sm:$0xff] }
 0x899   :  { %v5862_v13 = vpop.f32.mrf.mxu0  ;;  %v5868_v10 = vpop.f32.mrf.mxu1  ;;  %v7001_v14 = vsub.s32 0, %v7000_v7  ;;  %v7011_v44 = vsub.s32 2, %v7000_v7 }
 0x89a   :  { %6989 = vst [vmem:[#allocation37_spill] sm:$0xff] %v5862_v13  ;;  %6992 = vst [vmem:[#allocation40_spill] sm:$0xff] %v5868_v10 }
 0x89b   :  { %v5866_v49 = vpop.f32.mrf.mxu0  ;;  %v5872_v48 = vpop.f32.mrf.mxu1 }
 0x89c   :  { %6991 = vst [vmem:[#allocation39_spill] sm:$0xff] %v5866_v49  ;;  %6994 = vst [vmem:[#allocation42_spill] sm:$0xff] %v5872_v48  ;;  %v5886_v49 = vrot.slane %v2035_v8, %v7001_v14  ;;  %v7005_v48 = vsub.s32 1, %v7000_v7 }
 0x89d   :  { %v5870_v9 = vpop.f32.mrf.mxu0  ;;  %v5876_v12 = vpop.f32.mrf.mxu1 }
 0x89e   :  { %6993 = vst [vmem:[#allocation41_spill] sm:$0xff] %v5870_v9  ;;  %6996 = vst [vmem:[#allocation69_spill] sm:$0xff] %v5876_v12 }
 0x89f   :  { %v5874_v57 = vpop.f32.mrf.mxu0  ;;  %v5880_v16 = vpop.f32.mrf.mxu1  ;;  %7002 = vst [vmem:[#allocation43_spill] sm:$0xff] %v5886_v49 }
 0x8a0   :  { %6995 = vst [vmem:[#allocation67_spill] sm:$0xff] %v5874_v57  ;;  %6998 = vst [vmem:[#allocation70_spill] sm:$0xff] %v5880_v16  ;;  %v5894_v57 = vrot.slane %v2035_v8, %v7005_v48 }
 0x8a1   :  { %v5878_v3 = vpop.f32.mrf.mxu0  ;;  %v5888_v10 = vpop.f32.mrf.mxu1 }
 0x8a2   :  { %6997 = vst [vmem:[#allocation68_spill] sm:$0xff] %v5878_v3  ;;  %7003 = vst [vmem:[#allocation71_spill] sm:$0xff] %v5888_v10  ;;  %v2124_v3 = vadd.f32 %v2123_v50, %v5886_v49 }
 0x8a3   :  { %v5882_v13 = vpop.f32.mrf.mxu0  ;;  %7006 = vst [vmem:[#allocation72_spill] sm:$0xff] %v5894_v57  ;;  %v5899_v16 = vpop.f32.mrf.mxu1 }
 0x8a4   :  { %6999 = vst [vmem:[#allocation24_spill] sm:$0xff] %v5882_v13  ;;  %7008 = vst [vmem:[#allocation47_spill] sm:$0xff] %v5899_v16  ;;  %v2126_v13 = vadd.f32 %v2125_v18, %v5894_v57  ;;  %v7013_v18 = vsub.s32 3, %v7000_v7 }
 0x8a6   :  { %v5913_v57 = vrot.slane %v2035_v8, %v7013_v18 }
 0x929   :  { %v5890_v9 = vpop.f32.mrf.mxu0  ;;  %v5902_v46 = vpop.f32.mrf.mxu1 }
 0x92a   :  { %7004 = vst [vmem:[#allocation73_spill] sm:$0xff] %v5890_v9  ;;  %7009 = vst [vmem:[#allocation75_spill] sm:$0xff] %v5902_v46  ;;  %v2383_v46 = vld [vmem:[#allocation12 + $0x8] sm:$0xff] }
 0x92b   :  { %v5896_v12 = vpop.f32.mrf.mxu0  ;;  %v5904_v9 = vpop.f32.mrf.mxu1 }
 0x92c   :  { %7007 = vst [vmem:[#allocation74_spill] sm:$0xff] %v5896_v12  ;;  %7010 = vst [vmem:[#allocation76_spill] sm:$0xff] %v5904_v9  ;;  %v5908_v12 = vrot.slane %v2035_v8, %v7011_v44 }
 0x92d   :  { %v2454_v23 = vpop.f32.mrf.mxu0  ;;  %v2525_v50 = vpop.f32.mrf.mxu1 }
 0x92e   :  { %v2530_v14 = vadd.f32 %v2454_v23, %v2124_v3  ;;  %7012 = vst [vmem:[#allocation77_spill] sm:$0xff] %v5908_v12  ;;  %v2237_v16 = vadd.f32 %v2236_v15, %v5908_v12 }
 0x92f   :  { %v2456_v45 = vpop.f32.mrf.mxu0  ;;  %v2527_v3 = vpop.f32.mrf.mxu1 }
 0x930   :  { %v3870_v10 = vmul.f32 -1.442695, %v2530_v14  ;;  %v2531_v26 = vadd.f32 %v2456_v45, %v2126_v13  ;;  %v2532_v23 = vadd.f32 %v2525_v50, %v2237_v16  ;;  %v2239_v45 = vadd.f32 %v2238_v17, %v5913_v57 }
 0x932   :  { %4038 = vpow2.f32 %v3870_v10  ;;  %v3871_v48 = vmul.f32 -1.442695, %v2531_v26  ;;  %v3872_v13 = vmul.f32 -1.442695, %v2532_v23  ;;  %v2533_v10 = vadd.f32 %v2527_v3, %v2239_v45  ;;  %v7016_v45 = vld [vmem:[#allocation54_spill] sm:$0xff] }
 0x934   :  { %4040 = vpow2.f32 %v3871_v48 }
 0x935   :  { %4042 = vpow2.f32 %v3872_v13  ;;  %v7017_v13 = vld [vmem:[#allocation55_spill] sm:$0xff] }
 0x93f   :  { %v4039_v14 = vpop.eup %4038 }
 0x940   :  { %v2543_v26 = vadd.f32 1.0, %v4039_v14  ;;  %v7018_v14 = vld [vmem:[#allocation57_spill] sm:$0xff] }
 0x941   :  { %v4041_v9 = vpop.eup %4040 }
 0x942   :  { %4044 = vrcp.f32 %v2543_v26  ;;  %v2544_v44 = vadd.f32 1.0, %v4041_v9  ;;  %v4043_v48 = vpop.eup %4042  ;;  %v7015_v9 = vld [vmem:[#allocation52_spill] sm:$0xff]  ;;  %v7020_v26 = vld [vmem:[#allocation58_spill] sm:$0xff] }
 0x943   :  { %4046 = vtanh.f32 %v2533_v10  ;;  %v2545_v18 = vadd.f32 1.0, %v4043_v48  ;;  %v7019_v10 = vld [vmem:[#allocation56_spill] sm:$0xff]  ;;  %v7022_v48 = vld [vmem:[#allocation29_spill] sm:$0xff] }
 0x944   :  { %4048 = vrcp.f32 %v2544_v44  ;;  %v7021_v44 = vld [vmem:[#allocation28_spill] sm:$0xff] }
 0x945   :  { %4050 = vrcp.f32 %v2545_v18  ;;  %v7026_v18 = vld [vmem:[#allocation62_spill] sm:$0xff] }
 0x94f   :  { %v4045_v15 = vpop.eup %4044 }
 0x950   :  { %v4047_v7 = vpop.eup %4046 }
 0x951   :  { %v4049_v8 = vpop.eup %4048  ;;  %v2554_v50 = vmul.f32 %v4047_v7, %v4045_v15  ;;  %v7023_v15 = vld [vmem:[#allocation59_spill] sm:$0xff]  ;;  %v7024_v7 = vld [vmem:[#allocation61_spill] sm:$0xff] }
 0x952   :  { %v2553_v16 = vmul.f32 %v4049_v8, %v2383_v46  ;;  %v4051_v17 = vpop.eup %4050  ;;  %v7014_v46 = vld [vmem:[#allocation53_spill] sm:$0xff]  ;;  %v7025_v8 = vld [vmem:[#allocation60_spill] sm:$0xff] }
 0x954   :  { %v5916_v12 = vadd.f32 %v2554_v50, %v2553_v16  ;;  %v7027_v16 = vld [vmem:[#allocation26_spill] sm:$0xff]  ;;  %v7028_v50 = vld [vmem:[#allocation27_spill] sm:$0xff] }
 0x956   :  { %4052 = vtanh.f32 %v5916_v12 }
 0x963   :  { %v4053_v23 = vpop.eup %4052 }
 0x964   :  { %v2557_v3 = vmul.f32 %v4053_v23, %v4051_v17  ;;  %v7029_v17 = vld [vmem:[#allocation63_spill] sm:$0xff]  ;;  %v7030_v23 = vld [vmem:[#allocation65_spill] sm:$0xff] }
 0x966   :  { %2558 = vst [vmem:[#allocation14] sm:$0xff] %v2557_v3  ;;  %2628 = vmatmul.mubr.f32.vlgmr.msra.gmra.mxu0 %v2557_v3  ;;  %2699 = vmatmul.mubr.f32.vlgmr.msra.gmra.mxu1 %v2557_v3  ;;  %v7031_v3 = vld [vmem:[#allocation64_spill] sm:$0xff] }
 0x967   :  { %2739 = vmatpush1.msra.mxu0 %v5579_v53  ;;  %2810 = vmatpush1.msra.mxu1 %v5581_v5 }
 0x968   :  { %2740 = vmatprep.subr.mxu0 %v5585_v25  ;;  %2811 = vmatprep.subr.mxu1 %v5587_v6 }
 0x969   :  { %2741 = vmatpush1.msra.mxu0 %v5591_v11  ;;  %2812 = vmatpush1.msra.mxu1 %v5593_v62 }
 0x96a   :  { %2742 = vmatprep.subr.mxu0 %v5597_v32  ;;  %2813 = vmatprep.subr.mxu1 %v5599_v33 }
 0x96b   :  { %2743 = vmatpush1.msra.mxu0 %v5603_v58  ;;  %2814 = vmatpush1.msra.mxu1 %v5605_v34 }
 0x96c   :  { %2744 = vmatprep.subr.mxu0 %v5609_v35  ;;  %2815 = vmatprep.subr.mxu1 %v5611_v54 }
 0x96d   :  { %2745 = vmatpush1.msra.mxu0 %v5615_v2  ;;  %2816 = vmatpush1.msra.mxu1 %v5617_v38 }
 0x96e   :  { %2746 = vmatprep.subr.mxu0 %v5621_v60  ;;  %2817 = vmatprep.subr.mxu1 %v5623_v1 }
 0x96f   :  { %2747 = vmatpush1.msra.mxu0 %v5627_v29  ;;  %2818 = vmatpush1.msra.mxu1 %v5629_v0 }
 0x970   :  { %2748 = vmatprep.subr.mxu0 %v5633_v59  ;;  %2819 = vmatprep.subr.mxu1 %v5635_v63 }
 0x971   :  { %2749 = vmatpush1.msra.mxu0 %v5639_v47  ;;  %2820 = vmatpush1.msra.mxu1 %v5641_v55 }
 0x972   :  { %2750 = vmatprep.subr.mxu0 %v5645_v51  ;;  %2821 = vmatprep.subr.mxu1 %v5647_v56 }
 0x973   :  { %2751 = vmatpush1.msra.mxu0 %v5651_v61  ;;  %2822 = vmatpush1.msra.mxu1 %v5653_v52 }
 0x974   :  { %2752 = vmatprep.subr.mxu0 %v5657_v20  ;;  %2823 = vmatprep.subr.mxu1 %v5659_v4 }
 0x975   :  { %2753 = vmatpush1.msra.mxu0 %v5663_v28  ;;  %2824 = vmatpush1.msra.mxu1 %v5665_v30 }
 0x976   :  { %2754 = vmatprep.subr.mxu0 %v5669_v31  ;;  %2825 = vmatprep.subr.mxu1 %v5671_v19 }
 0x977   :  { %2755 = vmatpush1.msra.mxu0 %v5675_v21  ;;  %2826 = vmatpush1.msra.mxu1 %v5677_v22 }
 0x978   :  { %2756 = vmatprep.subr.mxu0 %v5681_v24  ;;  %2827 = vmatprep.subr.mxu1 %v5683_v27 }
 0x979   :  { %2757 = vmatpush1.msra.mxu0 %v5687_v36  ;;  %2828 = vmatpush1.msra.mxu1 %v5689_v37 }
 0x97a   :  { %2758 = vmatprep.subr.mxu0 %v5693_v39  ;;  %2829 = vmatprep.subr.mxu1 %v5695_v40 }
 0x97b   :  { %2759 = vmatpush1.msra.mxu0 %v5699_v41  ;;  %2830 = vmatpush1.msra.mxu1 %v5701_v42 }
 0x97c   :  { %2760 = vmatprep.subr.mxu0 %v5705_v43  ;;  %2831 = vmatprep.subr.mxu1 %v7014_v46  ;;  %v7041_v46 = vld [vmem:[#allocation30_spill] sm:$0xff] }
 0x97d   :  { %2761 = vmatpush1.msra.mxu0 %v7015_v9  ;;  %2832 = vmatpush1.msra.mxu1 %v7016_v45  ;;  %v7040_v45 = vld [vmem:[#allocation48_spill] sm:$0xff] }
 0x97e   :  { %2762 = vmatprep.subr.mxu0 %v7017_v13  ;;  %2833 = vmatprep.subr.mxu1 %v7018_v14 }
 0x97f   :  { %2763 = vmatpush1.msra.mxu0 %v7019_v10  ;;  %2834 = vmatpush1.msra.mxu1 %v7020_v26 }
 0x980   :  { %2764 = vmatprep.subr.mxu0 %v7021_v44  ;;  %2835 = vmatprep.subr.mxu1 %v7022_v48  ;;  %v7032_v44 = vmov 0.0   ;;  %v7033_v48 = vld [vmem:[#allocation66_spill] sm:$0xff] }
 0x981   :  { %2765 = vmatpush1.msra.mxu0 %v7023_v15  ;;  %2836 = vmatpush1.msra.mxu1 %v7024_v7  ;;  %v7034_v7 = vld [vmem:[#allocation44_spill] sm:$0xff] }
 0x982   :  { %2766 = vmatprep.subr.mxu0 %v7025_v8  ;;  %2837 = vmatprep.subr.mxu1 %v7026_v18  ;;  %v7035_v8 = vld [vmem:[#allocation45_spill] sm:$0xff]  ;;  %v7037_v15 = vld [vmem:[#allocation72_spill] sm:$0xff] }
 0x983   :  { %2767 = vmatpush1.msra.mxu0 %v7027_v16  ;;  %2838 = vmatpush1.msra.mxu1 %v7028_v50  ;;  %v7036_v16 = vld [vmem:[#allocation25_spill] sm:$0xff] }
 0x984   :  { %2768 = vmatprep.subr.mxu0 %v7029_v17  ;;  %2839 = vmatprep.subr.mxu1 %v7030_v23  ;;  %v2130_v18 = vadd.f32 %v7036_v16, %v5886_v49  ;;  %v7038_v17 = vld [vmem:[#allocation49_spill] sm:$0xff]  ;;  %v2245_v16 = vadd.f32 %v7041_v46, %v5913_v57 }
 0x985   :  { %2769 = vmatpush1.msra.mxu0 %v7031_v3  ;;  %2802 = vmatprep.mubr.f32.mxu0 %v7032_v44  ;;  %v2132_v26 = vadd.f32 %v7038_v17, %v7037_v15 }
 0x986   :  { %2840 = vmatpush1.msra.mxu1 %v7033_v48  ;;  %2873 = vmatprep.mubr.f32.mxu1 %v7032_v44  ;;  %v7039_v44 = vld [vmem:[#allocation77_spill] sm:$0xff] }
 0x987   :  { %2913 = vmatprep.subr.mxu0 %v7034_v7  ;;  %2984 = vmatprep.subr.mxu1 %v7035_v8  ;;  %v2243_v7 = vadd.f32 %v7040_v45, %v7039_v44 }
 0xa26   :  { %v2629_v50 = vpop.f32.mrf.mxu0  ;;  %v2700_v48 = vpop.f32.mrf.mxu1 }
 0xa27   :  { %v2705_v23 = vadd.f32 %v2629_v50, %v2130_v18  ;;  %v2707_v9 = vadd.f32 %v2700_v48, %v2243_v7 }
 0xa28   :  { %v2631_v10 = vpop.f32.mrf.mxu0  ;;  %v2702_v8 = vpop.f32.mrf.mxu1 }
 0xa29   :  { %v3873_v3 = vmul.f32 -1.442695, %v2705_v23  ;;  %v2706_v14 = vadd.f32 %v2631_v10, %v2132_v26  ;;  %v3875_v49 = vmul.f32 -1.442695, %v2707_v9  ;;  %v2708_v43 = vadd.f32 %v2702_v8, %v2245_v16  ;;  %v7063_v8 = vld [vmem:[#allocation66_spill] sm:$0xff]  ;;  %v7065_v16 = vld [vmem:[#allocation45_spill] sm:$0xff] }
 0xa2a   :  { %v7062_v9 = vmov 0.0  }
 0xa2b   :  { %4054 = vpow2.f32 %v3873_v3  ;;  %v3874_v13 = vmul.f32 -1.442695, %v2706_v14  ;;  %v7064_v3 = vld [vmem:[#allocation44_spill] sm:$0xff] }
 0xa2d   :  { %4056 = vpow2.f32 %v3874_v13 }
 0xa2e   :  { %4058 = vpow2.f32 %v3875_v49 }
 0xa2f   :  { %4060 = vtanh.f32 %v2708_v43  ;;  %v7060_v43 = vld [vmem:[#allocation65_spill] sm:$0xff] }
 0xa38   :  { %v4055_v42 = vpop.eup %4054 }
 0xa39   :  { %v2718_v17 = vadd.f32 1.0, %v4055_v42 }
 0xa3a   :  { %v4057_v18 = vpop.eup %4056 }
 0xa3b   :  { %4062 = vrcp.f32 %v2718_v17  ;;  %v2719_v10 = vadd.f32 1.0, %v4057_v18  ;;  %v4059_v13 = vpop.eup %4058  ;;  %v7066_v17 = vld [vmem:[#allocation43_spill] sm:$0xff]  ;;  %v7067_v18 = vld [vmem:[#allocation50_spill] sm:$0xff] }
 0xa3c   :  { %v4061_v14 = vpop.eup %4060  ;;  %v2720_v48 = vadd.f32 1.0, %v4059_v13 }
 0xa3d   :  { %4064 = vrcp.f32 %v2719_v10  ;;  %v2136_v10 = vadd.f32 %v7067_v18, %v7066_v17 }
 0xa3e   :  { %4066 = vrcp.f32 %v2720_v48 }
 0xa48   :  { %v4063_v26 = vpop.eup %4062 }
 0xa49   :  { %v2729_v50 = vmul.f32 %v4063_v26, %v4061_v14  ;;  %v7068_v14 = vld [vmem:[#allocation31_spill] sm:$0xff] }
 0xa4a   :  { %v4065_v45 = vpop.eup %4064  ;;  %v2138_v26 = vadd.f32 %v7068_v14, %v7037_v15 }
 0xa4b   :  { %v2728_v7 = vmul.f32 %v4065_v45, %v5916_v12  ;;  %v4067_v42 = vpop.eup %4066  ;;  %v7061_v12 = vld [vmem:[#allocation64_spill] sm:$0xff] }
 0xa4d   :  { %v5994_v23 = vadd.f32 %v2729_v50, %v2728_v7 }
 0xa4f   :  { %4068 = vtanh.f32 %v5994_v23 }
 0xa5c   :  { %v4069_v49 = vpop.eup %4068 }
 0xa5d   :  { %v2732_v46 = vmul.f32 %v4069_v49, %v4067_v42 }
 0xa5f   :  { %2733 = vst [vmem:[#allocation14 + $0x8] sm:$0xff] %v2732_v46  ;;  %2803 = vmatmul.mubr.f32.vlgmr.msra.gmra.mxu0 %v2732_v46  ;;  %2874 = vmatmul.mubr.f32.vlgmr.msra.gmra.mxu1 %v2732_v46  ;;  %v7069_v46 = vld [vmem:[#allocation32_spill] sm:$0xff] }
 0xa60   :  { %2914 = vmatpush1.msra.mxu0 %v5579_v53  ;;  %2985 = vmatpush1.msra.mxu1 %v5581_v5  ;;  %v7042_v53 = vld [vmem:[#allocation46_spill] sm:$0xff]  ;;  %v7043_v5 = vld [vmem:[#allocation51_spill] sm:$0xff] }
 0xa61   :  { %2915 = vmatprep.subr.mxu0 %v5585_v25  ;;  %2986 = vmatprep.subr.mxu1 %v5587_v6  ;;  %v7044_v25 = vld [vmem:[#allocation53_spill] sm:$0xff]  ;;  %v7045_v6 = vld [vmem:[#allocation52_spill] sm:$0xff] }
 0xa62   :  { %2916 = vmatpush1.msra.mxu0 %v5591_v11  ;;  %2987 = vmatpush1.msra.mxu1 %v5593_v62  ;;  %v7046_v11 = vld [vmem:[#allocation54_spill] sm:$0xff]  ;;  %v7047_v62 = vld [vmem:[#allocation55_spill] sm:$0xff] }
 0xa63   :  { %2917 = vmatprep.subr.mxu0 %v5597_v32  ;;  %2988 = vmatprep.subr.mxu1 %v5599_v33  ;;  %v7048_v32 = vld [vmem:[#allocation57_spill] sm:$0xff]  ;;  %v7049_v33 = vld [vmem:[#allocation56_spill] sm:$0xff] }
 0xa64   :  { %2918 = vmatpush1.msra.mxu0 %v5603_v58  ;;  %2989 = vmatpush1.msra.mxu1 %v5605_v34  ;;  %v7050_v58 = vld [vmem:[#allocation58_spill] sm:$0xff]  ;;  %v7051_v34 = vld [vmem:[#allocation28_spill] sm:$0xff] }
 0xa65   :  { %2919 = vmatprep.subr.mxu0 %v5609_v35  ;;  %2990 = vmatprep.subr.mxu1 %v5611_v54  ;;  %v7052_v35 = vld [vmem:[#allocation29_spill] sm:$0xff]  ;;  %v7053_v54 = vld [vmem:[#allocation59_spill] sm:$0xff] }
 0xa66   :  { %2920 = vmatpush1.msra.mxu0 %v5615_v2  ;;  %2991 = vmatpush1.msra.mxu1 %v5617_v38  ;;  %v7054_v2 = vld [vmem:[#allocation61_spill] sm:$0xff]  ;;  %v7055_v38 = vld [vmem:[#allocation60_spill] sm:$0xff] }
 0xa67   :  { %2921 = vmatprep.subr.mxu0 %v5621_v60  ;;  %2992 = vmatprep.subr.mxu1 %v5623_v1  ;;  %v7056_v60 = vld [vmem:[#allocation62_spill] sm:$0xff] }
 0xa68   :  { %2922 = vmatpush1.msra.mxu0 %v5627_v29  ;;  %2993 = vmatpush1.msra.mxu1 %v5629_v0  ;;  %v7057_v1 = vld [vmem:[#allocation26_spill] sm:$0xff]  ;;  %v7058_v29 = vld [vmem:[#allocation27_spill] sm:$0xff] }
 0xa69   :  { %2923 = vmatprep.subr.mxu0 %v5633_v59  ;;  %2994 = vmatprep.subr.mxu1 %v5635_v63  ;;  %v7059_v0 = vld [vmem:[#allocation63_spill] sm:$0xff] }
 0xa6a   :  { %2924 = vmatpush1.msra.mxu0 %v5639_v47  ;;  %2995 = vmatpush1.msra.mxu1 %v5641_v55 }
 0xa6b   :  { %2925 = vmatprep.subr.mxu0 %v5645_v51  ;;  %2996 = vmatprep.subr.mxu1 %v5647_v56 }
 0xa6c   :  { %2926 = vmatpush1.msra.mxu0 %v5651_v61  ;;  %2997 = vmatpush1.msra.mxu1 %v5653_v52 }
 0xa6d   :  { %2927 = vmatprep.subr.mxu0 %v5657_v20  ;;  %2998 = vmatprep.subr.mxu1 %v5659_v4 }
 0xa6e   :  { %2928 = vmatpush1.msra.mxu0 %v5663_v28  ;;  %2999 = vmatpush1.msra.mxu1 %v5665_v30 }
 0xa6f   :  { %2929 = vmatprep.subr.mxu0 %v5669_v31  ;;  %3000 = vmatprep.subr.mxu1 %v5671_v19 }
 0xa70   :  { %2930 = vmatpush1.msra.mxu0 %v5675_v21  ;;  %3001 = vmatpush1.msra.mxu1 %v5677_v22 }
 0xa71   :  { %2931 = vmatprep.subr.mxu0 %v5681_v24  ;;  %3002 = vmatprep.subr.mxu1 %v5683_v27 }
 0xa72   :  { %2932 = vmatpush1.msra.mxu0 %v5687_v36  ;;  %3003 = vmatpush1.msra.mxu1 %v5689_v37 }
 0xa73   :  { %2933 = vmatprep.subr.mxu0 %v5693_v39  ;;  %3004 = vmatprep.subr.mxu1 %v5695_v40 }
 0xa74   :  { %2934 = vmatpush1.msra.mxu0 %v5699_v41  ;;  %3005 = vmatpush1.msra.mxu1 %v7042_v53 }
 0xa75   :  { %2935 = vmatprep.subr.mxu0 %v7043_v5  ;;  %3006 = vmatprep.subr.mxu1 %v7044_v25 }
 0xa76   :  { %2936 = vmatpush1.msra.mxu0 %v7045_v6  ;;  %3007 = vmatpush1.msra.mxu1 %v7046_v11 }
 0xa77   :  { %2937 = vmatprep.subr.mxu0 %v7047_v62  ;;  %3008 = vmatprep.subr.mxu1 %v7048_v32 }
 0xa78   :  { %2938 = vmatpush1.msra.mxu0 %v7049_v33  ;;  %3009 = vmatpush1.msra.mxu1 %v7050_v58 }
 0xa79   :  { %2939 = vmatprep.subr.mxu0 %v7051_v34  ;;  %3010 = vmatprep.subr.mxu1 %v7052_v35 }
 0xa7a   :  { %2940 = vmatpush1.msra.mxu0 %v7053_v54  ;;  %3011 = vmatpush1.msra.mxu1 %v7054_v2 }
 0xa7b   :  { %2941 = vmatprep.subr.mxu0 %v7055_v38  ;;  %3012 = vmatprep.subr.mxu1 %v7056_v60 }
 0xa7c   :  { %2942 = vmatpush1.msra.mxu0 %v7057_v1  ;;  %3013 = vmatpush1.msra.mxu1 %v7058_v29 }
 0xa7d   :  { %2943 = vmatprep.subr.mxu0 %v7059_v0  ;;  %3014 = vmatprep.subr.mxu1 %v7060_v43 }
 0xa7e   :  { %2944 = vmatpush1.msra.mxu0 %v7061_v12  ;;  %2977 = vmatprep.mubr.f32.mxu0 %v7062_v9 }
 0xa7f   :  { %3015 = vmatpush1.msra.mxu1 %v7063_v8  ;;  %3048 = vmatprep.mubr.f32.mxu1 %v7062_v9  ;;  %v7070_v9 = vld [vmem:[#allocation34_spill] sm:$0xff] }
 0xa80   :  { %3088 = vmatprep.subr.mxu0 %v7064_v3  ;;  %3159 = vmatprep.subr.mxu1 %v7065_v16  ;;  %v2249_v3 = vadd.f32 %v7069_v46, %v7039_v44  ;;  %v2251_v18 = vadd.f32 %v7070_v9, %v5913_v57 }
 0xb1f   :  { %v2804_v13 = vpop.f32.mrf.mxu0  ;;  %v2875_v49 = vpop.f32.mrf.mxu1 }
 0xb20   :  { %v2880_v50 = vadd.f32 %v2804_v13, %v2136_v10  ;;  %v2882_v8 = vadd.f32 %v2875_v49, %v2249_v3  ;;  %v6084_v3 = vld [vmem:[#allocation8 + $0x3d8] sm:$0xff] }
 0xb21   :  { %v2806_v45 = vpop.f32.mrf.mxu0  ;;  %v2877_v16 = vpop.f32.mrf.mxu1 }
 0xb22   :  { %v3876_v48 = vmul.f32 -1.442695, %v2880_v50  ;;  %v2881_v7 = vadd.f32 %v2806_v45, %v2138_v26  ;;  %v3878_v17 = vmul.f32 -1.442695, %v2882_v8  ;;  %v2883_v12 = vadd.f32 %v2877_v16, %v2251_v18  ;;  %v6087_v16 = vld [vmem:[#allocation8 + $0x3c0] sm:$0xff]  ;;  %v6090_v18 = vld [vmem:[#allocation8 + $0x3d0] sm:$0xff] }
 0xb24   :  { %4070 = vpow2.f32 %v3876_v48  ;;  %v3877_v42 = vmul.f32 -1.442695, %v2881_v7 }
 0xb26   :  { %4072 = vpow2.f32 %v3877_v42 }
 0xb27   :  { %4074 = vpow2.f32 %v3878_v17  ;;  %v6078_v17 = vld [vmem:[#allocation8 + $0x3f0] sm:$0xff] }
 0xb28   :  { %4076 = vtanh.f32 %v2883_v12  ;;  %v6075_v12 = vld [vmem:[#allocation8 + $0x3e0] sm:$0xff] }
 0xb31   :  { %v4071_v43 = vpop.eup %4070 }
 0xb32   :  { %v2893_v14 = vadd.f32 1.0, %v4071_v43 }
 0xb33   :  { %v4073_v10 = vpop.eup %4072 }
 0xb34   :  { %4078 = vrcp.f32 %v2893_v14  ;;  %v2894_v13 = vadd.f32 1.0, %v4073_v10  ;;  %v4075_v26 = vpop.eup %4074  ;;  %v6093_v14 = vld [vmem:[#allocation8 + $0x3a8] sm:$0xff]  ;;  %v6096_v10 = vld [vmem:[#allocation8 + $0x3b8] sm:$0xff] }
 0xb35   :  { %v4077_v50 = vpop.eup %4076  ;;  %v2895_v42 = vadd.f32 1.0, %v4075_v26  ;;  %v6102_v26 = vld [vmem:[#allocation8 + $0x3b0] sm:$0xff] }
 0xb36   :  { %4080 = vrcp.f32 %v2894_v13  ;;  %v6099_v13 = vld [vmem:[#allocation8 + $0x3a0] sm:$0xff] }
 0xb37   :  { %4082 = vrcp.f32 %v2895_v42  ;;  %v6117_v42 = vld [vmem:[#allocation8 + $0x368] sm:$0xff] }
 0xb41   :  { %v4079_v45 = vpop.eup %4078 }
 0xb42   :  { %v2904_v48 = vmul.f32 %v4079_v45, %v4077_v50  ;;  %v6105_v50 = vld [vmem:[#allocation8 + $0x388] sm:$0xff]  ;;  %v6108_v45 = vld [vmem:[#allocation8 + $0x398] sm:$0xff] }
 0xb43   :  { %v4081_v7 = vpop.eup %4080 }
 0xb44   :  { %v2903_v49 = vmul.f32 %v4081_v7, %v5994_v23  ;;  %v4083_v43 = vpop.eup %4082  ;;  %v6081_v23 = vld [vmem:[#allocation8 + $0x3c8] sm:$0xff]  ;;  %v6114_v7 = vld [vmem:[#allocation8 + $0x390] sm:$0xff] }
 0xb46   :  { %v6072_v46 = vadd.f32 %v2904_v48, %v2903_v49  ;;  %v6111_v48 = vld [vmem:[#allocation8 + $0x380] sm:$0xff]  ;;  %v6120_v49 = vld [vmem:[#allocation8 + $0x378] sm:$0xff] }
 0xb48   :  { %4084 = vtanh.f32 %v6072_v46 }
 0xb55   :  { %v4085_v9 = vpop.eup %4084 }
 0xb56   :  { %v2907_v8 = vmul.f32 %v4085_v9, %v4083_v43  ;;  %v6123_v43 = vld [vmem:[#allocation8 + $0x360] sm:$0xff]  ;;  %v6126_v9 = vld [vmem:[#allocation8 + $0x370] sm:$0xff] }
 0xb58   :  { %2908 = vst [vmem:[#allocation14 + $0x10] sm:$0xff] %v2907_v8  ;;  %2978 = vmatmul.mubr.f32.vlgmr.msra.gmra.mxu0 %v2907_v8  ;;  %3049 = vmatmul.mubr.f32.vlgmr.msra.gmra.mxu1 %v2907_v8  ;;  %v6214_v8 = vld [vmem:[#allocation8 + $0x358] sm:$0xff] }
 0xb59   :  { %3089 = vmatpush1.msra.mxu0 %v6075_v12  ;;  %3160 = vmatpush1.msra.mxu1 %v6078_v17 }
 0xb5a   :  { %3090 = vmatprep.subr.mxu0 %v6081_v23  ;;  %3161 = vmatprep.subr.mxu1 %v6084_v3 }
 0xb5b   :  { %3091 = vmatpush1.msra.mxu0 %v6087_v16  ;;  %3162 = vmatpush1.msra.mxu1 %v6090_v18 }
 0xb5c   :  { %3092 = vmatprep.subr.mxu0 %v6093_v14  ;;  %3163 = vmatprep.subr.mxu1 %v6096_v10 }
 0xb5d   :  { %3093 = vmatpush1.msra.mxu0 %v6099_v13  ;;  %3164 = vmatpush1.msra.mxu1 %v6102_v26 }
 0xb5e   :  { %3094 = vmatprep.subr.mxu0 %v6105_v50  ;;  %3165 = vmatprep.subr.mxu1 %v6108_v45 }
 0xb5f   :  { %3095 = vmatpush1.msra.mxu0 %v6111_v48  ;;  %3166 = vmatpush1.msra.mxu1 %v6114_v7 }
 0xb60   :  { %3096 = vmatprep.subr.mxu0 %v6117_v42  ;;  %3167 = vmatprep.subr.mxu1 %v6120_v49 }
 0xb61   :  { %3097 = vmatpush1.msra.mxu0 %v6123_v43  ;;  %3168 = vmatpush1.msra.mxu1 %v6126_v9 }
 0xb62   :  { %3098 = vmatprep.subr.mxu0 %v5633_v59  ;;  %3169 = vmatprep.subr.mxu1 %v5635_v63  ;;  %v7071_v59 = vld [vmem:[#allocation65_spill] sm:$0xff]  ;;  %v7072_v63 = vld [vmem:[#allocation64_spill] sm:$0xff] }
 0xb63   :  { %3099 = vmatpush1.msra.mxu0 %v5639_v47  ;;  %3170 = vmatpush1.msra.mxu1 %v5641_v55  ;;  %v7073_v47 = vmov 0.0   ;;  %v7074_v55 = vld [vmem:[#allocation66_spill] sm:$0xff] }
 0xb64   :  { %3100 = vmatprep.subr.mxu0 %v5645_v51  ;;  %3171 = vmatprep.subr.mxu1 %v5647_v56  ;;  %v6175_v51 = vld [vmem:[#allocation8 + $0x3e8] sm:$0xff]  ;;  %v6178_v56 = vld [vmem:[#allocation8 + $0x3f8] sm:$0xff] }
 0xb65   :  { %3101 = vmatpush1.msra.mxu0 %v5651_v61  ;;  %3172 = vmatpush1.msra.mxu1 %v5653_v52  ;;  %7075 = vst [vmem:[#allocation25_spill] sm:$0xff] %v6175_v51  ;;  %7076 = vst [vmem:[#allocation72_spill] sm:$0xff] %v6178_v56  ;;  %v7077_v61 = vld [vmem:[#allocation43_spill] sm:$0xff]  ;;  %v7078_v52 = vld [vmem:[#allocation33_spill] sm:$0xff] }
 0xb66   :  { %3102 = vmatprep.subr.mxu0 %v5657_v20  ;;  %3173 = vmatprep.subr.mxu1 %v5659_v4  ;;  %v2142_v20 = vadd.f32 %v7078_v52, %v7077_v61  ;;  %v6226_v52 = vld [vmem:[#allocation8 + $0x338] sm:$0xff] }
 0xb67   :  { %3103 = vmatpush1.msra.mxu0 %v5663_v28  ;;  %3174 = vmatpush1.msra.mxu1 %v5665_v30  ;;  %v7079_v28 = vld [vmem:[#allocation35_spill] sm:$0xff] }
 0xb68   :  { %3104 = vmatprep.subr.mxu0 %v5669_v31  ;;  %3175 = vmatprep.subr.mxu1 %v5671_v19  ;;  %v2144_v30 = vadd.f32 %v7079_v28, %v7037_v15  ;;  %v6235_v28 = vld [vmem:[#allocation8 + $0x308] sm:$0xff] }
 0xb69   :  { %3105 = vmatpush1.msra.mxu0 %v5675_v21  ;;  %3176 = vmatpush1.msra.mxu1 %v5677_v22 }
 0xb6a   :  { %3106 = vmatprep.subr.mxu0 %v5681_v24  ;;  %3177 = vmatprep.subr.mxu1 %v5683_v27 }
 0xb6b   :  { %3107 = vmatpush1.msra.mxu0 %v5687_v36  ;;  %3178 = vmatpush1.msra.mxu1 %v5689_v37  ;;  %v7080_v36 = vld [vmem:[#allocation36_spill] sm:$0xff] }
 0xb6c   :  { %3108 = vmatprep.subr.mxu0 %v5693_v39  ;;  %3179 = vmatprep.subr.mxu1 %v5695_v40  ;;  %v2255_v37 = vadd.f32 %v7080_v36, %v7039_v44  ;;  %v6259_v36 = vld [vmem:[#allocation8 + $0x2c8] sm:$0xff] }
 0xb6d   :  { %3109 = vmatpush1.msra.mxu0 %v5699_v41  ;;  %3180 = vmatpush1.msra.mxu1 %v7042_v53  ;;  %v7081_v41 = vld [vmem:[#allocation38_spill] sm:$0xff] }
 0xb6e   :  { %3110 = vmatprep.subr.mxu0 %v7043_v5  ;;  %3181 = vmatprep.subr.mxu1 %v7044_v25  ;;  %v2257_v53 = vadd.f32 %v7081_v41, %v5913_v57  ;;  %v6271_v41 = vld [vmem:[#allocation8 + $0x2a8] sm:$0xff] }
 0xb6f   :  { %3111 = vmatpush1.msra.mxu0 %v7045_v6  ;;  %3182 = vmatpush1.msra.mxu1 %v7046_v11 }
 0xb70   :  { %3112 = vmatprep.subr.mxu0 %v7047_v62  ;;  %3183 = vmatprep.subr.mxu1 %v7048_v32 }
 0xb71   :  { %3113 = vmatpush1.msra.mxu0 %v7049_v33  ;;  %3184 = vmatpush1.msra.mxu1 %v7050_v58 }
 0xb72   :  { %3114 = vmatprep.subr.mxu0 %v7051_v34  ;;  %3185 = vmatprep.subr.mxu1 %v7052_v35 }
 0xb73   :  { %3115 = vmatpush1.msra.mxu0 %v7053_v54  ;;  %3186 = vmatpush1.msra.mxu1 %v7054_v2 }
 0xb74   :  { %3116 = vmatprep.subr.mxu0 %v7055_v38  ;;  %3187 = vmatprep.subr.mxu1 %v7056_v60 }
 0xb75   :  { %3117 = vmatpush1.msra.mxu0 %v7057_v1  ;;  %3188 = vmatpush1.msra.mxu1 %v7058_v29 }
 0xb76   :  { %3118 = vmatprep.subr.mxu0 %v7059_v0  ;;  %3189 = vmatprep.subr.mxu1 %v7071_v59  ;;  %v6217_v59 = vld [vmem:[#allocation8 + $0x340] sm:$0xff] }
 0xb77   :  { %3119 = vmatpush1.msra.mxu0 %v7072_v63  ;;  %3152 = vmatprep.mubr.f32.mxu0 %v7073_v47  ;;  %v6220_v63 = vld [vmem:[#allocation8 + $0x350] sm:$0xff] }
 0xb78   :  { %3190 = vmatpush1.msra.mxu1 %v7074_v55  ;;  %3223 = vmatprep.mubr.f32.mxu1 %v7073_v47  ;;  %v6223_v55 = vld [vmem:[#allocation8 + $0x328] sm:$0xff] }
 0xb79   :  { %3263 = vmatprep.subr.mxu0 %v6175_v51  ;;  %3334 = vmatprep.subr.mxu1 %v6178_v56 }
 0xc18   :  { %v2979_v4 = vpop.f32.mrf.mxu0  ;;  %v3050_v27 = vpop.f32.mrf.mxu1 }
 0xc19   :  { %v3055_v31 = vadd.f32 %v2979_v4, %v2142_v20  ;;  %v3057_v39 = vadd.f32 %v3050_v27, %v2255_v37  ;;  %v6229_v20 = vld [vmem:[#allocation8 + $0x320] sm:$0xff]  ;;  %v6232_v4 = vld [vmem:[#allocation8 + $0x330] sm:$0xff]  ;;  %v6262_v37 = vld [vmem:[#allocation8 + $0x2d8] sm:$0xff] }
 0xc1a   :  { %v2981_v19 = vpop.f32.mrf.mxu0  ;;  %v3052_v40 = vpop.f32.mrf.mxu1  ;;  %v6256_v27 = vld [vmem:[#allocation8 + $0x2f0] sm:$0xff] }
 0xc1b   :  { %v3879_v21 = vmul.f32 -1.442695, %v3055_v31  ;;  %v3056_v22 = vadd.f32 %v2981_v19, %v2144_v30  ;;  %v3881_v5 = vmul.f32 -1.442695, %v3057_v39  ;;  %v3058_v25 = vadd.f32 %v3052_v40, %v2257_v53  ;;  %v6238_v30 = vld [vmem:[#allocation8 + $0x318] sm:$0xff]  ;;  %v6241_v31 = vld [vmem:[#allocation8 + $0x300] sm:$0xff] }
 0xc1c   :  { %v6244_v19 = vld [vmem:[#allocation8 + $0x310] sm:$0xff]  ;;  %v6265_v39 = vld [vmem:[#allocation8 + $0x2c0] sm:$0xff]  ;;  %v6274_v53 = vld [vmem:[#allocation8 + $0x2b8] sm:$0xff] }
 0xc1d   :  { %4086 = vpow2.f32 %v3879_v21  ;;  %v3880_v24 = vmul.f32 -1.442695, %v3056_v22  ;;  %v6247_v21 = vld [vmem:[#allocation8 + $0x2e8] sm:$0xff]  ;;  %v6250_v22 = vld [vmem:[#allocation8 + $0x2f8] sm:$0xff]  ;;  %v6268_v40 = vld [vmem:[#allocation8 + $0x2d0] sm:$0xff] }
 0xc1f   :  { %4088 = vpow2.f32 %v3880_v24  ;;  %v6253_v24 = vld [vmem:[#allocation8 + $0x2e0] sm:$0xff] }
 0xc20   :  { %4090 = vpow2.f32 %v3881_v5  ;;  %v6277_v5 = vld [vmem:[#allocation8 + $0x2a0] sm:$0xff] }
 0xc21   :  { %4092 = vtanh.f32 %v3058_v25  ;;  %v6280_v25 = vld [vmem:[#allocation8 + $0x2b0] sm:$0xff] }
 0xc22   :  { %7082 = vst [vmem:[#allocation49_spill] sm:$0xff] %v6280_v25 }
 0xc2a   :  { %v4087_v6 = vpop.eup %4086 }
 0xc2b   :  { %v3068_v11 = vadd.f32 1.0, %v4087_v6  ;;  %v6283_v6 = vld [vmem:[#allocation8 + $0x288] sm:$0xff] }
 0xc2c   :  { %v4089_v62 = vpop.eup %4088  ;;  %7083 = vst [vmem:[#allocation77_spill] sm:$0xff] %v6283_v6 }
 0xc2d   :  { %4094 = vrcp.f32 %v3068_v11  ;;  %v3069_v32 = vadd.f32 1.0, %v4089_v62  ;;  %v4091_v33 = vpop.eup %4090  ;;  %v6286_v11 = vld [vmem:[#allocation8 + $0x298] sm:$0xff]  ;;  %v6289_v62 = vld [vmem:[#allocation8 + $0x280] sm:$0xff] }
 0xc2e   :  { %v4093_v58 = vpop.eup %4092  ;;  %v3070_v2 = vadd.f32 1.0, %v4091_v33  ;;  %7084 = vst [vmem:[#allocation48_spill] sm:$0xff] %v6286_v11  ;;  %7085 = vst [vmem:[#allocation30_spill] sm:$0xff] %v6289_v62  ;;  %v6295_v33 = vld [vmem:[#allocation8 + $0x268] sm:$0xff] }
 0xc2f   :  { %4096 = vrcp.f32 %v3069_v32  ;;  %v6292_v32 = vld [vmem:[#allocation8 + $0x290] sm:$0xff]  ;;  %7087 = vst [vmem:[#allocation51_spill] sm:$0xff] %v6295_v33 }
 0xc30   :  { %4098 = vrcp.f32 %v3070_v2  ;;  %7086 = vst [vmem:[#allocation46_spill] sm:$0xff] %v6292_v32  ;;  %v6310_v2 = vld [vmem:[#allocation8 + $0x258] sm:$0xff] }
 0xc31   :  { %7092 = vst [vmem:[#allocation57_spill] sm:$0xff] %v6310_v2 }
 0xc3a   :  { %v4095_v34 = vpop.eup %4094 }
 0xc3b   :  { %v3079_v35 = vmul.f32 %v4095_v34, %v4093_v58  ;;  %v6298_v58 = vld [vmem:[#allocation8 + $0x278] sm:$0xff]  ;;  %v6301_v34 = vld [vmem:[#allocation8 + $0x260] sm:$0xff] }
 0xc3c   :  { %v4097_v54 = vpop.eup %4096  ;;  %7088 = vst [vmem:[#allocation53_spill] sm:$0xff] %v6298_v58  ;;  %7089 = vst [vmem:[#allocation52_spill] sm:$0xff] %v6301_v34 }
 0xc3d   :  { %v3078_v38 = vmul.f32 %v4097_v54, %v6072_v46  ;;  %v4099_v1 = vpop.eup %4098  ;;  %v6211_v46 = vld [vmem:[#allocation8 + $0x348] sm:$0xff] }
 0xc3e   :  { %v6307_v54 = vld [vmem:[#allocation8 + $0x248] sm:$0xff] }
 0xc3f   :  { %v6190_v60 = vadd.f32 %v3079_v35, %v3078_v38  ;;  %v6304_v35 = vld [vmem:[#allocation8 + $0x270] sm:$0xff]  ;;  %7091 = vst [vmem:[#allocation55_spill] sm:$0xff] %v6307_v54  ;;  %v6313_v38 = vld [vmem:[#allocation8 + $0x240] sm:$0xff] }
 0xc40   :  { %7090 = vst [vmem:[#allocation54_spill] sm:$0xff] %v6304_v35  ;;  %7093 = vst [vmem:[#allocation56_spill] sm:$0xff] %v6313_v38 }
 0xc41   :  { %4100 = vtanh.f32 %v6190_v60 }
 0xc4e   :  { %v4101_v29 = vpop.eup %4100 }
 0xc4f   :  { %v3082_v0 = vmul.f32 %v4101_v29, %v4099_v1  ;;  %v6316_v1 = vld [vmem:[#allocation8 + $0x250] sm:$0xff]  ;;  %v6319_v29 = vld [vmem:[#allocation8 + $0x228] sm:$0xff] }
 0xc50   :  { %7094 = vst [vmem:[#allocation58_spill] sm:$0xff] %v6316_v1  ;;  %7095 = vst [vmem:[#allocation28_spill] sm:$0xff] %v6319_v29 }
 0xc51   :  { %3083 = vst [vmem:[#allocation14 + $0x18] sm:$0xff] %v3082_v0  ;;  %3153 = vmatmul.mubr.f32.vlgmr.msra.gmra.mxu0 %v3082_v0  ;;  %3224 = vmatmul.mubr.f32.vlgmr.msra.gmra.mxu1 %v3082_v0  ;;  %v6322_v0 = vld [vmem:[#allocation8 + $0x238] sm:$0xff] }
 0xc52   :  { %3264 = vmatpush1.msra.mxu0 %v6075_v12  ;;  %3335 = vmatpush1.msra.mxu1 %v6078_v17  ;;  %7096 = vst [vmem:[#allocation29_spill] sm:$0xff] %v6322_v0 }
 0xc53   :  { %3265 = vmatprep.subr.mxu0 %v6081_v23  ;;  %3336 = vmatprep.subr.mxu1 %v6084_v3 }
 0xc54   :  { %3266 = vmatpush1.msra.mxu0 %v6087_v16  ;;  %3337 = vmatpush1.msra.mxu1 %v6090_v18 }
 0xc55   :  { %3267 = vmatprep.subr.mxu0 %v6093_v14  ;;  %3338 = vmatprep.subr.mxu1 %v6096_v10 }
 0xc56   :  { %3268 = vmatpush1.msra.mxu0 %v6099_v13  ;;  %3339 = vmatpush1.msra.mxu1 %v6102_v26 }
 0xc57   :  { %3269 = vmatprep.subr.mxu0 %v6105_v50  ;;  %3340 = vmatprep.subr.mxu1 %v6108_v45 }
 0xc58   :  { %3270 = vmatpush1.msra.mxu0 %v6111_v48  ;;  %3341 = vmatpush1.msra.mxu1 %v6114_v7 }
 0xc59   :  { %3271 = vmatprep.subr.mxu0 %v6117_v42  ;;  %3342 = vmatprep.subr.mxu1 %v6120_v49 }
 0xc5a   :  { %3272 = vmatpush1.msra.mxu0 %v6123_v43  ;;  %3343 = vmatpush1.msra.mxu1 %v6126_v9 }
 0xc5b   :  { %3273 = vmatprep.subr.mxu0 %v6211_v46  ;;  %3344 = vmatprep.subr.mxu1 %v6214_v8 }
 0xc5c   :  { %3274 = vmatpush1.msra.mxu0 %v6217_v59  ;;  %3345 = vmatpush1.msra.mxu1 %v6220_v63 }
 0xc5d   :  { %3275 = vmatprep.subr.mxu0 %v6223_v55  ;;  %3346 = vmatprep.subr.mxu1 %v6226_v52 }
 0xc5e   :  { %3276 = vmatpush1.msra.mxu0 %v6229_v20  ;;  %3347 = vmatpush1.msra.mxu1 %v6232_v4 }
 0xc5f   :  { %3277 = vmatprep.subr.mxu0 %v6235_v28  ;;  %3348 = vmatprep.subr.mxu1 %v6238_v30 }
 0xc60   :  { %3278 = vmatpush1.msra.mxu0 %v6241_v31  ;;  %3349 = vmatpush1.msra.mxu1 %v6244_v19 }
 0xc61   :  { %3279 = vmatprep.subr.mxu0 %v6247_v21  ;;  %3350 = vmatprep.subr.mxu1 %v6250_v22 }
 0xc62   :  { %3280 = vmatpush1.msra.mxu0 %v6253_v24  ;;  %3351 = vmatpush1.msra.mxu1 %v6256_v27 }
 0xc63   :  { %3281 = vmatprep.subr.mxu0 %v6259_v36  ;;  %3352 = vmatprep.subr.mxu1 %v6262_v37 }
 0xc64   :  { %3282 = vmatpush1.msra.mxu0 %v6265_v39  ;;  %3353 = vmatpush1.msra.mxu1 %v6268_v40 }
 0xc65   :  { %3283 = vmatprep.subr.mxu0 %v6271_v41  ;;  %3354 = vmatprep.subr.mxu1 %v6274_v53 }
 0xc66   :  { %3284 = vmatpush1.msra.mxu0 %v6277_v5  ;;  %3355 = vmatpush1.msra.mxu1 %v6280_v25 }
 0xc67   :  { %3285 = vmatprep.subr.mxu0 %v6283_v6  ;;  %3356 = vmatprep.subr.mxu1 %v6286_v11  ;;  %v7106_v11 = vld [vmem:[#allocation42_spill] sm:$0xff] }
 0xc68   :  { %3286 = vmatpush1.msra.mxu0 %v6289_v62  ;;  %3357 = vmatpush1.msra.mxu1 %v6292_v32 }
 0xc69   :  { %3287 = vmatprep.subr.mxu0 %v6295_v33  ;;  %3358 = vmatprep.subr.mxu1 %v6298_v58 }
 0xc6a   :  { %3288 = vmatpush1.msra.mxu0 %v6301_v34  ;;  %3359 = vmatpush1.msra.mxu1 %v6304_v35 }
 0xc6b   :  { %3289 = vmatprep.subr.mxu0 %v6307_v54  ;;  %3360 = vmatprep.subr.mxu1 %v6310_v2  ;;  %v6325_v54 = vld [vmem:[#allocation8 + $0x220] sm:$0xff]  ;;  %v6328_v2 = vld [vmem:[#allocation8 + $0x230] sm:$0xff] }
 0xc6c   :  { %3290 = vmatpush1.msra.mxu0 %v6313_v38  ;;  %3361 = vmatpush1.msra.mxu1 %v6316_v1  ;;  %7097 = vst [vmem:[#allocation59_spill] sm:$0xff] %v6325_v54  ;;  %7098 = vst [vmem:[#allocation61_spill] sm:$0xff] %v6328_v2  ;;  %v6331_v38 = vld [vmem:[#allocation8 + $0x208] sm:$0xff]  ;;  %v6334_v1 = vld [vmem:[#allocation8 + $0x218] sm:$0xff] }
 0xc6d   :  { %3291 = vmatprep.subr.mxu0 %v6319_v29  ;;  %3362 = vmatprep.subr.mxu1 %v6322_v0  ;;  %7099 = vst [vmem:[#allocation60_spill] sm:$0xff] %v6331_v38  ;;  %7100 = vst [vmem:[#allocation62_spill] sm:$0xff] %v6334_v1  ;;  %v6337_v29 = vld [vmem:[#allocation8 + $0x200] sm:$0xff]  ;;  %v6341_v0 = vld [vmem:[#allocation8 + $0x210] sm:$0xff] }
 0xc6e   :  { %3292 = vmatpush1.msra.mxu0 %v6325_v54  ;;  %3363 = vmatpush1.msra.mxu1 %v6328_v2  ;;  %7101 = vst [vmem:[#allocation26_spill] sm:$0xff] %v6337_v29  ;;  %7102 = vst [vmem:[#allocation27_spill] sm:$0xff] %v6341_v0  ;;  %v7104_v54 = vld [vmem:[#allocation39_spill] sm:$0xff] }
 0xc6f   :  { %3293 = vmatprep.subr.mxu0 %v6331_v38  ;;  %3364 = vmatprep.subr.mxu1 %v6334_v1  ;;  %v7103_v38 = vld [vmem:[#allocation37_spill] sm:$0xff]  ;;  %v2150_v35 = vadd.f32 %v7104_v54, %v7037_v15 }
 0xc70   :  { %3294 = vmatpush1.msra.mxu0 %v6337_v29  ;;  %3327 = vmatprep.mubr.f32.mxu0 %v7073_v47  ;;  %v2148_v2 = vadd.f32 %v7103_v38, %v7077_v61  ;;  %v2263_v38 = vadd.f32 %v7106_v11, %v5913_v57  ;;  %v7109_v11 = vld [vmem:[#allocation48_spill] sm:$0xff] }
 0xc71   :  { %3365 = vmatpush1.msra.mxu1 %v6341_v0  ;;  %3398 = vmatprep.mubr.f32.mxu1 %v7073_v47  ;;  %v7105_v47 = vld [vmem:[#allocation40_spill] sm:$0xff] }
 0xc72   :  { %3438 = vmatprep.subr.mxu0 %v6175_v51  ;;  %3509 = vmatprep.subr.mxu1 %v6178_v56  ;;  %v2261_v51 = vadd.f32 %v7105_v47, %v7039_v44 }
 0xd11   :  { %v3154_v1 = vpop.f32.mrf.mxu0  ;;  %v3225_v0 = vpop.f32.mrf.mxu1 }
 0xd12   :  { %v3230_v29 = vadd.f32 %v3154_v1, %v2148_v2  ;;  %v3232_v62 = vadd.f32 %v3225_v0, %v2261_v51  ;;  %v7111_v0 = vld [vmem:[#allocation46_spill] sm:$0xff] }
 0xd13   :  { %v3156_v34 = vpop.f32.mrf.mxu0  ;;  %v3227_v56 = vpop.f32.mrf.mxu1 }
 0xd14   :  { %v3882_v58 = vmul.f32 -1.442695, %v3230_v29  ;;  %v3231_v33 = vadd.f32 %v3156_v34, %v2150_v35  ;;  %v3884_v61 = vmul.f32 -1.442695, %v3232_v62  ;;  %v3233_v6 = vadd.f32 %v3227_v56, %v2263_v38  ;;  %v7110_v62 = vld [vmem:[#allocation30_spill] sm:$0xff]  ;;  %v7112_v38 = vld [vmem:[#allocation51_spill] sm:$0xff] }
 0xd16   :  { %4102 = vpow2.f32 %v3882_v58  ;;  %v3883_v32 = vmul.f32 -1.442695, %v3231_v33 }
 0xd18   :  { %4104 = vpow2.f32 %v3883_v32 }
 0xd19   :  { %4106 = vpow2.f32 %v3884_v61 }
 0xd1a   :  { %4108 = vtanh.f32 %v3233_v6  ;;  %v7108_v6 = vld [vmem:[#allocation77_spill] sm:$0xff] }
 0xd23   :  { %v4103_v25 = vpop.eup %4102 }
 0xd24   :  { %v3243_v54 = vadd.f32 1.0, %v4103_v25 }
 0xd25   :  { %v4105_v2 = vpop.eup %4104 }
 0xd26   :  { %4110 = vrcp.f32 %v3243_v54  ;;  %v3244_v58 = vadd.f32 1.0, %v4105_v2  ;;  %v4107_v32 = vpop.eup %4106  ;;  %v7113_v54 = vld [vmem:[#allocation53_spill] sm:$0xff]  ;;  %v7114_v2 = vld [vmem:[#allocation52_spill] sm:$0xff] }
 0xd27   :  { %v4109_v33 = vpop.eup %4108  ;;  %v3245_v51 = vadd.f32 1.0, %v4107_v32  ;;  %v7116_v32 = vld [vmem:[#allocation55_spill] sm:$0xff] }
 0xd28   :  { %4112 = vrcp.f32 %v3244_v58  ;;  %v7115_v58 = vld [vmem:[#allocation54_spill] sm:$0xff] }
 0xd29   :  { %4114 = vrcp.f32 %v3245_v51  ;;  %v7121_v51 = vld [vmem:[#allocation29_spill] sm:$0xff] }
 0xd33   :  { %v4111_v34 = vpop.eup %4110 }
 0xd34   :  { %v3254_v35 = vmul.f32 %v4111_v34, %v4109_v33  ;;  %v7117_v33 = vld [vmem:[#allocation57_spill] sm:$0xff]  ;;  %v7118_v34 = vld [vmem:[#allocation56_spill] sm:$0xff] }
 0xd35   :  { %v4113_v47 = vpop.eup %4112 }
 0xd36   :  { %v3253_v1 = vmul.f32 %v4113_v47, %v6190_v60  ;;  %v4115_v56 = vpop.eup %4114  ;;  %v7107_v60 = vld [vmem:[#allocation49_spill] sm:$0xff]  ;;  %v7120_v47 = vld [vmem:[#allocation28_spill] sm:$0xff] }
 0xd38   :  { %v6356_v29 = vadd.f32 %v3254_v35, %v3253_v1  ;;  %v7119_v35 = vld [vmem:[#allocation58_spill] sm:$0xff]  ;;  %v7122_v1 = vld [vmem:[#allocation59_spill] sm:$0xff] }
 0xd3a   :  { %4116 = vtanh.f32 %v6356_v29 }
 0xd47   :  { %v4117_v61 = vpop.eup %4116 }
 0xd48   :  { %v3257_v25 = vmul.f32 %v4117_v61, %v4115_v56  ;;  %v7123_v56 = vld [vmem:[#allocation61_spill] sm:$0xff]  ;;  %v7124_v61 = vld [vmem:[#allocation60_spill] sm:$0xff] }
 0xd4a   :  { %3258 = vst [vmem:[#allocation14 + $0x20] sm:$0xff] %v3257_v25  ;;  %3328 = vmatmul.mubr.f32.vlgmr.msra.gmra.mxu0 %v3257_v25  ;;  %3399 = vmatmul.mubr.f32.vlgmr.msra.gmra.mxu1 %v3257_v25  ;;  %v7125_v25 = vld [vmem:[#allocation62_spill] sm:$0xff] }
 0xd4b   :  { %3439 = vmatpush1.msra.mxu0 %v6075_v12  ;;  %3510 = vmatpush1.msra.mxu1 %v6078_v17 }
 0xd4c   :  { %3440 = vmatprep.subr.mxu0 %v6081_v23  ;;  %3511 = vmatprep.subr.mxu1 %v6084_v3 }
 0xd4d   :  { %3441 = vmatpush1.msra.mxu0 %v6087_v16  ;;  %3512 = vmatpush1.msra.mxu1 %v6090_v18 }
 0xd4e   :  { %3442 = vmatprep.subr.mxu0 %v6093_v14  ;;  %3513 = vmatprep.subr.mxu1 %v6096_v10 }
 0xd4f   :  { %3443 = vmatpush1.msra.mxu0 %v6099_v13  ;;  %3514 = vmatpush1.msra.mxu1 %v6102_v26 }
 0xd50   :  { %3444 = vmatprep.subr.mxu0 %v6105_v50  ;;  %3515 = vmatprep.subr.mxu1 %v6108_v45 }
 0xd51   :  { %3445 = vmatpush1.msra.mxu0 %v6111_v48  ;;  %3516 = vmatpush1.msra.mxu1 %v6114_v7 }
 0xd52   :  { %3446 = vmatprep.subr.mxu0 %v6117_v42  ;;  %3517 = vmatprep.subr.mxu1 %v6120_v49 }
 0xd53   :  { %3447 = vmatpush1.msra.mxu0 %v6123_v43  ;;  %3518 = vmatpush1.msra.mxu1 %v6126_v9 }
 0xd54   :  { %3448 = vmatprep.subr.mxu0 %v6211_v46  ;;  %3519 = vmatprep.subr.mxu1 %v6214_v8 }
 0xd55   :  { %3449 = vmatpush1.msra.mxu0 %v6217_v59  ;;  %3520 = vmatpush1.msra.mxu1 %v6220_v63 }
 0xd56   :  { %3450 = vmatprep.subr.mxu0 %v6223_v55  ;;  %3521 = vmatprep.subr.mxu1 %v6226_v52 }
 0xd57   :  { %3451 = vmatpush1.msra.mxu0 %v6229_v20  ;;  %3522 = vmatpush1.msra.mxu1 %v6232_v4 }
 0xd58   :  { %3452 = vmatprep.subr.mxu0 %v6235_v28  ;;  %3523 = vmatprep.subr.mxu1 %v6238_v30 }
 0xd59   :  { %3453 = vmatpush1.msra.mxu0 %v6241_v31  ;;  %3524 = vmatpush1.msra.mxu1 %v6244_v19 }
 0xd5a   :  { %3454 = vmatprep.subr.mxu0 %v6247_v21  ;;  %3525 = vmatprep.subr.mxu1 %v6250_v22 }
 0xd5b   :  { %3455 = vmatpush1.msra.mxu0 %v6253_v24  ;;  %3526 = vmatpush1.msra.mxu1 %v6256_v27 }
 0xd5c   :  { %3456 = vmatprep.subr.mxu0 %v6259_v36  ;;  %3527 = vmatprep.subr.mxu1 %v6262_v37 }
 0xd5d   :  { %3457 = vmatpush1.msra.mxu0 %v6265_v39  ;;  %3528 = vmatpush1.msra.mxu1 %v6268_v40 }
 0xd5e   :  { %3458 = vmatprep.subr.mxu0 %v6271_v41  ;;  %3529 = vmatprep.subr.mxu1 %v6274_v53 }
 0xd5f   :  { %3459 = vmatpush1.msra.mxu0 %v6277_v5  ;;  %3530 = vmatpush1.msra.mxu1 %v7107_v60 }
 0xd60   :  { %3460 = vmatprep.subr.mxu0 %v7108_v6  ;;  %3531 = vmatprep.subr.mxu1 %v7109_v11  ;;  %v7135_v11 = vld [vmem:[#allocation70_spill] sm:$0xff] }
 0xd61   :  { %3461 = vmatpush1.msra.mxu0 %v7110_v62  ;;  %3532 = vmatpush1.msra.mxu1 %v7111_v0 }
 0xd62   :  { %3462 = vmatprep.subr.mxu0 %v7112_v38  ;;  %3533 = vmatprep.subr.mxu1 %v7113_v54 }
 0xd63   :  { %3463 = vmatpush1.msra.mxu0 %v7114_v2  ;;  %3534 = vmatpush1.msra.mxu1 %v7115_v58  ;;  %v7126_v58 = vld [vmem:[#allocation26_spill] sm:$0xff] }
 0xd64   :  { %3464 = vmatprep.subr.mxu0 %v7116_v32  ;;  %3535 = vmatprep.subr.mxu1 %v7117_v33  ;;  %v7127_v32 = vmov 0.0   ;;  %v7128_v33 = vld [vmem:[#allocation27_spill] sm:$0xff] }
 0xd65   :  { %3465 = vmatpush1.msra.mxu0 %v7118_v34  ;;  %3536 = vmatpush1.msra.mxu1 %v7119_v35  ;;  %v7129_v35 = vld [vmem:[#allocation25_spill] sm:$0xff] }
 0xd66   :  { %3466 = vmatprep.subr.mxu0 %v7120_v47  ;;  %3537 = vmatprep.subr.mxu1 %v7121_v51  ;;  %v7130_v47 = vld [vmem:[#allocation72_spill] sm:$0xff]  ;;  %v7131_v51 = vld [vmem:[#allocation43_spill] sm:$0xff] }
 0xd67   :  { %3467 = vmatpush1.msra.mxu0 %v7122_v1  ;;  %3538 = vmatpush1.msra.mxu1 %v7123_v56  ;;  %v7132_v1 = vld [vmem:[#allocation41_spill] sm:$0xff] }
 0xd68   :  { %3468 = vmatprep.subr.mxu0 %v7124_v61  ;;  %3539 = vmatprep.subr.mxu1 %v7125_v25  ;;  %v2154_v34 = vadd.f32 %v7132_v1, %v7131_v51  ;;  %v7133_v61 = vld [vmem:[#allocation67_spill] sm:$0xff]  ;;  %v2269_v1 = vadd.f32 %v7135_v11, %v5913_v57 }
 0xd69   :  { %3469 = vmatpush1.msra.mxu0 %v7126_v58  ;;  %3502 = vmatprep.mubr.f32.mxu0 %v7127_v32  ;;  %v2156_v2 = vadd.f32 %v7133_v61, %v7037_v15 }
 0xd6a   :  { %3540 = vmatpush1.msra.mxu1 %v7128_v33  ;;  %3573 = vmatprep.mubr.f32.mxu1 %v7127_v32  ;;  %v7134_v32 = vld [vmem:[#allocation69_spill] sm:$0xff] }
 0xd6b   :  { %3613 = vmatprep.subr.mxu0 %v7129_v35  ;;  %3684 = vmatprep.subr.mxu1 %v7130_v47  ;;  %v2267_v35 = vadd.f32 %v7134_v32, %v7039_v44 }
 0xe0a   :  { %v3329_v56 = vpop.f32.mrf.mxu0  ;;  %v3400_v33 = vpop.f32.mrf.mxu1 }
 0xe0b   :  { %v3405_v25 = vadd.f32 %v3329_v56, %v2154_v34  ;;  %v3407_v62 = vadd.f32 %v3400_v33, %v2267_v35 }
 0xe0c   :  { %v3331_v54 = vpop.f32.mrf.mxu0  ;;  %v3402_v47 = vpop.f32.mrf.mxu1 }
 0xe0d   :  { %v3885_v58 = vmul.f32 -1.442695, %v3405_v25  ;;  %v3406_v38 = vadd.f32 %v3331_v54, %v2156_v2  ;;  %v3887_v51 = vmul.f32 -1.442695, %v3407_v62  ;;  %v3408_v6 = vadd.f32 %v3402_v47, %v2269_v1 }
 0xe0f   :  { %4118 = vpow2.f32 %v3885_v58  ;;  %v3886_v0 = vmul.f32 -1.442695, %v3406_v38 }
 0xe11   :  { %4120 = vpow2.f32 %v3886_v0 }
 0xe12   :  { %4122 = vpow2.f32 %v3887_v51 }
 0xe13   :  { %4124 = vtanh.f32 %v3408_v6 }
 0xe1c   :  { %v4119_v60 = vpop.eup %4118 }
 0xe1d   :  { %v3418_v61 = vadd.f32 1.0, %v4119_v60 }
 0xe1e   :  { %v4121_v34 = vpop.eup %4120 }
 0xe1f   :  { %4126 = vrcp.f32 %v3418_v61  ;;  %v3419_v54 = vadd.f32 1.0, %v4121_v34  ;;  %v4123_v0 = vpop.eup %4122 }
 0xe20   :  { %v4125_v38 = vpop.eup %4124  ;;  %v3420_v33 = vadd.f32 1.0, %v4123_v0 }
 0xe21   :  { %4128 = vrcp.f32 %v3419_v54 }
 0xe22   :  { %4130 = vrcp.f32 %v3420_v33 }
 0xe2c   :  { %v4127_v2 = vpop.eup %4126 }
 0xe2d   :  { %v3429_v58 = vmul.f32 %v4127_v2, %v4125_v38 }
 0xe2e   :  { %v4129_v32 = vpop.eup %4128 }
 0xe2f   :  { %v3428_v56 = vmul.f32 %v4129_v32, %v6356_v29  ;;  %v4131_v60 = vpop.eup %4130 }
 0xe31   :  { %v6434_v25 = vadd.f32 %v3429_v58, %v3428_v56 }
 0xe33   :  { %4132 = vtanh.f32 %v6434_v25 }
 0xe40   :  { %v4133_v11 = vpop.eup %4132 }
 0xe41   :  { %v3432_v62 = vmul.f32 %v4133_v11, %v4131_v60  ;;  %v7163_v60 = vld [vmem:[#allocation73_spill] sm:$0xff] }
 0xe43   :  { %3433 = vst [vmem:[#allocation14 + $0x28] sm:$0xff] %v3432_v62  ;;  %3503 = vmatmul.mubr.f32.vlgmr.msra.gmra.mxu0 %v3432_v62  ;;  %3574 = vmatmul.mubr.f32.vlgmr.msra.gmra.mxu1 %v3432_v62 }
 0xe44   :  { %3614 = vmatpush1.msra.mxu0 %v6075_v12  ;;  %3685 = vmatpush1.msra.mxu1 %v6078_v17  ;;  %v7136_v12 = vld [vmem:[#allocation49_spill] sm:$0xff] }
 0xe45   :  { %3615 = vmatprep.subr.mxu0 %v6081_v23  ;;  %3686 = vmatprep.subr.mxu1 %v6084_v3  ;;  %v7137_v17 = vld [vmem:[#allocation77_spill] sm:$0xff]  ;;  %v7138_v23 = vld [vmem:[#allocation48_spill] sm:$0xff]  ;;  %v7139_v3 = vld [vmem:[#allocation30_spill] sm:$0xff] }
 0xe46   :  { %3616 = vmatpush1.msra.mxu0 %v6087_v16  ;;  %3687 = vmatpush1.msra.mxu1 %v6090_v18  ;;  %v7140_v16 = vld [vmem:[#allocation46_spill] sm:$0xff]  ;;  %v7141_v18 = vld [vmem:[#allocation51_spill] sm:$0xff] }
 0xe47   :  { %3617 = vmatprep.subr.mxu0 %v6093_v14  ;;  %3688 = vmatprep.subr.mxu1 %v6096_v10  ;;  %v7142_v14 = vld [vmem:[#allocation53_spill] sm:$0xff]  ;;  %v7143_v10 = vld [vmem:[#allocation52_spill] sm:$0xff] }
 0xe48   :  { %3618 = vmatpush1.msra.mxu0 %v6099_v13  ;;  %3689 = vmatpush1.msra.mxu1 %v6102_v26  ;;  %v7144_v13 = vld [vmem:[#allocation54_spill] sm:$0xff]  ;;  %v7145_v26 = vld [vmem:[#allocation55_spill] sm:$0xff] }
 0xe49   :  { %3619 = vmatprep.subr.mxu0 %v6105_v50  ;;  %3690 = vmatprep.subr.mxu1 %v6108_v45  ;;  %v7146_v50 = vld [vmem:[#allocation57_spill] sm:$0xff]  ;;  %v7147_v45 = vld [vmem:[#allocation56_spill] sm:$0xff] }
 0xe4a   :  { %3620 = vmatpush1.msra.mxu0 %v6111_v48  ;;  %3691 = vmatpush1.msra.mxu1 %v6114_v7  ;;  %v7148_v48 = vld [vmem:[#allocation58_spill] sm:$0xff]  ;;  %v7149_v7 = vld [vmem:[#allocation28_spill] sm:$0xff] }
 0xe4b   :  { %3621 = vmatprep.subr.mxu0 %v6117_v42  ;;  %3692 = vmatprep.subr.mxu1 %v6120_v49  ;;  %v7150_v42 = vld [vmem:[#allocation29_spill] sm:$0xff]  ;;  %v7151_v49 = vld [vmem:[#allocation59_spill] sm:$0xff] }
 0xe4c   :  { %3622 = vmatpush1.msra.mxu0 %v6123_v43  ;;  %3693 = vmatpush1.msra.mxu1 %v6126_v9  ;;  %v7152_v43 = vld [vmem:[#allocation61_spill] sm:$0xff]  ;;  %v7153_v9 = vld [vmem:[#allocation60_spill] sm:$0xff] }
 0xe4d   :  { %3623 = vmatprep.subr.mxu0 %v6211_v46  ;;  %3694 = vmatprep.subr.mxu1 %v6214_v8  ;;  %v7154_v46 = vld [vmem:[#allocation62_spill] sm:$0xff] }
 0xe4e   :  { %3624 = vmatpush1.msra.mxu0 %v6217_v59  ;;  %3695 = vmatpush1.msra.mxu1 %v6220_v63  ;;  %v7155_v8 = vld [vmem:[#allocation26_spill] sm:$0xff]  ;;  %v7156_v59 = vmov 0.0   ;;  %v7157_v63 = vld [vmem:[#allocation27_spill] sm:$0xff] }
 0xe4f   :  { %3625 = vmatprep.subr.mxu0 %v6223_v55  ;;  %3696 = vmatprep.subr.mxu1 %v6226_v52  ;;  %v7158_v55 = vld [vmem:[#allocation43_spill] sm:$0xff]  ;;  %v7159_v52 = vld [vmem:[#allocation68_spill] sm:$0xff] }
 0xe50   :  { %3626 = vmatpush1.msra.mxu0 %v6229_v20  ;;  %3697 = vmatpush1.msra.mxu1 %v6232_v4  ;;  %v2160_v20 = vadd.f32 %v7159_v52, %v7158_v55  ;;  %v2166_v11 = vadd.f32 %v7163_v60, %v7158_v55 }
 0xe51   :  { %3627 = vmatprep.subr.mxu0 %v6235_v28  ;;  %3698 = vmatprep.subr.mxu1 %v6238_v30  ;;  %v7160_v28 = vld [vmem:[#allocation24_spill] sm:$0xff] }
 0xe52   :  { %3628 = vmatpush1.msra.mxu0 %v6241_v31  ;;  %3699 = vmatpush1.msra.mxu1 %v6244_v19  ;;  %v2162_v30 = vadd.f32 %v7160_v28, %v7037_v15 }
 0xe53   :  { %3629 = vmatprep.subr.mxu0 %v6247_v21  ;;  %3700 = vmatprep.subr.mxu1 %v6250_v22 }
 0xe54   :  { %3630 = vmatpush1.msra.mxu0 %v6253_v24  ;;  %3701 = vmatpush1.msra.mxu1 %v6256_v27 }
 0xe55   :  { %3631 = vmatprep.subr.mxu0 %v6259_v36  ;;  %3702 = vmatprep.subr.mxu1 %v6262_v37  ;;  %v7161_v36 = vld [vmem:[#allocation71_spill] sm:$0xff] }
 0xe56   :  { %3632 = vmatpush1.msra.mxu0 %v6265_v39  ;;  %3703 = vmatpush1.msra.mxu1 %v6268_v40  ;;  %v2273_v37 = vadd.f32 %v7161_v36, %v7039_v44 }
 0xe57   :  { %3633 = vmatprep.subr.mxu0 %v6271_v41  ;;  %3704 = vmatprep.subr.mxu1 %v6274_v53  ;;  %v7162_v41 = vld [vmem:[#allocation47_spill] sm:$0xff] }
 0xe58   :  { %3634 = vmatpush1.msra.mxu0 %v6277_v5  ;;  %3705 = vmatpush1.msra.mxu1 %v7136_v12  ;;  %v2275_v53 = vadd.f32 %v7162_v41, %v5913_v57  ;;  %v7164_v12 = vld [vmem:[#allocation74_spill] sm:$0xff] }
 0xe59   :  { %3635 = vmatprep.subr.mxu0 %v7137_v17  ;;  %3706 = vmatprep.subr.mxu1 %v7138_v23  ;;  %v2168_v17 = vadd.f32 %v7164_v12, %v7037_v15 }
 0xe5a   :  { %3636 = vmatpush1.msra.mxu0 %v7139_v3  ;;  %3707 = vmatpush1.msra.mxu1 %v7140_v16 }
 0xe5b   :  { %3637 = vmatprep.subr.mxu0 %v7141_v18  ;;  %3708 = vmatprep.subr.mxu1 %v7142_v14 }
 0xe5c   :  { %3638 = vmatpush1.msra.mxu0 %v7143_v10  ;;  %3709 = vmatpush1.msra.mxu1 %v7144_v13  ;;  %v7165_v10 = vld [vmem:[#allocation75_spill] sm:$0xff] }
 0xe5d   :  { %3639 = vmatprep.subr.mxu0 %v7145_v26  ;;  %3710 = vmatprep.subr.mxu1 %v7146_v50  ;;  %v2279_v13 = vadd.f32 %v7165_v10, %v7039_v44 }
 0xe5e   :  { %3640 = vmatpush1.msra.mxu0 %v7147_v45  ;;  %3711 = vmatpush1.msra.mxu1 %v7148_v48  ;;  %v7166_v45 = vld [vmem:[#allocation76_spill] sm:$0xff] }
 0xe5f   :  { %3641 = vmatprep.subr.mxu0 %v7149_v7  ;;  %3712 = vmatprep.subr.mxu1 %v7150_v42  ;;  %v2281_v48 = vadd.f32 %v7166_v45, %v5913_v57 }
 0xe60   :  { %3642 = vmatpush1.msra.mxu0 %v7151_v49  ;;  %3713 = vmatpush1.msra.mxu1 %v7152_v43 }
 0xe61   :  { %3643 = vmatprep.subr.mxu0 %v7153_v9  ;;  %3714 = vmatprep.subr.mxu1 %v7154_v46 }
 0xe62   :  { %3644 = vmatpush1.msra.mxu0 %v7155_v8  ;;  %3677 = vmatprep.mubr.f32.mxu0 %v7156_v59 }
 0xe63   :  { %3715 = vmatpush1.msra.mxu1 %v7157_v63  ;;  %3748 = vmatprep.mubr.f32.mxu1 %v7156_v59 }
 0xf03   :  { %v3504_v4 = vpop.f32.mrf.mxu0  ;;  %v3575_v27 = vpop.f32.mrf.mxu1 }
 0xf04   :  { %v3580_v31 = vadd.f32 %v3504_v4, %v2160_v20  ;;  %v3582_v39 = vadd.f32 %v3575_v27, %v2273_v37 }
 0xf05   :  { %v3506_v19 = vpop.f32.mrf.mxu0  ;;  %v3577_v40 = vpop.f32.mrf.mxu1 }
 0xf06   :  { %v3888_v21 = vmul.f32 -1.442695, %v3580_v31  ;;  %v3581_v22 = vadd.f32 %v3506_v19, %v2162_v30  ;;  %v3890_v5 = vmul.f32 -1.442695, %v3582_v39  ;;  %v3583_v6 = vadd.f32 %v3577_v40, %v2275_v53 }
 0xf08   :  { %4134 = vpow2.f32 %v3888_v21  ;;  %v3889_v24 = vmul.f32 -1.442695, %v3581_v22 }
 0xf0a   :  { %4136 = vpow2.f32 %v3889_v24 }
 0xf0b   :  { %4138 = vpow2.f32 %v3890_v5 }
 0xf15   :  { %v4135_v29 = vpop.eup %4134 }
 0xf16   :  { %v3593_v51 = vadd.f32 1.0, %v4135_v29 }
 0xf17   :  { %v4137_v35 = vpop.eup %4136 }
 0xf18   :  { %4140 = vrcp.f32 %v3593_v51  ;;  %v3594_v47 = vadd.f32 1.0, %v4137_v35  ;;  %v4139_v1 = vpop.eup %4138 }
 0xf19   :  { %4142 = vtanh.f32 %v3583_v6  ;;  %v3595_v0 = vadd.f32 1.0, %v4139_v1 }
 0xf1a   :  { %4144 = vrcp.f32 %v3594_v47 }
 0xf1b   :  { %4146 = vrcp.f32 %v3595_v0 }
 0xf25   :  { %v4141_v61 = vpop.eup %4140 }
 0xf26   :  { %v4143_v34 = vpop.eup %4142 }
 0xf27   :  { %v4145_v54 = vpop.eup %4144  ;;  %v3604_v2 = vmul.f32 %v4143_v34, %v4141_v61 }
 0xf28   :  { %v3603_v38 = vmul.f32 %v4145_v54, %v6434_v25  ;;  %v4147_v32 = vpop.eup %4146 }
 0xf2a   :  { %v3605_v58 = vadd.f32 %v3604_v2, %v3603_v38 }
 0xf2c   :  { %4148 = vtanh.f32 %v3605_v58 }
 0xf39   :  { %v4149_v33 = vpop.eup %4148 }
 0xf3a   :  { %v3607_v56 = vmul.f32 %v4149_v33, %v4147_v32 }
 0xf3c   :  { %3608 = vst [vmem:[#allocation14 + $0x30] sm:$0xff] %v3607_v56  ;;  %3678 = vmatmul.mubr.f32.vlgmr.msra.gmra.mxu0 %v3607_v56  ;;  %3749 = vmatmul.mubr.f32.vlgmr.msra.gmra.mxu1 %v3607_v56 }
 0xffc   :  { %v3679_v62 = vpop.f32.mrf.mxu0  ;;  %v3750_v14 = vpop.f32.mrf.mxu1 }
 0xffd   :  { %v3755_v23 = vadd.f32 %v3679_v62, %v2166_v11  ;;  %v3757_v26 = vadd.f32 %v3750_v14, %v2279_v13 }
 0xffe   :  { %v3681_v3 = vpop.f32.mrf.mxu0  ;;  %v3752_v50 = vpop.f32.mrf.mxu1 }
 0xfff   :  { %v3891_v25 = vmul.f32 -1.442695, %v3755_v23  ;;  %v3756_v16 = vadd.f32 %v3681_v3, %v2168_v17  ;;  %v3893_v7 = vmul.f32 -1.442695, %v3757_v26  ;;  %v3758_v42 = vadd.f32 %v3752_v50, %v2281_v48 }
0x1001   :  { %4150 = vpow2.f32 %v3891_v25  ;;  %v3892_v18 = vmul.f32 -1.442695, %v3756_v16 }
0x1003   :  { %4152 = vpow2.f32 %v3892_v18 }
0x1004   :  { %4154 = vpow2.f32 %v3893_v7 }
0x1005   :  { %4156 = vtanh.f32 %v3758_v42 }
0x100e   :  { %v4151_v49 = vpop.eup %4150 }
0x100f   :  { %v3768_v15 = vadd.f32 1.0, %v4151_v49 }
0x1010   :  { %v4153_v43 = vpop.eup %4152 }
0x1011   :  { %4158 = vrcp.f32 %v3768_v15  ;;  %v3769_v9 = vadd.f32 1.0, %v4153_v43  ;;  %v4155_v46 = vpop.eup %4154 }
0x1012   :  { %v4157_v8 = vpop.eup %4156  ;;  %v3770_v55 = vadd.f32 1.0, %v4155_v46 }
0x1013   :  { %4160 = vrcp.f32 %v3769_v9 }
0x1014   :  { %4162 = vrcp.f32 %v3770_v55 }
0x101e   :  { %v4159_v59 = vpop.eup %4158 }
0x101f   :  { %v3779_v63 = vmul.f32 %v4159_v59, %v4157_v8 }
0x1020   :  { %v4161_v44 = vpop.eup %4160 }
0x1021   :  { %v3778_v52 = vmul.f32 %v4161_v44, %v3605_v58  ;;  %v4163_v57 = vpop.eup %4162 }
0x1023   :  { %v3780_v20 = vadd.f32 %v3779_v63, %v3778_v52 }
0x1025   :  { %4164 = vtanh.f32 %v3780_v20  ;;  %3787 = vst [vmem:[#allocation17 + $0x8] sm:$0xff] %v3780_v20 }
0x1032   :  { %v4165_v4 = vpop.eup %4164 }
0x1033   :  { %v3782_v28 = vmul.f32 %v4165_v4, %v4163_v57 }
0x1035   :  { %3783 = vst [vmem:[#allocation14 + $0x38] sm:$0xff] %v3782_v28  ;;  %3785 = vst [vmem:[#allocation15 + $0x8] sm:$0xff] %v3782_v28 }
0x1036   :  { %4425 = shalt.err (!%p4422_p6)
}
0x1037   :  { %3811 = dma.vmem_to_hbm [thread:$0]  %s3806_s5, 256, %s6543_s7, [#allocation16], %s4493_s21, %s4493_s21, %s4494_s22  }
0x1038   :  { %s4434_s23 = scalar_lea.vmem %s3794_s16, 1024  ;;  %p4439_p8 = scmp.lt.s32.totalorder %s3794_s16, %s3794_s16 }
0x1039   :  { %p4435_p7 = scmp.ne.s32.totalorder %s3794_s16, %s4434_s23  ;;  %p4440_p9 = scmp.lt.s32.totalorder %s4434_s23, %s4434_s23 }
0x103b   :  { %p4441_p10 = por %p4440_p9, %p4439_p8 }
0x103d   :  { %p4442_p11 = pnand %p4441_p10, %p4435_p7 }
0x103f   :  { %4445 = shalt.err (!%p4442_p11)
}
0x1040   :  { %3799 = dma.vmem_to_hbm [thread:$0]  %s3794_s16, 1024, %s6542_s6, [#allocation5], %s4493_s21, %s4493_s21, %s4494_s22  }
0x1041   :  { %s4454_s25 = scalar_lea.vmem %s3818_s18, 256  ;;  %p4459_p13 = scmp.lt.s32.totalorder %s3818_s18, %s3818_s18 }
0x1042   :  { %p4455_p12 = scmp.ne.s32.totalorder %s3818_s18, %s4454_s25  ;;  %p4460_p0 = scmp.lt.s32.totalorder %s4454_s25, %s4454_s25 }
0x1044   :  { %p4461_p1 = por %p4460_p0, %p4459_p13 }
0x1046   :  { %p4462_p2 = pnand %p4461_p1, %p4455_p12 }
0x1048   :  { %4465 = shalt.err (!%p4462_p2)
}
0x1049   :  { %3823 = dma.vmem_to_hbm [thread:$0]  %s3818_s18, 256, %s6544_s8, [#allocation16], %s4493_s21, %s4493_s21, %s4494_s22  }
0x104a   :  { %4482 = dma.done.wait [#allocation5], 1024  }
0x104b   :  { %4483 = vsyncadd [#allocation5], 4294966272 }
0x104c   :  { %4484 = dma.done.wait [#allocation16], 512  }
0x104d   :  { %4485 = vsyncadd [#allocation16], 4294966784 }
0x104e   :  { %3833 = vsyncpa [#allocation4], 1 }
0x104f   :  { %3834 = vsyncpa [#allocation7], 1 }
0x1050   :  { %3835 = vsyncpa [#allocation10], 1 }
0x1051   :  { %3836 = vsyncpa [#allocation13], 1 }
0x1052   :  { %3837 = vsyncpa [#allocation5], 1 }
0x1053   :  { %3838 = vsyncpa [#allocation16], 1 }

</bundles_post_ra>
